<compile_context>
chip_gen: v7x
topology: tpu7x:2x2x1
jax: 0.10.0
libtpu: 0.0.40
codegen_flags: <defaults>
</compile_context>

<pallas_src>
import math

import jax
import jax.numpy as jnp
from jax import lax
from jax.experimental import pallas as pl
from jax.experimental.pallas import tpu as pltpu

# ----- small GPT-2-style config -----
B, S, H = 2, 8, 32          # batch, seq, hidden
NH, HD = 4, 8               # heads, head dim (NH*HD == H)
MLP_D = 4 * H               # 128
V = 128                     # vocab size (128 -> lane-dense logits store)
N_LAYERS = 4                # total layers in the synthetic cloze model
LAYER_IDX = 2               # tail starts here -> 2 tail blocks
N_TAIL = N_LAYERS - LAYER_IDX
EPS = 1e-5


# ---------------- in-kernel helpers (traced inside Pallas) ----------------
def _layernorm(x, g, b):
    mu = jnp.mean(x, axis=-1, keepdims=True)
    var = jnp.mean((x - mu) ** 2, axis=-1, keepdims=True)
    return (x - mu) * lax.rsqrt(var + EPS) * g + b


def _gelu_new(x):
    c = math.sqrt(2.0 / math.pi)
    return 0.5 * x * (1.0 + jnp.tanh(c * (x + 0.044715 * x * x * x)))


# ---------------- fused Pallas kernel ----------------
def cloze_tail_kernel(x_ref,
                      ln1g_ref, ln1b_ref,
                      wq_ref, bq_ref, wk_ref, bk_ref, wv_ref, bv_ref,
                      wp_ref, bp_ref, ln2g_ref, ln2b_ref,
                      wfc_ref, bfc_ref, wfp_ref, bfp_ref,
                      lnfg_ref, lnfb_ref, wlm_ref,
                      o_ref):
    f32 = jnp.float32
    x = x_ref[0].astype(f32)                                  # (S, H)
    n_layers = wq_ref.shape[0]
    inv_sqrt_hd = f32(1.0 / math.sqrt(HD))

    # causal additive mask, built once and reused across layers/heads
    row = lax.broadcasted_iota(jnp.int32, (S, S), 0)
    col = lax.broadcasted_iota(jnp.int32, (S, S), 1)
    causal_bias = jnp.where(col <= row, f32(0.0), f32(-1e9))  # (S, S)

    for l in range(n_layers):        # static unroll over tail blocks
        # ---- causal multi-head self-attention ----
        # heads unrolled: no activation transposes, reshapes or lane slicing
        hln = _layernorm(x, ln1g_ref[l], ln1b_ref[l])
        attn = jnp.zeros((S, H), f32)
        for hh in range(NH):
            qh = (jnp.dot(hln, wq_ref[l, hh], preferred_element_type=f32)
                  + bq_ref[l, hh]) * inv_sqrt_hd              # (S, HD), scale folded in
            kh = jnp.dot(hln, wk_ref[l, hh], preferred_element_type=f32) + bk_ref[l, hh]
            vh = jnp.dot(hln, wv_ref[l, hh], preferred_element_type=f32) + bv_ref[l, hh]
            sc = jnp.einsum('qd,kd->qk', qh, kh,
                            preferred_element_type=f32) + causal_bias      # (S, S)
            sc = sc - jnp.max(sc, axis=-1, keepdims=True)
            p = jnp.exp(sc)
            p = p * pl.reciprocal(jnp.sum(p, axis=-1, keepdims=True), approx=True)
            ctx = jnp.dot(p, vh, preferred_element_type=f32)  # (S, HD)
            # ctx_full @ Wproj == sum_h ctx_h @ Wproj_h  -> no head concat needed
            attn = attn + jnp.dot(ctx, wp_ref[l, hh], preferred_element_type=f32)
        x = x + attn + bp_ref[l]

        # ---- MLP (gelu_new) ----
        hln = _layernorm(x, ln2g_ref[l], ln2b_ref[l])
        hmid = jnp.dot(hln, wfc_ref[l], preferred_element_type=f32) + bfc_ref[l]
        hmid = _gelu_new(hmid)
        x = x + jnp.dot(hmid, wfp_ref[l], preferred_element_type=f32) + bfp_ref[l]

    # ---- final LayerNorm + lm_head (lane-dense V=128 output) ----
    hln = _layernorm(x, lnfg_ref[...], lnfb_ref[...])
    o_ref[0] = jnp.dot(hln, wlm_ref[...],
                       preferred_element_type=f32).astype(o_ref.dtype)


# ---------------- wrapper ----------------
_PARAM_ORDER = ('ln1_g', 'ln1_b', 'w_q', 'b_q', 'w_k', 'b_k', 'w_v', 'b_v',
                'w_proj', 'b_proj', 'ln2_g', 'ln2_b', 'w_fc', 'b_fc', 'w_fp', 'b_fp')


def _rep_spec(shape):
    # whole array resident in VMEM; same block for every grid step (DMA'd once)
    nd = len(shape)
    return pl.BlockSpec(shape, lambda b: (0,) * nd)


@jax.jit
def cloze_tail_forward(x, packed, ln_f_g, ln_f_b, w_lm):
    args = [packed[k] for k in _PARAM_ORDER] + [ln_f_g, ln_f_b, w_lm]
    in_specs = ([pl.BlockSpec((1, S, H), lambda b: (b, 0, 0))]
                + [_rep_spec(a.shape) for a in args])
    return pl.pallas_call(
        cloze_tail_kernel,
        out_shape=jax.ShapeDtypeStruct((B, S, V), jnp.float32),
        grid_spec=pltpu.PrefetchScalarGridSpec(
            num_scalar_prefetch=0,
            grid=(B,),
            in_specs=in_specs,
            out_specs=pl.BlockSpec((1, S, V), lambda b: (b, 0, 0))),
        compiler_params=pltpu.CompilerParams(
            dimension_semantics=("parallel",)),
    )(x, *args)


def pack_params(blocks):
    """One-time layout plumbing (outside the kernel): stack per-layer params and
    pre-split attention weights into per-head slabs so the kernel never slices
    or transposes activations."""
    L = len(blocks)
    stack = lambda name: jnp.stack([blk[name] for blk in blocks])     # (L, ...)

    w_qkv = stack('w_qkv')                                            # (L, H, 3H)
    b_qkv = stack('b_qkv')                                            # (L, 1, 3H)
    qkv_w = [w_qkv[:, :, i * H:(i + 1) * H] for i in range(3)]        # 3 x (L, H, H)
    qkv_b = [b_qkv[:, :, i * H:(i + 1) * H] for i in range(3)]        # 3 x (L, 1, H)
    per_head_w = lambda w: w.reshape(L, H, NH, HD).transpose(0, 2, 1, 3)   # (L,NH,H,HD)
    per_head_b = lambda b: b.reshape(L, 1, NH, HD).transpose(0, 2, 1, 3)   # (L,NH,1,HD)

    return {
        'ln1_g': stack('ln1_g'), 'ln1_b': stack('ln1_b'),
        'w_q': per_head_w(qkv_w[0]), 'b_q': per_head_b(qkv_b[0]),
        'w_k': per_head_w(qkv_w[1]), 'b_k': per_head_b(qkv_b[1]),
        'w_v': per_head_w(qkv_w[2]), 'b_v': per_head_b(qkv_b[2]),
        'w_proj': stack('w_proj').reshape(L, NH, HD, H),              # (L,NH,HD,H)
        'b_proj': stack('b_proj'),
        'ln2_g': stack('ln2_g'), 'ln2_b': stack('ln2_b'),
        'w_fc': stack('w_fc'), 'b_fc': stack('b_fc'),
        'w_fp': stack('w_fp'), 'b_fp': stack('b_fp'),
    }


# ---------------- pure-JAX reference (for correctness check) ----------------
def _ref_forward(x, blocks, ln_f_g, ln_f_b, w_lm):
    def ln(v, g, b):
        mu = v.mean(-1, keepdims=True)
        var = ((v - mu) ** 2).mean(-1, keepdims=True)
        return (v - mu) / jnp.sqrt(var + EPS) * g + b

    for p in blocks:
        h = ln(x, p['ln1_g'], p['ln1_b'])
        qkv = h @ p['w_qkv'] + p['b_qkv']
        q, k, v = jnp.split(qkv, 3, axis=-1)
        q = q.reshape(B, S, NH, HD).transpose(0, 2, 1, 3)
        k = k.reshape(B, S, NH, HD).transpose(0, 2, 1, 3)
        v = v.reshape(B, S, NH, HD).transpose(0, 2, 1, 3)
        att = jnp.einsum('bhqd,bhkd->bhqk', q, k) / math.sqrt(HD)
        mask = jnp.tril(jnp.ones((S, S), bool))
        att = jnp.where(mask, att, -1e9)
        pr = jax.nn.softmax(att, axis=-1)
        ctx = jnp.einsum('bhqk,bhkd->bhqd', pr, v).transpose(0, 2, 1, 3).reshape(B, S, H)
        x = x + ctx @ p['w_proj'] + p['b_proj']
        h = ln(x, p['ln2_g'], p['ln2_b'])
        h = h @ p['w_fc'] + p['b_fc']
        h = 0.5 * h * (1.0 + jnp.tanh(math.sqrt(2.0 / math.pi) * (h + 0.044715 * h ** 3)))
        x = x + h @ p['w_fp'] + p['b_fp']
    return ln(x, ln_f_g, ln_f_b) @ w_lm


# ---------------- deterministic parameter construction ----------------
def make_params(key):
    def n(k, shape, scale=0.02):
        return scale * jax.random.normal(k, shape, jnp.float32)

    blocks = []
    for _ in range(N_TAIL):
        key, *ks = jax.random.split(key, 13)
        blocks.append({
            'ln1_g': 1.0 + n(ks[0], (1, H)),  'ln1_b': n(ks[1], (1, H)),
            'w_qkv': n(ks[2], (H, 3 * H)),    'b_qkv': n(ks[3], (1, 3 * H)),
            'w_proj': n(ks[4], (H, H)),       'b_proj': n(ks[5], (1, H)),
            'ln2_g': 1.0 + n(ks[6], (1, H)),  'ln2_b': n(ks[7], (1, H)),
            'w_fc': n(ks[8], (H, MLP_D)),     'b_fc': n(ks[9], (1, MLP_D)),
            'w_fp': n(ks[10], (MLP_D, H)),    'b_fp': n(ks[11], (1, H)),
        })
    key, k1, k2, k3 = jax.random.split(key, 4)
    ln_f_g = 1.0 + n(k1, (1, H))
    ln_f_b = n(k2, (1, H))
    w_lm = n(k3, (H, V))    # lm_head weight pre-transposed to [hidden, vocab]
    return blocks, ln_f_g, ln_f_b, w_lm, key


if __name__ == "__main__":
    key = jax.random.PRNGKey(0)
    blocks, ln_f_g, ln_f_b, w_lm, key = make_params(key)
    x = jax.random.normal(key, (B, S, H), jnp.float32)

    packed = pack_params(blocks)
    logits = cloze_tail_forward(x, packed, ln_f_g, ln_f_b, w_lm)
    jax.block_until_ready(logits)

    ref = _ref_forward(x, blocks, ln_f_g, ln_f_b, w_lm)
    assert logits.shape == (B, S, V)
    max_err = jnp.max(jnp.abs(logits - ref))
    assert jnp.allclose(logits, ref, atol=2e-3, rtol=2e-3), (
        f"mismatch vs reference (max abs err {max_err:.3e})")

    print("KERNEL_OK")
</pallas_src>

<mosaic_0001>
module attributes {stable_mosaic.version = 11 : i64} {
  func.func @cloze_tail_kernel(%arg0: i32, %arg1: memref<1x8x32xf32, #tpu.memory_space<vmem>>, %arg2: memref<2x1x32xf32, #tpu.memory_space<vmem>>, %arg3: memref<2x1x32xf32, #tpu.memory_space<vmem>>, %arg4: memref<2x4x32x8xf32, #tpu.memory_space<vmem>>, %arg5: memref<2x4x1x8xf32, #tpu.memory_space<vmem>>, %arg6: memref<2x4x32x8xf32, #tpu.memory_space<vmem>>, %arg7: memref<2x4x1x8xf32, #tpu.memory_space<vmem>>, %arg8: memref<2x4x32x8xf32, #tpu.memory_space<vmem>>, %arg9: memref<2x4x1x8xf32, #tpu.memory_space<vmem>>, %arg10: memref<2x4x8x32xf32, #tpu.memory_space<vmem>>, %arg11: memref<2x1x32xf32, #tpu.memory_space<vmem>>, %arg12: memref<2x1x32xf32, #tpu.memory_space<vmem>>, %arg13: memref<2x1x32xf32, #tpu.memory_space<vmem>>, %arg14: memref<2x32x128xf32, #tpu.memory_space<vmem>>, %arg15: memref<2x1x128xf32, #tpu.memory_space<vmem>>, %arg16: memref<2x128x32xf32, #tpu.memory_space<vmem>>, %arg17: memref<2x1x32xf32, #tpu.memory_space<vmem>>, %arg18: memref<1x32xf32, #tpu.memory_space<vmem>>, %arg19: memref<1x32xf32, #tpu.memory_space<vmem>>, %arg20: memref<32x128xf32, #tpu.memory_space<vmem>>, %arg21: memref<1x8x128xf32, #tpu.memory_space<vmem>>) attributes {dimension_semantics = [#tpu.dimension_semantics<parallel>], iteration_bounds = array<i64: 2>, scalar_prefetch = 0 : i64, scratch_operands = 0 : i64, tpu.core_type = #tpu.core_type<tc>, window_params = [{transform_indices = @transform_0, window_bounds = array<i64: 1, 8, 32>}, {pipeline_mode = #tpu.pipeline_mode<synchronous>, transform_indices = @transform_1, window_bounds = array<i64: 2, 1, 32>}, {pipeline_mode = #tpu.pipeline_mode<synchronous>, transform_indices = @transform_2, window_bounds = array<i64: 2, 1, 32>}, {pipeline_mode = #tpu.pipeline_mode<synchronous>, transform_indices = @transform_3, window_bounds = array<i64: 2, 4, 32, 8>}, {pipeline_mode = #tpu.pipeline_mode<synchronous>, transform_indices = @transform_4, window_bounds = array<i64: 2, 4, 1, 8>}, {pipeline_mode = #tpu.pipeline_mode<synchronous>, transform_indices = @transform_5, window_bounds = array<i64: 2, 4, 32, 8>}, {pipeline_mode = #tpu.pipeline_mode<synchronous>, transform_indices = @transform_6, window_bounds = array<i64: 2, 4, 1, 8>}, {pipeline_mode = #tpu.pipeline_mode<synchronous>, transform_indices = @transform_7, window_bounds = array<i64: 2, 4, 32, 8>}, {pipeline_mode = #tpu.pipeline_mode<synchronous>, transform_indices = @transform_8, window_bounds = array<i64: 2, 4, 1, 8>}, {pipeline_mode = #tpu.pipeline_mode<synchronous>, transform_indices = @transform_9, window_bounds = array<i64: 2, 4, 8, 32>}, {pipeline_mode = #tpu.pipeline_mode<synchronous>, transform_indices = @transform_10, window_bounds = array<i64: 2, 1, 32>}, {pipeline_mode = #tpu.pipeline_mode<synchronous>, transform_indices = @transform_11, window_bounds = array<i64: 2, 1, 32>}, {pipeline_mode = #tpu.pipeline_mode<synchronous>, transform_indices = @transform_12, window_bounds = array<i64: 2, 1, 32>}, {pipeline_mode = #tpu.pipeline_mode<synchronous>, transform_indices = @transform_13, window_bounds = array<i64: 2, 32, 128>}, {pipeline_mode = #tpu.pipeline_mode<synchronous>, transform_indices = @transform_14, window_bounds = array<i64: 2, 1, 128>}, {pipeline_mode = #tpu.pipeline_mode<synchronous>, transform_indices = @transform_15, window_bounds = array<i64: 2, 128, 32>}, {pipeline_mode = #tpu.pipeline_mode<synchronous>, transform_indices = @transform_16, window_bounds = array<i64: 2, 1, 32>}, {pipeline_mode = #tpu.pipeline_mode<synchronous>, transform_indices = @transform_17, window_bounds = array<i64: 1, 32>}, {pipeline_mode = #tpu.pipeline_mode<synchronous>, transform_indices = @transform_18, window_bounds = array<i64: 1, 32>}, {pipeline_mode = #tpu.pipeline_mode<synchronous>, transform_indices = @transform_19, window_bounds = array<i64: 32, 128>}, {transform_indices = @transform_20, window_bounds = array<i64: 1, 8, 128>}]} {
    %c0 = arith.constant 0 : index
    %c0_0 = arith.constant 0 : index
    %c0_1 = arith.constant 0 : index
    %0 = vector.load %arg1[%c0, %c0_0, %c0_1] : memref<1x8x32xf32, #tpu.memory_space<vmem>>, vector<1x8x32xf32>
    %1 = vector.shape_cast %0 : vector<1x8x32xf32> to vector<8x32xf32>
    %2 = tpu.iota {dimensions = array<i32: 0>} : vector<8x8xi32>
    %3 = tpu.iota {dimensions = array<i32: 1>} : vector<8x8xi32>
    %4 = arith.cmpi sle, %3, %2 : vector<8x8xi32>
    %cst = arith.constant 0.000000e+00 : f32
    %cst_2 = arith.constant -1.000000e+09 : f32
    %5 = vector.broadcast %cst : f32 to vector<8x8xf32>
    %6 = vector.broadcast %cst_2 : f32 to vector<8x8xf32>
    %7 = arith.select %4, %5, %6 : vector<8x8xi1>, vector<8x8xf32>
    %c0_3 = arith.constant 0 : index
    %c0_4 = arith.constant 0 : index
    %c0_5 = arith.constant 0 : index
    %8 = vector.load %arg2[%c0_3, %c0_4, %c0_5] : memref<2x1x32xf32, #tpu.memory_space<vmem>>, vector<1x1x32xf32>
    %9 = vector.shape_cast %8 : vector<1x1x32xf32> to vector<1x32xf32>
    %c0_6 = arith.constant 0 : index
    %c0_7 = arith.constant 0 : index
    %c0_8 = arith.constant 0 : index
    %10 = vector.load %arg3[%c0_6, %c0_7, %c0_8] : memref<2x1x32xf32, #tpu.memory_space<vmem>>, vector<1x1x32xf32>
    %11 = vector.shape_cast %10 : vector<1x1x32xf32> to vector<1x32xf32>
    %cst_9 = arith.constant dense<0.000000e+00> : vector<8xf32>
    %12 = vector.multi_reduction <add>, %1, %cst_9 [1] : vector<8x32xf32> to vector<8xf32>
    %13 = vector.shape_cast %12 : vector<8xf32> to vector<8x1xf32>
    %cst_10 = arith.constant 3.200000e+01 : f32
    %14 = vector.broadcast %cst_10 : f32 to vector<8x1xf32>
    %15 = arith.divf %13, %14 : vector<8x1xf32>
    %16 = vector.broadcast %15 : vector<8x1xf32> to vector<8x32xf32>
    %17 = arith.subf %1, %16 : vector<8x32xf32>
    %18 = arith.mulf %17, %17 : vector<8x32xf32>
    %cst_11 = arith.constant dense<0.000000e+00> : vector<8xf32>
    %19 = vector.multi_reduction <add>, %18, %cst_11 [1] : vector<8x32xf32> to vector<8xf32>
    %20 = vector.shape_cast %19 : vector<8xf32> to vector<8x1xf32>
    %cst_12 = arith.constant 3.200000e+01 : f32
    %21 = vector.broadcast %cst_12 : f32 to vector<8x1xf32>
    %22 = arith.divf %20, %21 : vector<8x1xf32>
    %23 = vector.broadcast %15 : vector<8x1xf32> to vector<8x32xf32>
    %24 = arith.subf %1, %23 : vector<8x32xf32>
    %cst_13 = arith.constant 9.99999974E-6 : f32
    %25 = vector.broadcast %cst_13 : f32 to vector<8x1xf32>
    %26 = arith.addf %22, %25 : vector<8x1xf32>
    %27 = math.rsqrt %26 : vector<8x1xf32>
    %28 = vector.broadcast %27 : vector<8x1xf32> to vector<8x32xf32>
    %29 = arith.mulf %24, %28 : vector<8x32xf32>
    %30 = vector.broadcast %9 : vector<1x32xf32> to vector<8x32xf32>
    %31 = arith.mulf %29, %30 : vector<8x32xf32>
    %32 = vector.broadcast %11 : vector<1x32xf32> to vector<8x32xf32>
    %33 = arith.addf %31, %32 : vector<8x32xf32>
    %cst_14 = arith.constant 0.000000e+00 : f32
    %34 = vector.broadcast %cst_14 : f32 to vector<8x32xf32>
    %c0_15 = arith.constant 0 : index
    %c0_16 = arith.constant 0 : index
    %c0_17 = arith.constant 0 : index
    %c0_18 = arith.constant 0 : index
    %35 = vector.load %arg4[%c0_15, %c0_16, %c0_17, %c0_18] : memref<2x4x32x8xf32, #tpu.memory_space<vmem>>, vector<1x1x32x8xf32>
    %36 = vector.shape_cast %35 : vector<1x1x32x8xf32> to vector<32x8xf32>
    %cst_19 = arith.constant dense<0.000000e+00> : vector<8x8xf32>
    %37 = tpu.matmul %33, %36, %cst_19 {dimension_numbers = #tpu.dot_dimension_numbers<[1], [0], [0], [1], [0, 0, 1, 1], [], []>} : vector<8x32xf32>, vector<32x8xf32>, vector<8x8xf32> -> vector<8x8xf32>
    %c0_20 = arith.constant 0 : index
    %c0_21 = arith.constant 0 : index
    %c0_22 = arith.constant 0 : index
    %c0_23 = arith.constant 0 : index
    %38 = vector.load %arg5[%c0_20, %c0_21, %c0_22, %c0_23] : memref<2x4x1x8xf32, #tpu.memory_space<vmem>>, vector<1x1x1x8xf32>
    %39 = vector.shape_cast %38 : vector<1x1x1x8xf32> to vector<1x8xf32>
    %40 = vector.broadcast %39 : vector<1x8xf32> to vector<8x8xf32>
    %41 = arith.addf %37, %40 : vector<8x8xf32>
    %cst_24 = arith.constant 0.353553385 : f32
    %42 = vector.broadcast %cst_24 : f32 to vector<8x8xf32>
    %43 = arith.mulf %41, %42 : vector<8x8xf32>
    %c0_25 = arith.constant 0 : index
    %c0_26 = arith.constant 0 : index
    %c0_27 = arith.constant 0 : index
    %c0_28 = arith.constant 0 : index
    %44 = vector.load %arg6[%c0_25, %c0_26, %c0_27, %c0_28] : memref<2x4x32x8xf32, #tpu.memory_space<vmem>>, vector<1x1x32x8xf32>
    %45 = vector.shape_cast %44 : vector<1x1x32x8xf32> to vector<32x8xf32>
    %cst_29 = arith.constant dense<0.000000e+00> : vector<8x8xf32>
    %46 = tpu.matmul %33, %45, %cst_29 {dimension_numbers = #tpu.dot_dimension_numbers<[1], [0], [0], [1], [0, 0, 1, 1], [], []>} : vector<8x32xf32>, vector<32x8xf32>, vector<8x8xf32> -> vector<8x8xf32>
    %c0_30 = arith.constant 0 : index
    %c0_31 = arith.constant 0 : index
    %c0_32 = arith.constant 0 : index
    %c0_33 = arith.constant 0 : index
    %47 = vector.load %arg7[%c0_30, %c0_31, %c0_32, %c0_33] : memref<2x4x1x8xf32, #tpu.memory_space<vmem>>, vector<1x1x1x8xf32>
    %48 = vector.shape_cast %47 : vector<1x1x1x8xf32> to vector<1x8xf32>
    %49 = vector.broadcast %48 : vector<1x8xf32> to vector<8x8xf32>
    %50 = arith.addf %46, %49 : vector<8x8xf32>
    %c0_34 = arith.constant 0 : index
    %c0_35 = arith.constant 0 : index
    %c0_36 = arith.constant 0 : index
    %c0_37 = arith.constant 0 : index
    %51 = vector.load %arg8[%c0_34, %c0_35, %c0_36, %c0_37] : memref<2x4x32x8xf32, #tpu.memory_space<vmem>>, vector<1x1x32x8xf32>
    %52 = vector.shape_cast %51 : vector<1x1x32x8xf32> to vector<32x8xf32>
    %cst_38 = arith.constant dense<0.000000e+00> : vector<8x8xf32>
    %53 = tpu.matmul %33, %52, %cst_38 {dimension_numbers = #tpu.dot_dimension_numbers<[1], [0], [0], [1], [0, 0, 1, 1], [], []>} : vector<8x32xf32>, vector<32x8xf32>, vector<8x8xf32> -> vector<8x8xf32>
    %c0_39 = arith.constant 0 : index
    %c0_40 = arith.constant 0 : index
    %c0_41 = arith.constant 0 : index
    %c0_42 = arith.constant 0 : index
    %54 = vector.load %arg9[%c0_39, %c0_40, %c0_41, %c0_42] : memref<2x4x1x8xf32, #tpu.memory_space<vmem>>, vector<1x1x1x8xf32>
    %55 = vector.shape_cast %54 : vector<1x1x1x8xf32> to vector<1x8xf32>
    %56 = vector.broadcast %55 : vector<1x8xf32> to vector<8x8xf32>
    %57 = arith.addf %53, %56 : vector<8x8xf32>
    "tpu.trace_start"() <{level = 10 : i32, message = "qd,kd->qk"}> : () -> ()
    %cst_43 = arith.constant dense<0.000000e+00> : vector<8x8xf32>
    %58 = tpu.matmul %43, %50, %cst_43 {dimension_numbers = #tpu.dot_dimension_numbers<[1], [1], [0], [0], [0, 0, 1, 0], [], []>} : vector<8x8xf32>, vector<8x8xf32>, vector<8x8xf32> -> vector<8x8xf32>
    "tpu.trace_stop"() : () -> ()
    %59 = arith.addf %58, %7 : vector<8x8xf32>
    %cst_44 = arith.constant dense<0xFF800000> : vector<8xf32>
    %60 = vector.multi_reduction <maximumf>, %59, %cst_44 [1] : vector<8x8xf32> to vector<8xf32>
    %61 = vector.shape_cast %60 : vector<8xf32> to vector<8x1xf32>
    %62 = vector.broadcast %61 : vector<8x1xf32> to vector<8x8xf32>
    %63 = arith.subf %59, %62 : vector<8x8xf32>
    %64 = math.exp %63 : vector<8x8xf32>
    %cst_45 = arith.constant dense<0.000000e+00> : vector<8xf32>
    %65 = vector.multi_reduction <add>, %64, %cst_45 [1] : vector<8x8xf32> to vector<8xf32>
    %66 = vector.shape_cast %65 : vector<8xf32> to vector<8x1xf32>
    %67 = tpu.reciprocal %66 {approx = true} : vector<8x1xf32> -> vector<8x1xf32>
    %68 = vector.broadcast %67 : vector<8x1xf32> to vector<8x8xf32>
    %69 = arith.mulf %64, %68 : vector<8x8xf32>
    %cst_46 = arith.constant dense<0.000000e+00> : vector<8x8xf32>
    %70 = tpu.matmul %69, %57, %cst_46 {dimension_numbers = #tpu.dot_dimension_numbers<[1], [0], [0], [1], [0, 0, 1, 1], [], []>} : vector<8x8xf32>, vector<8x8xf32>, vector<8x8xf32> -> vector<8x8xf32>
    %c0_47 = arith.constant 0 : index
    %c0_48 = arith.constant 0 : index
    %c0_49 = arith.constant 0 : index
    %c0_50 = arith.constant 0 : index
    %71 = vector.load %arg10[%c0_47, %c0_48, %c0_49, %c0_50] : memref<2x4x8x32xf32, #tpu.memory_space<vmem>>, vector<1x1x8x32xf32>
    %72 = vector.shape_cast %71 : vector<1x1x8x32xf32> to vector<8x32xf32>
    %cst_51 = arith.constant dense<0.000000e+00> : vector<8x32xf32>
    %73 = tpu.matmul %70, %72, %cst_51 {dimension_numbers = #tpu.dot_dimension_numbers<[1], [0], [0], [1], [0, 0, 1, 1], [], []>} : vector<8x8xf32>, vector<8x32xf32>, vector<8x32xf32> -> vector<8x32xf32>
    %74 = arith.addf %34, %73 : vector<8x32xf32>
    %c0_52 = arith.constant 0 : index
    %c1 = arith.constant 1 : index
    %c0_53 = arith.constant 0 : index
    %c0_54 = arith.constant 0 : index
    %75 = vector.load %arg4[%c0_52, %c1, %c0_53, %c0_54] : memref<2x4x32x8xf32, #tpu.memory_space<vmem>>, vector<1x1x32x8xf32>
    %76 = vector.shape_cast %75 : vector<1x1x32x8xf32> to vector<32x8xf32>
    %cst_55 = arith.constant dense<0.000000e+00> : vector<8x8xf32>
    %77 = tpu.matmul %33, %76, %cst_55 {dimension_numbers = #tpu.dot_dimension_numbers<[1], [0], [0], [1], [0, 0, 1, 1], [], []>} : vector<8x32xf32>, vector<32x8xf32>, vector<8x8xf32> -> vector<8x8xf32>
    %c0_56 = arith.constant 0 : index
    %c1_57 = arith.constant 1 : index
    %c0_58 = arith.constant 0 : index
    %c0_59 = arith.constant 0 : index
    %78 = vector.load %arg5[%c0_56, %c1_57, %c0_58, %c0_59] : memref<2x4x1x8xf32, #tpu.memory_space<vmem>>, vector<1x1x1x8xf32>
    %79 = vector.shape_cast %78 : vector<1x1x1x8xf32> to vector<1x8xf32>
    %80 = vector.broadcast %79 : vector<1x8xf32> to vector<8x8xf32>
    %81 = arith.addf %77, %80 : vector<8x8xf32>
    %cst_60 = arith.constant 0.353553385 : f32
    %82 = vector.broadcast %cst_60 : f32 to vector<8x8xf32>
    %83 = arith.mulf %81, %82 : vector<8x8xf32>
    %c0_61 = arith.constant 0 : index
    %c1_62 = arith.constant 1 : index
    %c0_63 = arith.constant 0 : index
    %c0_64 = arith.constant 0 : index
    %84 = vector.load %arg6[%c0_61, %c1_62, %c0_63, %c0_64] : memref<2x4x32x8xf32, #tpu.memory_space<vmem>>, vector<1x1x32x8xf32>
    %85 = vector.shape_cast %84 : vector<1x1x32x8xf32> to vector<32x8xf32>
    %cst_65 = arith.constant dense<0.000000e+00> : vector<8x8xf32>
    %86 = tpu.matmul %33, %85, %cst_65 {dimension_numbers = #tpu.dot_dimension_numbers<[1], [0], [0], [1], [0, 0, 1, 1], [], []>} : vector<8x32xf32>, vector<32x8xf32>, vector<8x8xf32> -> vector<8x8xf32>
    %c0_66 = arith.constant 0 : index
    %c1_67 = arith.constant 1 : index
    %c0_68 = arith.constant 0 : index
    %c0_69 = arith.constant 0 : index
    %87 = vector.load %arg7[%c0_66, %c1_67, %c0_68, %c0_69] : memref<2x4x1x8xf32, #tpu.memory_space<vmem>>, vector<1x1x1x8xf32>
    %88 = vector.shape_cast %87 : vector<1x1x1x8xf32> to vector<1x8xf32>
    %89 = vector.broadcast %88 : vector<1x8xf32> to vector<8x8xf32>
    %90 = arith.addf %86, %89 : vector<8x8xf32>
    %c0_70 = arith.constant 0 : index
    %c1_71 = arith.constant 1 : index
    %c0_72 = arith.constant 0 : index
    %c0_73 = arith.constant 0 : index
    %91 = vector.load %arg8[%c0_70, %c1_71, %c0_72, %c0_73] : memref<2x4x32x8xf32, #tpu.memory_space<vmem>>, vector<1x1x32x8xf32>
    %92 = vector.shape_cast %91 : vector<1x1x32x8xf32> to vector<32x8xf32>
    %cst_74 = arith.constant dense<0.000000e+00> : vector<8x8xf32>
    %93 = tpu.matmul %33, %92, %cst_74 {dimension_numbers = #tpu.dot_dimension_numbers<[1], [0], [0], [1], [0, 0, 1, 1], [], []>} : vector<8x32xf32>, vector<32x8xf32>, vector<8x8xf32> -> vector<8x8xf32>
    %c0_75 = arith.constant 0 : index
    %c1_76 = arith.constant 1 : index
    %c0_77 = arith.constant 0 : index
    %c0_78 = arith.constant 0 : index
    %94 = vector.load %arg9[%c0_75, %c1_76, %c0_77, %c0_78] : memref<2x4x1x8xf32, #tpu.memory_space<vmem>>, vector<1x1x1x8xf32>
    %95 = vector.shape_cast %94 : vector<1x1x1x8xf32> to vector<1x8xf32>
    %96 = vector.broadcast %95 : vector<1x8xf32> to vector<8x8xf32>
    %97 = arith.addf %93, %96 : vector<8x8xf32>
    "tpu.trace_start"() <{level = 10 : i32, message = "qd,kd->qk"}> : () -> ()
    %cst_79 = arith.constant dense<0.000000e+00> : vector<8x8xf32>
    %98 = tpu.matmul %83, %90, %cst_79 {dimension_numbers = #tpu.dot_dimension_numbers<[1], [1], [0], [0], [0, 0, 1, 0], [], []>} : vector<8x8xf32>, vector<8x8xf32>, vector<8x8xf32> -> vector<8x8xf32>
    "tpu.trace_stop"() : () -> ()
    %99 = arith.addf %98, %7 : vector<8x8xf32>
    %cst_80 = arith.constant dense<0xFF800000> : vector<8xf32>
    %100 = vector.multi_reduction <maximumf>, %99, %cst_80 [1] : vector<8x8xf32> to vector<8xf32>
    %101 = vector.shape_cast %100 : vector<8xf32> to vector<8x1xf32>
    %102 = vector.broadcast %101 : vector<8x1xf32> to vector<8x8xf32>
    %103 = arith.subf %99, %102 : vector<8x8xf32>
    %104 = math.exp %103 : vector<8x8xf32>
    %cst_81 = arith.constant dense<0.000000e+00> : vector<8xf32>
    %105 = vector.multi_reduction <add>, %104, %cst_81 [1] : vector<8x8xf32> to vector<8xf32>
    %106 = vector.shape_cast %105 : vector<8xf32> to vector<8x1xf32>
    %107 = tpu.reciprocal %106 {approx = true} : vector<8x1xf32> -> vector<8x1xf32>
    %108 = vector.broadcast %107 : vector<8x1xf32> to vector<8x8xf32>
    %109 = arith.mulf %104, %108 : vector<8x8xf32>
    %cst_82 = arith.constant dense<0.000000e+00> : vector<8x8xf32>
    %110 = tpu.matmul %109, %97, %cst_82 {dimension_numbers = #tpu.dot_dimension_numbers<[1], [0], [0], [1], [0, 0, 1, 1], [], []>} : vector<8x8xf32>, vector<8x8xf32>, vector<8x8xf32> -> vector<8x8xf32>
    %c0_83 = arith.constant 0 : index
    %c1_84 = arith.constant 1 : index
    %c0_85 = arith.constant 0 : index
    %c0_86 = arith.constant 0 : index
    %111 = vector.load %arg10[%c0_83, %c1_84, %c0_85, %c0_86] : memref<2x4x8x32xf32, #tpu.memory_space<vmem>>, vector<1x1x8x32xf32>
    %112 = vector.shape_cast %111 : vector<1x1x8x32xf32> to vector<8x32xf32>
    %cst_87 = arith.constant dense<0.000000e+00> : vector<8x32xf32>
    %113 = tpu.matmul %110, %112, %cst_87 {dimension_numbers = #tpu.dot_dimension_numbers<[1], [0], [0], [1], [0, 0, 1, 1], [], []>} : vector<8x8xf32>, vector<8x32xf32>, vector<8x32xf32> -> vector<8x32xf32>
    %114 = arith.addf %74, %113 : vector<8x32xf32>
    %c0_88 = arith.constant 0 : index
    %c2 = arith.constant 2 : index
    %c0_89 = arith.constant 0 : index
    %c0_90 = arith.constant 0 : index
    %115 = vector.load %arg4[%c0_88, %c2, %c0_89, %c0_90] : memref<2x4x32x8xf32, #tpu.memory_space<vmem>>, vector<1x1x32x8xf32>
    %116 = vector.shape_cast %115 : vector<1x1x32x8xf32> to vector<32x8xf32>
    %cst_91 = arith.constant dense<0.000000e+00> : vector<8x8xf32>
    %117 = tpu.matmul %33, %116, %cst_91 {dimension_numbers = #tpu.dot_dimension_numbers<[1], [0], [0], [1], [0, 0, 1, 1], [], []>} : vector<8x32xf32>, vector<32x8xf32>, vector<8x8xf32> -> vector<8x8xf32>
    %c0_92 = arith.constant 0 : index
    %c2_93 = arith.constant 2 : index
    %c0_94 = arith.constant 0 : index
    %c0_95 = arith.constant 0 : index
    %118 = vector.load %arg5[%c0_92, %c2_93, %c0_94, %c0_95] : memref<2x4x1x8xf32, #tpu.memory_space<vmem>>, vector<1x1x1x8xf32>
    %119 = vector.shape_cast %118 : vector<1x1x1x8xf32> to vector<1x8xf32>
    %120 = vector.broadcast %119 : vector<1x8xf32> to vector<8x8xf32>
    %121 = arith.addf %117, %120 : vector<8x8xf32>
    %cst_96 = arith.constant 0.353553385 : f32
    %122 = vector.broadcast %cst_96 : f32 to vector<8x8xf32>
    %123 = arith.mulf %121, %122 : vector<8x8xf32>
    %c0_97 = arith.constant 0 : index
    %c2_98 = arith.constant 2 : index
    %c0_99 = arith.constant 0 : index
    %c0_100 = arith.constant 0 : index
    %124 = vector.load %arg6[%c0_97, %c2_98, %c0_99, %c0_100] : memref<2x4x32x8xf32, #tpu.memory_space<vmem>>, vector<1x1x32x8xf32>
    %125 = vector.shape_cast %124 : vector<1x1x32x8xf32> to vector<32x8xf32>
    %cst_101 = arith.constant dense<0.000000e+00> : vector<8x8xf32>
    %126 = tpu.matmul %33, %125, %cst_101 {dimension_numbers = #tpu.dot_dimension_numbers<[1], [0], [0], [1], [0, 0, 1, 1], [], []>} : vector<8x32xf32>, vector<32x8xf32>, vector<8x8xf32> -> vector<8x8xf32>
    %c0_102 = arith.constant 0 : index
    %c2_103 = arith.constant 2 : index
    %c0_104 = arith.constant 0 : index
    %c0_105 = arith.constant 0 : index
    %127 = vector.load %arg7[%c0_102, %c2_103, %c0_104, %c0_105] : memref<2x4x1x8xf32, #tpu.memory_space<vmem>>, vector<1x1x1x8xf32>
    %128 = vector.shape_cast %127 : vector<1x1x1x8xf32> to vector<1x8xf32>
    %129 = vector.broadcast %128 : vector<1x8xf32> to vector<8x8xf32>
    %130 = arith.addf %126, %129 : vector<8x8xf32>
    %c0_106 = arith.constant 0 : index
    %c2_107 = arith.constant 2 : index
    %c0_108 = arith.constant 0 : index
    %c0_109 = arith.constant 0 : index
    %131 = vector.load %arg8[%c0_106, %c2_107, %c0_108, %c0_109] : memref<2x4x32x8xf32, #tpu.memory_space<vmem>>, vector<1x1x32x8xf32>
    %132 = vector.shape_cast %131 : vector<1x1x32x8xf32> to vector<32x8xf32>
    %cst_110 = arith.constant dense<0.000000e+00> : vector<8x8xf32>
    %133 = tpu.matmul %33, %132, %cst_110 {dimension_numbers = #tpu.dot_dimension_numbers<[1], [0], [0], [1], [0, 0, 1, 1], [], []>} : vector<8x32xf32>, vector<32x8xf32>, vector<8x8xf32> -> vector<8x8xf32>
    %c0_111 = arith.constant 0 : index
    %c2_112 = arith.constant 2 : index
    %c0_113 = arith.constant 0 : index
    %c0_114 = arith.constant 0 : index
    %134 = vector.load %arg9[%c0_111, %c2_112, %c0_113, %c0_114] : memref<2x4x1x8xf32, #tpu.memory_space<vmem>>, vector<1x1x1x8xf32>
    %135 = vector.shape_cast %134 : vector<1x1x1x8xf32> to vector<1x8xf32>
    %136 = vector.broadcast %135 : vector<1x8xf32> to vector<8x8xf32>
    %137 = arith.addf %133, %136 : vector<8x8xf32>
    "tpu.trace_start"() <{level = 10 : i32, message = "qd,kd->qk"}> : () -> ()
    %cst_115 = arith.constant dense<0.000000e+00> : vector<8x8xf32>
    %138 = tpu.matmul %123, %130, %cst_115 {dimension_numbers = #tpu.dot_dimension_numbers<[1], [1], [0], [0], [0, 0, 1, 0], [], []>} : vector<8x8xf32>, vector<8x8xf32>, vector<8x8xf32> -> vector<8x8xf32>
    "tpu.trace_stop"() : () -> ()
    %139 = arith.addf %138, %7 : vector<8x8xf32>
    %cst_116 = arith.constant dense<0xFF800000> : vector<8xf32>
    %140 = vector.multi_reduction <maximumf>, %139, %cst_116 [1] : vector<8x8xf32> to vector<8xf32>
    %141 = vector.shape_cast %140 : vector<8xf32> to vector<8x1xf32>
    %142 = vector.broadcast %141 : vector<8x1xf32> to vector<8x8xf32>
    %143 = arith.subf %139, %142 : vector<8x8xf32>
    %144 = math.exp %143 : vector<8x8xf32>
    %cst_117 = arith.constant dense<0.000000e+00> : vector<8xf32>
    %145 = vector.multi_reduction <add>, %144, %cst_117 [1] : vector<8x8xf32> to vector<8xf32>
    %146 = vector.shape_cast %145 : vector<8xf32> to vector<8x1xf32>
    %147 = tpu.reciprocal %146 {approx = true} : vector<8x1xf32> -> vector<8x1xf32>
    %148 = vector.broadcast %147 : vector<8x1xf32> to vector<8x8xf32>
    %149 = arith.mulf %144, %148 : vector<8x8xf32>
    %cst_118 = arith.constant dense<0.000000e+00> : vector<8x8xf32>
    %150 = tpu.matmul %149, %137, %cst_118 {dimension_numbers = #tpu.dot_dimension_numbers<[1], [0], [0], [1], [0, 0, 1, 1], [], []>} : vector<8x8xf32>, vector<8x8xf32>, vector<8x8xf32> -> vector<8x8xf32>
    %c0_119 = arith.constant 0 : index
    %c2_120 = arith.constant 2 : index
    %c0_121 = arith.constant 0 : index
    %c0_122 = arith.constant 0 : index
    %151 = vector.load %arg10[%c0_119, %c2_120, %c0_121, %c0_122] : memref<2x4x8x32xf32, #tpu.memory_space<vmem>>, vector<1x1x8x32xf32>
    %152 = vector.shape_cast %151 : vector<1x1x8x32xf32> to vector<8x32xf32>
    %cst_123 = arith.constant dense<0.000000e+00> : vector<8x32xf32>
    %153 = tpu.matmul %150, %152, %cst_123 {dimension_numbers = #tpu.dot_dimension_numbers<[1], [0], [0], [1], [0, 0, 1, 1], [], []>} : vector<8x8xf32>, vector<8x32xf32>, vector<8x32xf32> -> vector<8x32xf32>
    %154 = arith.addf %114, %153 : vector<8x32xf32>
    %c0_124 = arith.constant 0 : index
    %c3 = arith.constant 3 : index
    %c0_125 = arith.constant 0 : index
    %c0_126 = arith.constant 0 : index
    %155 = vector.load %arg4[%c0_124, %c3, %c0_125, %c0_126] : memref<2x4x32x8xf32, #tpu.memory_space<vmem>>, vector<1x1x32x8xf32>
    %156 = vector.shape_cast %155 : vector<1x1x32x8xf32> to vector<32x8xf32>
    %cst_127 = arith.constant dense<0.000000e+00> : vector<8x8xf32>
    %157 = tpu.matmul %33, %156, %cst_127 {dimension_numbers = #tpu.dot_dimension_numbers<[1], [0], [0], [1], [0, 0, 1, 1], [], []>} : vector<8x32xf32>, vector<32x8xf32>, vector<8x8xf32> -> vector<8x8xf32>
    %c0_128 = arith.constant 0 : index
    %c3_129 = arith.constant 3 : index
    %c0_130 = arith.constant 0 : index
    %c0_131 = arith.constant 0 : index
    %158 = vector.load %arg5[%c0_128, %c3_129, %c0_130, %c0_131] : memref<2x4x1x8xf32, #tpu.memory_space<vmem>>, vector<1x1x1x8xf32>
    %159 = vector.shape_cast %158 : vector<1x1x1x8xf32> to vector<1x8xf32>
    %160 = vector.broadcast %159 : vector<1x8xf32> to vector<8x8xf32>
    %161 = arith.addf %157, %160 : vector<8x8xf32>
    %cst_132 = arith.constant 0.353553385 : f32
    %162 = vector.broadcast %cst_132 : f32 to vector<8x8xf32>
    %163 = arith.mulf %161, %162 : vector<8x8xf32>
    %c0_133 = arith.constant 0 : index
    %c3_134 = arith.constant 3 : index
    %c0_135 = arith.constant 0 : index
    %c0_136 = arith.constant 0 : index
    %164 = vector.load %arg6[%c0_133, %c3_134, %c0_135, %c0_136] : memref<2x4x32x8xf32, #tpu.memory_space<vmem>>, vector<1x1x32x8xf32>
    %165 = vector.shape_cast %164 : vector<1x1x32x8xf32> to vector<32x8xf32>
    %cst_137 = arith.constant dense<0.000000e+00> : vector<8x8xf32>
    %166 = tpu.matmul %33, %165, %cst_137 {dimension_numbers = #tpu.dot_dimension_numbers<[1], [0], [0], [1], [0, 0, 1, 1], [], []>} : vector<8x32xf32>, vector<32x8xf32>, vector<8x8xf32> -> vector<8x8xf32>
    %c0_138 = arith.constant 0 : index
    %c3_139 = arith.constant 3 : index
    %c0_140 = arith.constant 0 : index
    %c0_141 = arith.constant 0 : index
    %167 = vector.load %arg7[%c0_138, %c3_139, %c0_140, %c0_141] : memref<2x4x1x8xf32, #tpu.memory_space<vmem>>, vector<1x1x1x8xf32>
    %168 = vector.shape_cast %167 : vector<1x1x1x8xf32> to vector<1x8xf32>
    %169 = vector.broadcast %168 : vector<1x8xf32> to vector<8x8xf32>
    %170 = arith.addf %166, %169 : vector<8x8xf32>
    %c0_142 = arith.constant 0 : index
    %c3_143 = arith.constant 3 : index
    %c0_144 = arith.constant 0 : index
    %c0_145 = arith.constant 0 : index
    %171 = vector.load %arg8[%c0_142, %c3_143, %c0_144, %c0_145] : memref<2x4x32x8xf32, #tpu.memory_space<vmem>>, vector<1x1x32x8xf32>
    %172 = vector.shape_cast %171 : vector<1x1x32x8xf32> to vector<32x8xf32>
    %cst_146 = arith.constant dense<0.000000e+00> : vector<8x8xf32>
    %173 = tpu.matmul %33, %172, %cst_146 {dimension_numbers = #tpu.dot_dimension_numbers<[1], [0], [0], [1], [0, 0, 1, 1], [], []>} : vector<8x32xf32>, vector<32x8xf32>, vector<8x8xf32> -> vector<8x8xf32>
    %c0_147 = arith.constant 0 : index
    %c3_148 = arith.constant 3 : index
    %c0_149 = arith.constant 0 : index
    %c0_150 = arith.constant 0 : index
    %174 = vector.load %arg9[%c0_147, %c3_148, %c0_149, %c0_150] : memref<2x4x1x8xf32, #tpu.memory_space<vmem>>, vector<1x1x1x8xf32>
    %175 = vector.shape_cast %174 : vector<1x1x1x8xf32> to vector<1x8xf32>
    %176 = vector.broadcast %175 : vector<1x8xf32> to vector<8x8xf32>
    %177 = arith.addf %173, %176 : vector<8x8xf32>
    "tpu.trace_start"() <{level = 10 : i32, message = "qd,kd->qk"}> : () -> ()
    %cst_151 = arith.constant dense<0.000000e+00> : vector<8x8xf32>
    %178 = tpu.matmul %163, %170, %cst_151 {dimension_numbers = #tpu.dot_dimension_numbers<[1], [1], [0], [0], [0, 0, 1, 0], [], []>} : vector<8x8xf32>, vector<8x8xf32>, vector<8x8xf32> -> vector<8x8xf32>
    "tpu.trace_stop"() : () -> ()
    %179 = arith.addf %178, %7 : vector<8x8xf32>
    %cst_152 = arith.constant dense<0xFF800000> : vector<8xf32>
    %180 = vector.multi_reduction <maximumf>, %179, %cst_152 [1] : vector<8x8xf32> to vector<8xf32>
    %181 = vector.shape_cast %180 : vector<8xf32> to vector<8x1xf32>
    %182 = vector.broadcast %181 : vector<8x1xf32> to vector<8x8xf32>
    %183 = arith.subf %179, %182 : vector<8x8xf32>
    %184 = math.exp %183 : vector<8x8xf32>
    %cst_153 = arith.constant dense<0.000000e+00> : vector<8xf32>
    %185 = vector.multi_reduction <add>, %184, %cst_153 [1] : vector<8x8xf32> to vector<8xf32>
    %186 = vector.shape_cast %185 : vector<8xf32> to vector<8x1xf32>
    %187 = tpu.reciprocal %186 {approx = true} : vector<8x1xf32> -> vector<8x1xf32>
    %188 = vector.broadcast %187 : vector<8x1xf32> to vector<8x8xf32>
    %189 = arith.mulf %184, %188 : vector<8x8xf32>
    %cst_154 = arith.constant dense<0.000000e+00> : vector<8x8xf32>
    %190 = tpu.matmul %189, %177, %cst_154 {dimension_numbers = #tpu.dot_dimension_numbers<[1], [0], [0], [1], [0, 0, 1, 1], [], []>} : vector<8x8xf32>, vector<8x8xf32>, vector<8x8xf32> -> vector<8x8xf32>
    %c0_155 = arith.constant 0 : index
    %c3_156 = arith.constant 3 : index
    %c0_157 = arith.constant 0 : index
    %c0_158 = arith.constant 0 : index
    %191 = vector.load %arg10[%c0_155, %c3_156, %c0_157, %c0_158] : memref<2x4x8x32xf32, #tpu.memory_space<vmem>>, vector<1x1x8x32xf32>
    %192 = vector.shape_cast %191 : vector<1x1x8x32xf32> to vector<8x32xf32>
    %cst_159 = arith.constant dense<0.000000e+00> : vector<8x32xf32>
    %193 = tpu.matmul %190, %192, %cst_159 {dimension_numbers = #tpu.dot_dimension_numbers<[1], [0], [0], [1], [0, 0, 1, 1], [], []>} : vector<8x8xf32>, vector<8x32xf32>, vector<8x32xf32> -> vector<8x32xf32>
    %194 = arith.addf %154, %193 : vector<8x32xf32>
    %195 = arith.addf %1, %194 : vector<8x32xf32>
    %c0_160 = arith.constant 0 : index
    %c0_161 = arith.constant 0 : index
    %c0_162 = arith.constant 0 : index
    %196 = vector.load %arg11[%c0_160, %c0_161, %c0_162] : memref<2x1x32xf32, #tpu.memory_space<vmem>>, vector<1x1x32xf32>
    %197 = vector.shape_cast %196 : vector<1x1x32xf32> to vector<1x32xf32>
    %198 = vector.broadcast %197 : vector<1x32xf32> to vector<8x32xf32>
    %199 = arith.addf %195, %198 : vector<8x32xf32>
    %c0_163 = arith.constant 0 : index
    %c0_164 = arith.constant 0 : index
    %c0_165 = arith.constant 0 : index
    %200 = vector.load %arg12[%c0_163, %c0_164, %c0_165] : memref<2x1x32xf32, #tpu.memory_space<vmem>>, vector<1x1x32xf32>
    %201 = vector.shape_cast %200 : vector<1x1x32xf32> to vector<1x32xf32>
    %c0_166 = arith.constant 0 : index
    %c0_167 = arith.constant 0 : index
    %c0_168 = arith.constant 0 : index
    %202 = vector.load %arg13[%c0_166, %c0_167, %c0_168] : memref<2x1x32xf32, #tpu.memory_space<vmem>>, vector<1x1x32xf32>
    %203 = vector.shape_cast %202 : vector<1x1x32xf32> to vector<1x32xf32>
    %cst_169 = arith.constant dense<0.000000e+00> : vector<8xf32>
    %204 = vector.multi_reduction <add>, %199, %cst_169 [1] : vector<8x32xf32> to vector<8xf32>
    %205 = vector.shape_cast %204 : vector<8xf32> to vector<8x1xf32>
    %cst_170 = arith.constant 3.200000e+01 : f32
    %206 = vector.broadcast %cst_170 : f32 to vector<8x1xf32>
    %207 = arith.divf %205, %206 : vector<8x1xf32>
    %208 = vector.broadcast %207 : vector<8x1xf32> to vector<8x32xf32>
    %209 = arith.subf %199, %208 : vector<8x32xf32>
    %210 = arith.mulf %209, %209 : vector<8x32xf32>
    %cst_171 = arith.constant dense<0.000000e+00> : vector<8xf32>
    %211 = vector.multi_reduction <add>, %210, %cst_171 [1] : vector<8x32xf32> to vector<8xf32>
    %212 = vector.shape_cast %211 : vector<8xf32> to vector<8x1xf32>
    %cst_172 = arith.constant 3.200000e+01 : f32
    %213 = vector.broadcast %cst_172 : f32 to vector<8x1xf32>
    %214 = arith.divf %212, %213 : vector<8x1xf32>
    %215 = vector.broadcast %207 : vector<8x1xf32> to vector<8x32xf32>
    %216 = arith.subf %199, %215 : vector<8x32xf32>
    %cst_173 = arith.constant 9.99999974E-6 : f32
    %217 = vector.broadcast %cst_173 : f32 to vector<8x1xf32>
    %218 = arith.addf %214, %217 : vector<8x1xf32>
    %219 = math.rsqrt %218 : vector<8x1xf32>
    %220 = vector.broadcast %219 : vector<8x1xf32> to vector<8x32xf32>
    %221 = arith.mulf %216, %220 : vector<8x32xf32>
    %222 = vector.broadcast %201 : vector<1x32xf32> to vector<8x32xf32>
    %223 = arith.mulf %221, %222 : vector<8x32xf32>
    %224 = vector.broadcast %203 : vector<1x32xf32> to vector<8x32xf32>
    %225 = arith.addf %223, %224 : vector<8x32xf32>
    %c0_174 = arith.constant 0 : index
    %c0_175 = arith.constant 0 : index
    %c0_176 = arith.constant 0 : index
    %226 = vector.load %arg14[%c0_174, %c0_175, %c0_176] : memref<2x32x128xf32, #tpu.memory_space<vmem>>, vector<1x32x128xf32>
    %227 = vector.shape_cast %226 : vector<1x32x128xf32> to vector<32x128xf32>
    %cst_177 = arith.constant dense<0.000000e+00> : vector<8x128xf32>
    %228 = tpu.matmul %225, %227, %cst_177 {dimension_numbers = #tpu.dot_dimension_numbers<[1], [0], [0], [1], [0, 0, 1, 1], [], []>} : vector<8x32xf32>, vector<32x128xf32>, vector<8x128xf32> -> vector<8x128xf32>
    %c0_178 = arith.constant 0 : index
    %c0_179 = arith.constant 0 : index
    %c0_180 = arith.constant 0 : index
    %229 = vector.load %arg15[%c0_178, %c0_179, %c0_180] : memref<2x1x128xf32, #tpu.memory_space<vmem>>, vector<1x1x128xf32>
    %230 = vector.shape_cast %229 : vector<1x1x128xf32> to vector<1x128xf32>
    %231 = vector.broadcast %230 : vector<1x128xf32> to vector<8x128xf32>
    %232 = arith.addf %228, %231 : vector<8x128xf32>
    %cst_181 = arith.constant 5.000000e-01 : f32
    %233 = vector.broadcast %cst_181 : f32 to vector<8x128xf32>
    %234 = arith.mulf %233, %232 : vector<8x128xf32>
    %cst_182 = arith.constant 4.471500e-02 : f32
    %235 = vector.broadcast %cst_182 : f32 to vector<8x128xf32>
    %236 = arith.mulf %235, %232 : vector<8x128xf32>
    %237 = arith.mulf %236, %232 : vector<8x128xf32>
    %238 = arith.mulf %237, %232 : vector<8x128xf32>
    %239 = arith.addf %232, %238 : vector<8x128xf32>
    %cst_183 = arith.constant 0.797884583 : f32
    %240 = vector.broadcast %cst_183 : f32 to vector<8x128xf32>
    %241 = arith.mulf %240, %239 : vector<8x128xf32>
    %242 = math.tanh %241 : vector<8x128xf32>
    %cst_184 = arith.constant 1.000000e+00 : f32
    %243 = vector.broadcast %cst_184 : f32 to vector<8x128xf32>
    %244 = arith.addf %243, %242 : vector<8x128xf32>
    %245 = arith.mulf %234, %244 : vector<8x128xf32>
    %c0_185 = arith.constant 0 : index
    %c0_186 = arith.constant 0 : index
    %c0_187 = arith.constant 0 : index
    %246 = vector.load %arg16[%c0_185, %c0_186, %c0_187] : memref<2x128x32xf32, #tpu.memory_space<vmem>>, vector<1x128x32xf32>
    %247 = vector.shape_cast %246 : vector<1x128x32xf32> to vector<128x32xf32>
    %cst_188 = arith.constant dense<0.000000e+00> : vector<8x32xf32>
    %248 = tpu.matmul %245, %247, %cst_188 {dimension_numbers = #tpu.dot_dimension_numbers<[1], [0], [0], [1], [0, 0, 1, 1], [], []>} : vector<8x128xf32>, vector<128x32xf32>, vector<8x32xf32> -> vector<8x32xf32>
    %249 = arith.addf %199, %248 : vector<8x32xf32>
    %c0_189 = arith.constant 0 : index
    %c0_190 = arith.constant 0 : index
    %c0_191 = arith.constant 0 : index
    %250 = vector.load %arg17[%c0_189, %c0_190, %c0_191] : memref<2x1x32xf32, #tpu.memory_space<vmem>>, vector<1x1x32xf32>
    %251 = vector.shape_cast %250 : vector<1x1x32xf32> to vector<1x32xf32>
    %252 = vector.broadcast %251 : vector<1x32xf32> to vector<8x32xf32>
    %253 = arith.addf %249, %252 : vector<8x32xf32>
    %c1_192 = arith.constant 1 : index
    %c0_193 = arith.constant 0 : index
    %c0_194 = arith.constant 0 : index
    %254 = vector.load %arg2[%c1_192, %c0_193, %c0_194] : memref<2x1x32xf32, #tpu.memory_space<vmem>>, vector<1x1x32xf32>
    %255 = vector.shape_cast %254 : vector<1x1x32xf32> to vector<1x32xf32>
    %c1_195 = arith.constant 1 : index
    %c0_196 = arith.constant 0 : index
    %c0_197 = arith.constant 0 : index
    %256 = vector.load %arg3[%c1_195, %c0_196, %c0_197] : memref<2x1x32xf32, #tpu.memory_space<vmem>>, vector<1x1x32xf32>
    %257 = vector.shape_cast %256 : vector<1x1x32xf32> to vector<1x32xf32>
    %cst_198 = arith.constant dense<0.000000e+00> : vector<8xf32>
    %258 = vector.multi_reduction <add>, %253, %cst_198 [1] : vector<8x32xf32> to vector<8xf32>
    %259 = vector.shape_cast %258 : vector<8xf32> to vector<8x1xf32>
    %cst_199 = arith.constant 3.200000e+01 : f32
    %260 = vector.broadcast %cst_199 : f32 to vector<8x1xf32>
    %261 = arith.divf %259, %260 : vector<8x1xf32>
    %262 = vector.broadcast %261 : vector<8x1xf32> to vector<8x32xf32>
    %263 = arith.subf %253, %262 : vector<8x32xf32>
    %264 = arith.mulf %263, %263 : vector<8x32xf32>
    %cst_200 = arith.constant dense<0.000000e+00> : vector<8xf32>
    %265 = vector.multi_reduction <add>, %264, %cst_200 [1] : vector<8x32xf32> to vector<8xf32>
    %266 = vector.shape_cast %265 : vector<8xf32> to vector<8x1xf32>
    %cst_201 = arith.constant 3.200000e+01 : f32
    %267 = vector.broadcast %cst_201 : f32 to vector<8x1xf32>
    %268 = arith.divf %266, %267 : vector<8x1xf32>
    %269 = vector.broadcast %261 : vector<8x1xf32> to vector<8x32xf32>
    %270 = arith.subf %253, %269 : vector<8x32xf32>
    %cst_202 = arith.constant 9.99999974E-6 : f32
    %271 = vector.broadcast %cst_202 : f32 to vector<8x1xf32>
    %272 = arith.addf %268, %271 : vector<8x1xf32>
    %273 = math.rsqrt %272 : vector<8x1xf32>
    %274 = vector.broadcast %273 : vector<8x1xf32> to vector<8x32xf32>
    %275 = arith.mulf %270, %274 : vector<8x32xf32>
    %276 = vector.broadcast %255 : vector<1x32xf32> to vector<8x32xf32>
    %277 = arith.mulf %275, %276 : vector<8x32xf32>
    %278 = vector.broadcast %257 : vector<1x32xf32> to vector<8x32xf32>
    %279 = arith.addf %277, %278 : vector<8x32xf32>
    %cst_203 = arith.constant 0.000000e+00 : f32
    %280 = vector.broadcast %cst_203 : f32 to vector<8x32xf32>
    %c1_204 = arith.constant 1 : index
    %c0_205 = arith.constant 0 : index
    %c0_206 = arith.constant 0 : index
    %c0_207 = arith.constant 0 : index
    %281 = vector.load %arg4[%c1_204, %c0_205, %c0_206, %c0_207] : memref<2x4x32x8xf32, #tpu.memory_space<vmem>>, vector<1x1x32x8xf32>
    %282 = vector.shape_cast %281 : vector<1x1x32x8xf32> to vector<32x8xf32>
    %cst_208 = arith.constant dense<0.000000e+00> : vector<8x8xf32>
    %283 = tpu.matmul %279, %282, %cst_208 {dimension_numbers = #tpu.dot_dimension_numbers<[1], [0], [0], [1], [0, 0, 1, 1], [], []>} : vector<8x32xf32>, vector<32x8xf32>, vector<8x8xf32> -> vector<8x8xf32>
    %c1_209 = arith.constant 1 : index
    %c0_210 = arith.constant 0 : index
    %c0_211 = arith.constant 0 : index
    %c0_212 = arith.constant 0 : index
    %284 = vector.load %arg5[%c1_209, %c0_210, %c0_211, %c0_212] : memref<2x4x1x8xf32, #tpu.memory_space<vmem>>, vector<1x1x1x8xf32>
    %285 = vector.shape_cast %284 : vector<1x1x1x8xf32> to vector<1x8xf32>
    %286 = vector.broadcast %285 : vector<1x8xf32> to vector<8x8xf32>
    %287 = arith.addf %283, %286 : vector<8x8xf32>
    %cst_213 = arith.constant 0.353553385 : f32
    %288 = vector.broadcast %cst_213 : f32 to vector<8x8xf32>
    %289 = arith.mulf %287, %288 : vector<8x8xf32>
    %c1_214 = arith.constant 1 : index
    %c0_215 = arith.constant 0 : index
    %c0_216 = arith.constant 0 : index
    %c0_217 = arith.constant 0 : index
    %290 = vector.load %arg6[%c1_214, %c0_215, %c0_216, %c0_217] : memref<2x4x32x8xf32, #tpu.memory_space<vmem>>, vector<1x1x32x8xf32>
    %291 = vector.shape_cast %290 : vector<1x1x32x8xf32> to vector<32x8xf32>
    %cst_218 = arith.constant dense<0.000000e+00> : vector<8x8xf32>
    %292 = tpu.matmul %279, %291, %cst_218 {dimension_numbers = #tpu.dot_dimension_numbers<[1], [0], [0], [1], [0, 0, 1, 1], [], []>} : vector<8x32xf32>, vector<32x8xf32>, vector<8x8xf32> -> vector<8x8xf32>
    %c1_219 = arith.constant 1 : index
    %c0_220 = arith.constant 0 : index
    %c0_221 = arith.constant 0 : index
    %c0_222 = arith.constant 0 : index
    %293 = vector.load %arg7[%c1_219, %c0_220, %c0_221, %c0_222] : memref<2x4x1x8xf32, #tpu.memory_space<vmem>>, vector<1x1x1x8xf32>
    %294 = vector.shape_cast %293 : vector<1x1x1x8xf32> to vector<1x8xf32>
    %295 = vector.broadcast %294 : vector<1x8xf32> to vector<8x8xf32>
    %296 = arith.addf %292, %295 : vector<8x8xf32>
    %c1_223 = arith.constant 1 : index
    %c0_224 = arith.constant 0 : index
    %c0_225 = arith.constant 0 : index
    %c0_226 = arith.constant 0 : index
    %297 = vector.load %arg8[%c1_223, %c0_224, %c0_225, %c0_226] : memref<2x4x32x8xf32, #tpu.memory_space<vmem>>, vector<1x1x32x8xf32>
    %298 = vector.shape_cast %297 : vector<1x1x32x8xf32> to vector<32x8xf32>
    %cst_227 = arith.constant dense<0.000000e+00> : vector<8x8xf32>
    %299 = tpu.matmul %279, %298, %cst_227 {dimension_numbers = #tpu.dot_dimension_numbers<[1], [0], [0], [1], [0, 0, 1, 1], [], []>} : vector<8x32xf32>, vector<32x8xf32>, vector<8x8xf32> -> vector<8x8xf32>
    %c1_228 = arith.constant 1 : index
    %c0_229 = arith.constant 0 : index
    %c0_230 = arith.constant 0 : index
    %c0_231 = arith.constant 0 : index
    %300 = vector.load %arg9[%c1_228, %c0_229, %c0_230, %c0_231] : memref<2x4x1x8xf32, #tpu.memory_space<vmem>>, vector<1x1x1x8xf32>
    %301 = vector.shape_cast %300 : vector<1x1x1x8xf32> to vector<1x8xf32>
    %302 = vector.broadcast %301 : vector<1x8xf32> to vector<8x8xf32>
    %303 = arith.addf %299, %302 : vector<8x8xf32>
    "tpu.trace_start"() <{level = 10 : i32, message = "qd,kd->qk"}> : () -> ()
    %cst_232 = arith.constant dense<0.000000e+00> : vector<8x8xf32>
    %304 = tpu.matmul %289, %296, %cst_232 {dimension_numbers = #tpu.dot_dimension_numbers<[1], [1], [0], [0], [0, 0, 1, 0], [], []>} : vector<8x8xf32>, vector<8x8xf32>, vector<8x8xf32> -> vector<8x8xf32>
    "tpu.trace_stop"() : () -> ()
    %305 = arith.addf %304, %7 : vector<8x8xf32>
    %cst_233 = arith.constant dense<0xFF800000> : vector<8xf32>
    %306 = vector.multi_reduction <maximumf>, %305, %cst_233 [1] : vector<8x8xf32> to vector<8xf32>
    %307 = vector.shape_cast %306 : vector<8xf32> to vector<8x1xf32>
    %308 = vector.broadcast %307 : vector<8x1xf32> to vector<8x8xf32>
    %309 = arith.subf %305, %308 : vector<8x8xf32>
    %310 = math.exp %309 : vector<8x8xf32>
    %cst_234 = arith.constant dense<0.000000e+00> : vector<8xf32>
    %311 = vector.multi_reduction <add>, %310, %cst_234 [1] : vector<8x8xf32> to vector<8xf32>
    %312 = vector.shape_cast %311 : vector<8xf32> to vector<8x1xf32>
    %313 = tpu.reciprocal %312 {approx = true} : vector<8x1xf32> -> vector<8x1xf32>
    %314 = vector.broadcast %313 : vector<8x1xf32> to vector<8x8xf32>
    %315 = arith.mulf %310, %314 : vector<8x8xf32>
    %cst_235 = arith.constant dense<0.000000e+00> : vector<8x8xf32>
    %316 = tpu.matmul %315, %303, %cst_235 {dimension_numbers = #tpu.dot_dimension_numbers<[1], [0], [0], [1], [0, 0, 1, 1], [], []>} : vector<8x8xf32>, vector<8x8xf32>, vector<8x8xf32> -> vector<8x8xf32>
    %c1_236 = arith.constant 1 : index
    %c0_237 = arith.constant 0 : index
    %c0_238 = arith.constant 0 : index
    %c0_239 = arith.constant 0 : index
    %317 = vector.load %arg10[%c1_236, %c0_237, %c0_238, %c0_239] : memref<2x4x8x32xf32, #tpu.memory_space<vmem>>, vector<1x1x8x32xf32>
    %318 = vector.shape_cast %317 : vector<1x1x8x32xf32> to vector<8x32xf32>
    %cst_240 = arith.constant dense<0.000000e+00> : vector<8x32xf32>
    %319 = tpu.matmul %316, %318, %cst_240 {dimension_numbers = #tpu.dot_dimension_numbers<[1], [0], [0], [1], [0, 0, 1, 1], [], []>} : vector<8x8xf32>, vector<8x32xf32>, vector<8x32xf32> -> vector<8x32xf32>
    %320 = arith.addf %280, %319 : vector<8x32xf32>
    %c1_241 = arith.constant 1 : index
    %c1_242 = arith.constant 1 : index
    %c0_243 = arith.constant 0 : index
    %c0_244 = arith.constant 0 : index
    %321 = vector.load %arg4[%c1_241, %c1_242, %c0_243, %c0_244] : memref<2x4x32x8xf32, #tpu.memory_space<vmem>>, vector<1x1x32x8xf32>
    %322 = vector.shape_cast %321 : vector<1x1x32x8xf32> to vector<32x8xf32>
    %cst_245 = arith.constant dense<0.000000e+00> : vector<8x8xf32>
    %323 = tpu.matmul %279, %322, %cst_245 {dimension_numbers = #tpu.dot_dimension_numbers<[1], [0], [0], [1], [0, 0, 1, 1], [], []>} : vector<8x32xf32>, vector<32x8xf32>, vector<8x8xf32> -> vector<8x8xf32>
    %c1_246 = arith.constant 1 : index
    %c1_247 = arith.constant 1 : index
    %c0_248 = arith.constant 0 : index
    %c0_249 = arith.constant 0 : index
    %324 = vector.load %arg5[%c1_246, %c1_247, %c0_248, %c0_249] : memref<2x4x1x8xf32, #tpu.memory_space<vmem>>, vector<1x1x1x8xf32>
    %325 = vector.shape_cast %324 : vector<1x1x1x8xf32> to vector<1x8xf32>
    %326 = vector.broadcast %325 : vector<1x8xf32> to vector<8x8xf32>
    %327 = arith.addf %323, %326 : vector<8x8xf32>
    %cst_250 = arith.constant 0.353553385 : f32
    %328 = vector.broadcast %cst_250 : f32 to vector<8x8xf32>
    %329 = arith.mulf %327, %328 : vector<8x8xf32>
    %c1_251 = arith.constant 1 : index
    %c1_252 = arith.constant 1 : index
    %c0_253 = arith.constant 0 : index
    %c0_254 = arith.constant 0 : index
    %330 = vector.load %arg6[%c1_251, %c1_252, %c0_253, %c0_254] : memref<2x4x32x8xf32, #tpu.memory_space<vmem>>, vector<1x1x32x8xf32>
    %331 = vector.shape_cast %330 : vector<1x1x32x8xf32> to vector<32x8xf32>
    %cst_255 = arith.constant dense<0.000000e+00> : vector<8x8xf32>
    %332 = tpu.matmul %279, %331, %cst_255 {dimension_numbers = #tpu.dot_dimension_numbers<[1], [0], [0], [1], [0, 0, 1, 1], [], []>} : vector<8x32xf32>, vector<32x8xf32>, vector<8x8xf32> -> vector<8x8xf32>
    %c1_256 = arith.constant 1 : index
    %c1_257 = arith.constant 1 : index
    %c0_258 = arith.constant 0 : index
    %c0_259 = arith.constant 0 : index
    %333 = vector.load %arg7[%c1_256, %c1_257, %c0_258, %c0_259] : memref<2x4x1x8xf32, #tpu.memory_space<vmem>>, vector<1x1x1x8xf32>
    %334 = vector.shape_cast %333 : vector<1x1x1x8xf32> to vector<1x8xf32>
    %335 = vector.broadcast %334 : vector<1x8xf32> to vector<8x8xf32>
    %336 = arith.addf %332, %335 : vector<8x8xf32>
    %c1_260 = arith.constant 1 : index
    %c1_261 = arith.constant 1 : index
    %c0_262 = arith.constant 0 : index
    %c0_263 = arith.constant 0 : index
    %337 = vector.load %arg8[%c1_260, %c1_261, %c0_262, %c0_263] : memref<2x4x32x8xf32, #tpu.memory_space<vmem>>, vector<1x1x32x8xf32>
    %338 = vector.shape_cast %337 : vector<1x1x32x8xf32> to vector<32x8xf32>
    %cst_264 = arith.constant dense<0.000000e+00> : vector<8x8xf32>
    %339 = tpu.matmul %279, %338, %cst_264 {dimension_numbers = #tpu.dot_dimension_numbers<[1], [0], [0], [1], [0, 0, 1, 1], [], []>} : vector<8x32xf32>, vector<32x8xf32>, vector<8x8xf32> -> vector<8x8xf32>
    %c1_265 = arith.constant 1 : index
    %c1_266 = arith.constant 1 : index
    %c0_267 = arith.constant 0 : index
    %c0_268 = arith.constant 0 : index
    %340 = vector.load %arg9[%c1_265, %c1_266, %c0_267, %c0_268] : memref<2x4x1x8xf32, #tpu.memory_space<vmem>>, vector<1x1x1x8xf32>
    %341 = vector.shape_cast %340 : vector<1x1x1x8xf32> to vector<1x8xf32>
    %342 = vector.broadcast %341 : vector<1x8xf32> to vector<8x8xf32>
    %343 = arith.addf %339, %342 : vector<8x8xf32>
    "tpu.trace_start"() <{level = 10 : i32, message = "qd,kd->qk"}> : () -> ()
    %cst_269 = arith.constant dense<0.000000e+00> : vector<8x8xf32>
    %344 = tpu.matmul %329, %336, %cst_269 {dimension_numbers = #tpu.dot_dimension_numbers<[1], [1], [0], [0], [0, 0, 1, 0], [], []>} : vector<8x8xf32>, vector<8x8xf32>, vector<8x8xf32> -> vector<8x8xf32>
    "tpu.trace_stop"() : () -> ()
    %345 = arith.addf %344, %7 : vector<8x8xf32>
    %cst_270 = arith.constant dense<0xFF800000> : vector<8xf32>
    %346 = vector.multi_reduction <maximumf>, %345, %cst_270 [1] : vector<8x8xf32> to vector<8xf32>
    %347 = vector.shape_cast %346 : vector<8xf32> to vector<8x1xf32>
    %348 = vector.broadcast %347 : vector<8x1xf32> to vector<8x8xf32>
    %349 = arith.subf %345, %348 : vector<8x8xf32>
    %350 = math.exp %349 : vector<8x8xf32>
    %cst_271 = arith.constant dense<0.000000e+00> : vector<8xf32>
    %351 = vector.multi_reduction <add>, %350, %cst_271 [1] : vector<8x8xf32> to vector<8xf32>
    %352 = vector.shape_cast %351 : vector<8xf32> to vector<8x1xf32>
    %353 = tpu.reciprocal %352 {approx = true} : vector<8x1xf32> -> vector<8x1xf32>
    %354 = vector.broadcast %353 : vector<8x1xf32> to vector<8x8xf32>
    %355 = arith.mulf %350, %354 : vector<8x8xf32>
    %cst_272 = arith.constant dense<0.000000e+00> : vector<8x8xf32>
    %356 = tpu.matmul %355, %343, %cst_272 {dimension_numbers = #tpu.dot_dimension_numbers<[1], [0], [0], [1], [0, 0, 1, 1], [], []>} : vector<8x8xf32>, vector<8x8xf32>, vector<8x8xf32> -> vector<8x8xf32>
    %c1_273 = arith.constant 1 : index
    %c1_274 = arith.constant 1 : index
    %c0_275 = arith.constant 0 : index
    %c0_276 = arith.constant 0 : index
    %357 = vector.load %arg10[%c1_273, %c1_274, %c0_275, %c0_276] : memref<2x4x8x32xf32, #tpu.memory_space<vmem>>, vector<1x1x8x32xf32>
    %358 = vector.shape_cast %357 : vector<1x1x8x32xf32> to vector<8x32xf32>
    %cst_277 = arith.constant dense<0.000000e+00> : vector<8x32xf32>
    %359 = tpu.matmul %356, %358, %cst_277 {dimension_numbers = #tpu.dot_dimension_numbers<[1], [0], [0], [1], [0, 0, 1, 1], [], []>} : vector<8x8xf32>, vector<8x32xf32>, vector<8x32xf32> -> vector<8x32xf32>
    %360 = arith.addf %320, %359 : vector<8x32xf32>
    %c1_278 = arith.constant 1 : index
    %c2_279 = arith.constant 2 : index
    %c0_280 = arith.constant 0 : index
    %c0_281 = arith.constant 0 : index
    %361 = vector.load %arg4[%c1_278, %c2_279, %c0_280, %c0_281] : memref<2x4x32x8xf32, #tpu.memory_space<vmem>>, vector<1x1x32x8xf32>
    %362 = vector.shape_cast %361 : vector<1x1x32x8xf32> to vector<32x8xf32>
    %cst_282 = arith.constant dense<0.000000e+00> : vector<8x8xf32>
    %363 = tpu.matmul %279, %362, %cst_282 {dimension_numbers = #tpu.dot_dimension_numbers<[1], [0], [0], [1], [0, 0, 1, 1], [], []>} : vector<8x32xf32>, vector<32x8xf32>, vector<8x8xf32> -> vector<8x8xf32>
    %c1_283 = arith.constant 1 : index
    %c2_284 = arith.constant 2 : index
    %c0_285 = arith.constant 0 : index
    %c0_286 = arith.constant 0 : index
    %364 = vector.load %arg5[%c1_283, %c2_284, %c0_285, %c0_286] : memref<2x4x1x8xf32, #tpu.memory_space<vmem>>, vector<1x1x1x8xf32>
    %365 = vector.shape_cast %364 : vector<1x1x1x8xf32> to vector<1x8xf32>
    %366 = vector.broadcast %365 : vector<1x8xf32> to vector<8x8xf32>
    %367 = arith.addf %363, %366 : vector<8x8xf32>
    %cst_287 = arith.constant 0.353553385 : f32
    %368 = vector.broadcast %cst_287 : f32 to vector<8x8xf32>
    %369 = arith.mulf %367, %368 : vector<8x8xf32>
    %c1_288 = arith.constant 1 : index
    %c2_289 = arith.constant 2 : index
    %c0_290 = arith.constant 0 : index
    %c0_291 = arith.constant 0 : index
    %370 = vector.load %arg6[%c1_288, %c2_289, %c0_290, %c0_291] : memref<2x4x32x8xf32, #tpu.memory_space<vmem>>, vector<1x1x32x8xf32>
    %371 = vector.shape_cast %370 : vector<1x1x32x8xf32> to vector<32x8xf32>
    %cst_292 = arith.constant dense<0.000000e+00> : vector<8x8xf32>
    %372 = tpu.matmul %279, %371, %cst_292 {dimension_numbers = #tpu.dot_dimension_numbers<[1], [0], [0], [1], [0, 0, 1, 1], [], []>} : vector<8x32xf32>, vector<32x8xf32>, vector<8x8xf32> -> vector<8x8xf32>
    %c1_293 = arith.constant 1 : index
    %c2_294 = arith.constant 2 : index
    %c0_295 = arith.constant 0 : index
    %c0_296 = arith.constant 0 : index
    %373 = vector.load %arg7[%c1_293, %c2_294, %c0_295, %c0_296] : memref<2x4x1x8xf32, #tpu.memory_space<vmem>>, vector<1x1x1x8xf32>
    %374 = vector.shape_cast %373 : vector<1x1x1x8xf32> to vector<1x8xf32>
    %375 = vector.broadcast %374 : vector<1x8xf32> to vector<8x8xf32>
    %376 = arith.addf %372, %375 : vector<8x8xf32>
    %c1_297 = arith.constant 1 : index
    %c2_298 = arith.constant 2 : index
    %c0_299 = arith.constant 0 : index
    %c0_300 = arith.constant 0 : index
    %377 = vector.load %arg8[%c1_297, %c2_298, %c0_299, %c0_300] : memref<2x4x32x8xf32, #tpu.memory_space<vmem>>, vector<1x1x32x8xf32>
    %378 = vector.shape_cast %377 : vector<1x1x32x8xf32> to vector<32x8xf32>
    %cst_301 = arith.constant dense<0.000000e+00> : vector<8x8xf32>
    %379 = tpu.matmul %279, %378, %cst_301 {dimension_numbers = #tpu.dot_dimension_numbers<[1], [0], [0], [1], [0, 0, 1, 1], [], []>} : vector<8x32xf32>, vector<32x8xf32>, vector<8x8xf32> -> vector<8x8xf32>
    %c1_302 = arith.constant 1 : index
    %c2_303 = arith.constant 2 : index
    %c0_304 = arith.constant 0 : index
    %c0_305 = arith.constant 0 : index
    %380 = vector.load %arg9[%c1_302, %c2_303, %c0_304, %c0_305] : memref<2x4x1x8xf32, #tpu.memory_space<vmem>>, vector<1x1x1x8xf32>
    %381 = vector.shape_cast %380 : vector<1x1x1x8xf32> to vector<1x8xf32>
    %382 = vector.broadcast %381 : vector<1x8xf32> to vector<8x8xf32>
    %383 = arith.addf %379, %382 : vector<8x8xf32>
    "tpu.trace_start"() <{level = 10 : i32, message = "qd,kd->qk"}> : () -> ()
    %cst_306 = arith.constant dense<0.000000e+00> : vector<8x8xf32>
    %384 = tpu.matmul %369, %376, %cst_306 {dimension_numbers = #tpu.dot_dimension_numbers<[1], [1], [0], [0], [0, 0, 1, 0], [], []>} : vector<8x8xf32>, vector<8x8xf32>, vector<8x8xf32> -> vector<8x8xf32>
    "tpu.trace_stop"() : () -> ()
    %385 = arith.addf %384, %7 : vector<8x8xf32>
    %cst_307 = arith.constant dense<0xFF800000> : vector<8xf32>
    %386 = vector.multi_reduction <maximumf>, %385, %cst_307 [1] : vector<8x8xf32> to vector<8xf32>
    %387 = vector.shape_cast %386 : vector<8xf32> to vector<8x1xf32>
    %388 = vector.broadcast %387 : vector<8x1xf32> to vector<8x8xf32>
    %389 = arith.subf %385, %388 : vector<8x8xf32>
    %390 = math.exp %389 : vector<8x8xf32>
    %cst_308 = arith.constant dense<0.000000e+00> : vector<8xf32>
    %391 = vector.multi_reduction <add>, %390, %cst_308 [1] : vector<8x8xf32> to vector<8xf32>
    %392 = vector.shape_cast %391 : vector<8xf32> to vector<8x1xf32>
    %393 = tpu.reciprocal %392 {approx = true} : vector<8x1xf32> -> vector<8x1xf32>
    %394 = vector.broadcast %393 : vector<8x1xf32> to vector<8x8xf32>
    %395 = arith.mulf %390, %394 : vector<8x8xf32>
    %cst_309 = arith.constant dense<0.000000e+00> : vector<8x8xf32>
    %396 = tpu.matmul %395, %383, %cst_309 {dimension_numbers = #tpu.dot_dimension_numbers<[1], [0], [0], [1], [0, 0, 1, 1], [], []>} : vector<8x8xf32>, vector<8x8xf32>, vector<8x8xf32> -> vector<8x8xf32>
    %c1_310 = arith.constant 1 : index
    %c2_311 = arith.constant 2 : index
    %c0_312 = arith.constant 0 : index
    %c0_313 = arith.constant 0 : index
    %397 = vector.load %arg10[%c1_310, %c2_311, %c0_312, %c0_313] : memref<2x4x8x32xf32, #tpu.memory_space<vmem>>, vector<1x1x8x32xf32>
    %398 = vector.shape_cast %397 : vector<1x1x8x32xf32> to vector<8x32xf32>
    %cst_314 = arith.constant dense<0.000000e+00> : vector<8x32xf32>
    %399 = tpu.matmul %396, %398, %cst_314 {dimension_numbers = #tpu.dot_dimension_numbers<[1], [0], [0], [1], [0, 0, 1, 1], [], []>} : vector<8x8xf32>, vector<8x32xf32>, vector<8x32xf32> -> vector<8x32xf32>
    %400 = arith.addf %360, %399 : vector<8x32xf32>
    %c1_315 = arith.constant 1 : index
    %c3_316 = arith.constant 3 : index
    %c0_317 = arith.constant 0 : index
    %c0_318 = arith.constant 0 : index
    %401 = vector.load %arg4[%c1_315, %c3_316, %c0_317, %c0_318] : memref<2x4x32x8xf32, #tpu.memory_space<vmem>>, vector<1x1x32x8xf32>
    %402 = vector.shape_cast %401 : vector<1x1x32x8xf32> to vector<32x8xf32>
    %cst_319 = arith.constant dense<0.000000e+00> : vector<8x8xf32>
    %403 = tpu.matmul %279, %402, %cst_319 {dimension_numbers = #tpu.dot_dimension_numbers<[1], [0], [0], [1], [0, 0, 1, 1], [], []>} : vector<8x32xf32>, vector<32x8xf32>, vector<8x8xf32> -> vector<8x8xf32>
    %c1_320 = arith.constant 1 : index
    %c3_321 = arith.constant 3 : index
    %c0_322 = arith.constant 0 : index
    %c0_323 = arith.constant 0 : index
    %404 = vector.load %arg5[%c1_320, %c3_321, %c0_322, %c0_323] : memref<2x4x1x8xf32, #tpu.memory_space<vmem>>, vector<1x1x1x8xf32>
    %405 = vector.shape_cast %404 : vector<1x1x1x8xf32> to vector<1x8xf32>
    %406 = vector.broadcast %405 : vector<1x8xf32> to vector<8x8xf32>
    %407 = arith.addf %403, %406 : vector<8x8xf32>
    %cst_324 = arith.constant 0.353553385 : f32
    %408 = vector.broadcast %cst_324 : f32 to vector<8x8xf32>
    %409 = arith.mulf %407, %408 : vector<8x8xf32>
    %c1_325 = arith.constant 1 : index
    %c3_326 = arith.constant 3 : index
    %c0_327 = arith.constant 0 : index
    %c0_328 = arith.constant 0 : index
    %410 = vector.load %arg6[%c1_325, %c3_326, %c0_327, %c0_328] : memref<2x4x32x8xf32, #tpu.memory_space<vmem>>, vector<1x1x32x8xf32>
    %411 = vector.shape_cast %410 : vector<1x1x32x8xf32> to vector<32x8xf32>
    %cst_329 = arith.constant dense<0.000000e+00> : vector<8x8xf32>
    %412 = tpu.matmul %279, %411, %cst_329 {dimension_numbers = #tpu.dot_dimension_numbers<[1], [0], [0], [1], [0, 0, 1, 1], [], []>} : vector<8x32xf32>, vector<32x8xf32>, vector<8x8xf32> -> vector<8x8xf32>
    %c1_330 = arith.constant 1 : index
    %c3_331 = arith.constant 3 : index
    %c0_332 = arith.constant 0 : index
    %c0_333 = arith.constant 0 : index
    %413 = vector.load %arg7[%c1_330, %c3_331, %c0_332, %c0_333] : memref<2x4x1x8xf32, #tpu.memory_space<vmem>>, vector<1x1x1x8xf32>
    %414 = vector.shape_cast %413 : vector<1x1x1x8xf32> to vector<1x8xf32>
    %415 = vector.broadcast %414 : vector<1x8xf32> to vector<8x8xf32>
    %416 = arith.addf %412, %415 : vector<8x8xf32>
    %c1_334 = arith.constant 1 : index
    %c3_335 = arith.constant 3 : index
    %c0_336 = arith.constant 0 : index
    %c0_337 = arith.constant 0 : index
    %417 = vector.load %arg8[%c1_334, %c3_335, %c0_336, %c0_337] : memref<2x4x32x8xf32, #tpu.memory_space<vmem>>, vector<1x1x32x8xf32>
    %418 = vector.shape_cast %417 : vector<1x1x32x8xf32> to vector<32x8xf32>
    %cst_338 = arith.constant dense<0.000000e+00> : vector<8x8xf32>
    %419 = tpu.matmul %279, %418, %cst_338 {dimension_numbers = #tpu.dot_dimension_numbers<[1], [0], [0], [1], [0, 0, 1, 1], [], []>} : vector<8x32xf32>, vector<32x8xf32>, vector<8x8xf32> -> vector<8x8xf32>
    %c1_339 = arith.constant 1 : index
    %c3_340 = arith.constant 3 : index
    %c0_341 = arith.constant 0 : index
    %c0_342 = arith.constant 0 : index
    %420 = vector.load %arg9[%c1_339, %c3_340, %c0_341, %c0_342] : memref<2x4x1x8xf32, #tpu.memory_space<vmem>>, vector<1x1x1x8xf32>
    %421 = vector.shape_cast %420 : vector<1x1x1x8xf32> to vector<1x8xf32>
    %422 = vector.broadcast %421 : vector<1x8xf32> to vector<8x8xf32>
    %423 = arith.addf %419, %422 : vector<8x8xf32>
    "tpu.trace_start"() <{level = 10 : i32, message = "qd,kd->qk"}> : () -> ()
    %cst_343 = arith.constant dense<0.000000e+00> : vector<8x8xf32>
    %424 = tpu.matmul %409, %416, %cst_343 {dimension_numbers = #tpu.dot_dimension_numbers<[1], [1], [0], [0], [0, 0, 1, 0], [], []>} : vector<8x8xf32>, vector<8x8xf32>, vector<8x8xf32> -> vector<8x8xf32>
    "tpu.trace_stop"() : () -> ()
    %425 = arith.addf %424, %7 : vector<8x8xf32>
    %cst_344 = arith.constant dense<0xFF800000> : vector<8xf32>
    %426 = vector.multi_reduction <maximumf>, %425, %cst_344 [1] : vector<8x8xf32> to vector<8xf32>
    %427 = vector.shape_cast %426 : vector<8xf32> to vector<8x1xf32>
    %428 = vector.broadcast %427 : vector<8x1xf32> to vector<8x8xf32>
    %429 = arith.subf %425, %428 : vector<8x8xf32>
    %430 = math.exp %429 : vector<8x8xf32>
    %cst_345 = arith.constant dense<0.000000e+00> : vector<8xf32>
    %431 = vector.multi_reduction <add>, %430, %cst_345 [1] : vector<8x8xf32> to vector<8xf32>
    %432 = vector.shape_cast %431 : vector<8xf32> to vector<8x1xf32>
    %433 = tpu.reciprocal %432 {approx = true} : vector<8x1xf32> -> vector<8x1xf32>
    %434 = vector.broadcast %433 : vector<8x1xf32> to vector<8x8xf32>
    %435 = arith.mulf %430, %434 : vector<8x8xf32>
    %cst_346 = arith.constant dense<0.000000e+00> : vector<8x8xf32>
    %436 = tpu.matmul %435, %423, %cst_346 {dimension_numbers = #tpu.dot_dimension_numbers<[1], [0], [0], [1], [0, 0, 1, 1], [], []>} : vector<8x8xf32>, vector<8x8xf32>, vector<8x8xf32> -> vector<8x8xf32>
    %c1_347 = arith.constant 1 : index
    %c3_348 = arith.constant 3 : index
    %c0_349 = arith.constant 0 : index
    %c0_350 = arith.constant 0 : index
    %437 = vector.load %arg10[%c1_347, %c3_348, %c0_349, %c0_350] : memref<2x4x8x32xf32, #tpu.memory_space<vmem>>, vector<1x1x8x32xf32>
    %438 = vector.shape_cast %437 : vector<1x1x8x32xf32> to vector<8x32xf32>
    %cst_351 = arith.constant dense<0.000000e+00> : vector<8x32xf32>
    %439 = tpu.matmul %436, %438, %cst_351 {dimension_numbers = #tpu.dot_dimension_numbers<[1], [0], [0], [1], [0, 0, 1, 1], [], []>} : vector<8x8xf32>, vector<8x32xf32>, vector<8x32xf32> -> vector<8x32xf32>
    %440 = arith.addf %400, %439 : vector<8x32xf32>
    %441 = arith.addf %253, %440 : vector<8x32xf32>
    %c1_352 = arith.constant 1 : index
    %c0_353 = arith.constant 0 : index
    %c0_354 = arith.constant 0 : index
    %442 = vector.load %arg11[%c1_352, %c0_353, %c0_354] : memref<2x1x32xf32, #tpu.memory_space<vmem>>, vector<1x1x32xf32>
    %443 = vector.shape_cast %442 : vector<1x1x32xf32> to vector<1x32xf32>
    %444 = vector.broadcast %443 : vector<1x32xf32> to vector<8x32xf32>
    %445 = arith.addf %441, %444 : vector<8x32xf32>
    %c1_355 = arith.constant 1 : index
    %c0_356 = arith.constant 0 : index
    %c0_357 = arith.constant 0 : index
    %446 = vector.load %arg12[%c1_355, %c0_356, %c0_357] : memref<2x1x32xf32, #tpu.memory_space<vmem>>, vector<1x1x32xf32>
    %447 = vector.shape_cast %446 : vector<1x1x32xf32> to vector<1x32xf32>
    %c1_358 = arith.constant 1 : index
    %c0_359 = arith.constant 0 : index
    %c0_360 = arith.constant 0 : index
    %448 = vector.load %arg13[%c1_358, %c0_359, %c0_360] : memref<2x1x32xf32, #tpu.memory_space<vmem>>, vector<1x1x32xf32>
    %449 = vector.shape_cast %448 : vector<1x1x32xf32> to vector<1x32xf32>
    %cst_361 = arith.constant dense<0.000000e+00> : vector<8xf32>
    %450 = vector.multi_reduction <add>, %445, %cst_361 [1] : vector<8x32xf32> to vector<8xf32>
    %451 = vector.shape_cast %450 : vector<8xf32> to vector<8x1xf32>
    %cst_362 = arith.constant 3.200000e+01 : f32
    %452 = vector.broadcast %cst_362 : f32 to vector<8x1xf32>
    %453 = arith.divf %451, %452 : vector<8x1xf32>
    %454 = vector.broadcast %453 : vector<8x1xf32> to vector<8x32xf32>
    %455 = arith.subf %445, %454 : vector<8x32xf32>
    %456 = arith.mulf %455, %455 : vector<8x32xf32>
    %cst_363 = arith.constant dense<0.000000e+00> : vector<8xf32>
    %457 = vector.multi_reduction <add>, %456, %cst_363 [1] : vector<8x32xf32> to vector<8xf32>
    %458 = vector.shape_cast %457 : vector<8xf32> to vector<8x1xf32>
    %cst_364 = arith.constant 3.200000e+01 : f32
    %459 = vector.broadcast %cst_364 : f32 to vector<8x1xf32>
    %460 = arith.divf %458, %459 : vector<8x1xf32>
    %461 = vector.broadcast %453 : vector<8x1xf32> to vector<8x32xf32>
    %462 = arith.subf %445, %461 : vector<8x32xf32>
    %cst_365 = arith.constant 9.99999974E-6 : f32
    %463 = vector.broadcast %cst_365 : f32 to vector<8x1xf32>
    %464 = arith.addf %460, %463 : vector<8x1xf32>
    %465 = math.rsqrt %464 : vector<8x1xf32>
    %466 = vector.broadcast %465 : vector<8x1xf32> to vector<8x32xf32>
    %467 = arith.mulf %462, %466 : vector<8x32xf32>
    %468 = vector.broadcast %447 : vector<1x32xf32> to vector<8x32xf32>
    %469 = arith.mulf %467, %468 : vector<8x32xf32>
    %470 = vector.broadcast %449 : vector<1x32xf32> to vector<8x32xf32>
    %471 = arith.addf %469, %470 : vector<8x32xf32>
    %c1_366 = arith.constant 1 : index
    %c0_367 = arith.constant 0 : index
    %c0_368 = arith.constant 0 : index
    %472 = vector.load %arg14[%c1_366, %c0_367, %c0_368] : memref<2x32x128xf32, #tpu.memory_space<vmem>>, vector<1x32x128xf32>
    %473 = vector.shape_cast %472 : vector<1x32x128xf32> to vector<32x128xf32>
    %cst_369 = arith.constant dense<0.000000e+00> : vector<8x128xf32>
    %474 = tpu.matmul %471, %473, %cst_369 {dimension_numbers = #tpu.dot_dimension_numbers<[1], [0], [0], [1], [0, 0, 1, 1], [], []>} : vector<8x32xf32>, vector<32x128xf32>, vector<8x128xf32> -> vector<8x128xf32>
    %c1_370 = arith.constant 1 : index
    %c0_371 = arith.constant 0 : index
    %c0_372 = arith.constant 0 : index
    %475 = vector.load %arg15[%c1_370, %c0_371, %c0_372] : memref<2x1x128xf32, #tpu.memory_space<vmem>>, vector<1x1x128xf32>
    %476 = vector.shape_cast %475 : vector<1x1x128xf32> to vector<1x128xf32>
    %477 = vector.broadcast %476 : vector<1x128xf32> to vector<8x128xf32>
    %478 = arith.addf %474, %477 : vector<8x128xf32>
    %cst_373 = arith.constant 5.000000e-01 : f32
    %479 = vector.broadcast %cst_373 : f32 to vector<8x128xf32>
    %480 = arith.mulf %479, %478 : vector<8x128xf32>
    %cst_374 = arith.constant 4.471500e-02 : f32
    %481 = vector.broadcast %cst_374 : f32 to vector<8x128xf32>
    %482 = arith.mulf %481, %478 : vector<8x128xf32>
    %483 = arith.mulf %482, %478 : vector<8x128xf32>
    %484 = arith.mulf %483, %478 : vector<8x128xf32>
    %485 = arith.addf %478, %484 : vector<8x128xf32>
    %cst_375 = arith.constant 0.797884583 : f32
    %486 = vector.broadcast %cst_375 : f32 to vector<8x128xf32>
    %487 = arith.mulf %486, %485 : vector<8x128xf32>
    %488 = math.tanh %487 : vector<8x128xf32>
    %cst_376 = arith.constant 1.000000e+00 : f32
    %489 = vector.broadcast %cst_376 : f32 to vector<8x128xf32>
    %490 = arith.addf %489, %488 : vector<8x128xf32>
    %491 = arith.mulf %480, %490 : vector<8x128xf32>
    %c1_377 = arith.constant 1 : index
    %c0_378 = arith.constant 0 : index
    %c0_379 = arith.constant 0 : index
    %492 = vector.load %arg16[%c1_377, %c0_378, %c0_379] : memref<2x128x32xf32, #tpu.memory_space<vmem>>, vector<1x128x32xf32>
    %493 = vector.shape_cast %492 : vector<1x128x32xf32> to vector<128x32xf32>
    %cst_380 = arith.constant dense<0.000000e+00> : vector<8x32xf32>
    %494 = tpu.matmul %491, %493, %cst_380 {dimension_numbers = #tpu.dot_dimension_numbers<[1], [0], [0], [1], [0, 0, 1, 1], [], []>} : vector<8x128xf32>, vector<128x32xf32>, vector<8x32xf32> -> vector<8x32xf32>
    %495 = arith.addf %445, %494 : vector<8x32xf32>
    %c1_381 = arith.constant 1 : index
    %c0_382 = arith.constant 0 : index
    %c0_383 = arith.constant 0 : index
    %496 = vector.load %arg17[%c1_381, %c0_382, %c0_383] : memref<2x1x32xf32, #tpu.memory_space<vmem>>, vector<1x1x32xf32>
    %497 = vector.shape_cast %496 : vector<1x1x32xf32> to vector<1x32xf32>
    %498 = vector.broadcast %497 : vector<1x32xf32> to vector<8x32xf32>
    %499 = arith.addf %495, %498 : vector<8x32xf32>
    %c0_384 = arith.constant 0 : index
    %c0_385 = arith.constant 0 : index
    %500 = vector.load %arg18[%c0_384, %c0_385] : memref<1x32xf32, #tpu.memory_space<vmem>>, vector<1x32xf32>
    %c0_386 = arith.constant 0 : index
    %c0_387 = arith.constant 0 : index
    %501 = vector.load %arg19[%c0_386, %c0_387] : memref<1x32xf32, #tpu.memory_space<vmem>>, vector<1x32xf32>
    %cst_388 = arith.constant dense<0.000000e+00> : vector<8xf32>
    %502 = vector.multi_reduction <add>, %499, %cst_388 [1] : vector<8x32xf32> to vector<8xf32>
    %503 = vector.shape_cast %502 : vector<8xf32> to vector<8x1xf32>
    %cst_389 = arith.constant 3.200000e+01 : f32
    %504 = vector.broadcast %cst_389 : f32 to vector<8x1xf32>
    %505 = arith.divf %503, %504 : vector<8x1xf32>
    %506 = vector.broadcast %505 : vector<8x1xf32> to vector<8x32xf32>
    %507 = arith.subf %499, %506 : vector<8x32xf32>
    %508 = arith.mulf %507, %507 : vector<8x32xf32>
    %cst_390 = arith.constant dense<0.000000e+00> : vector<8xf32>
    %509 = vector.multi_reduction <add>, %508, %cst_390 [1] : vector<8x32xf32> to vector<8xf32>
    %510 = vector.shape_cast %509 : vector<8xf32> to vector<8x1xf32>
    %cst_391 = arith.constant 3.200000e+01 : f32
    %511 = vector.broadcast %cst_391 : f32 to vector<8x1xf32>
    %512 = arith.divf %510, %511 : vector<8x1xf32>
    %513 = vector.broadcast %505 : vector<8x1xf32> to vector<8x32xf32>
    %514 = arith.subf %499, %513 : vector<8x32xf32>
    %cst_392 = arith.constant 9.99999974E-6 : f32
    %515 = vector.broadcast %cst_392 : f32 to vector<8x1xf32>
    %516 = arith.addf %512, %515 : vector<8x1xf32>
    %517 = math.rsqrt %516 : vector<8x1xf32>
    %518 = vector.broadcast %517 : vector<8x1xf32> to vector<8x32xf32>
    %519 = arith.mulf %514, %518 : vector<8x32xf32>
    %520 = vector.broadcast %500 : vector<1x32xf32> to vector<8x32xf32>
    %521 = arith.mulf %519, %520 : vector<8x32xf32>
    %522 = vector.broadcast %501 : vector<1x32xf32> to vector<8x32xf32>
    %523 = arith.addf %521, %522 : vector<8x32xf32>
    %c0_393 = arith.constant 0 : index
    %c0_394 = arith.constant 0 : index
    %524 = vector.load %arg20[%c0_393, %c0_394] : memref<32x128xf32, #tpu.memory_space<vmem>>, vector<32x128xf32>
    %cst_395 = arith.constant dense<0.000000e+00> : vector<8x128xf32>
    %525 = tpu.matmul %523, %524, %cst_395 {dimension_numbers = #tpu.dot_dimension_numbers<[1], [0], [0], [1], [0, 0, 1, 1], [], []>} : vector<8x32xf32>, vector<32x128xf32>, vector<8x128xf32> -> vector<8x128xf32>
    %c0_396 = arith.constant 0 : index
    %c0_397 = arith.constant 0 : index
    %c0_398 = arith.constant 0 : index
    %526 = vector.load %arg21[%c0_396, %c0_397, %c0_398] : memref<1x8x128xf32, #tpu.memory_space<vmem>>, vector<1x8x128xf32>
    %527 = vector.shape_cast %526 : vector<1x8x128xf32> to vector<8x128xf32>
    %528 = vector.shape_cast %525 : vector<8x128xf32> to vector<1x8x128xf32>
    tpu.vector_store %arg21[%c0_396, %c0_397, %c0_398], %528 {strides = array<i32>} : memref<1x8x128xf32, #tpu.memory_space<vmem>>, vector<1x8x128xf32>,
    return
  }
  func.func @transform_0(%arg0: i32) -> (i32, i32, i32) {
    %c0_i32 = arith.constant 0 : i32
    %c0_i32_0 = arith.constant 0 : i32
    %c0_i32_1 = arith.constant 0 : i32
    return %arg0, %c0_i32, %c0_i32_0 : i32, i32, i32
  }
  func.func @transform_1(%arg0: i32) -> (i32, i32, i32) {
    %c0_i32 = arith.constant 0 : i32
    %c0_i32_0 = arith.constant 0 : i32
    %c0_i32_1 = arith.constant 0 : i32
    %c0_i32_2 = arith.constant 0 : i32
    return %c0_i32, %c0_i32_0, %c0_i32_1 : i32, i32, i32
  }
  func.func @transform_2(%arg0: i32) -> (i32, i32, i32) {
    %c0_i32 = arith.constant 0 : i32
    %c0_i32_0 = arith.constant 0 : i32
    %c0_i32_1 = arith.constant 0 : i32
    %c0_i32_2 = arith.constant 0 : i32
    return %c0_i32, %c0_i32_0, %c0_i32_1 : i32, i32, i32
  }
  func.func @transform_3(%arg0: i32) -> (i32, i32, i32, i32) {
    %c0_i32 = arith.constant 0 : i32
    %c0_i32_0 = arith.constant 0 : i32
    %c0_i32_1 = arith.constant 0 : i32
    %c0_i32_2 = arith.constant 0 : i32
    %c0_i32_3 = arith.constant 0 : i32
    return %c0_i32, %c0_i32_0, %c0_i32_1, %c0_i32_2 : i32, i32, i32, i32
  }
  func.func @transform_4(%arg0: i32) -> (i32, i32, i32, i32) {
    %c0_i32 = arith.constant 0 : i32
    %c0_i32_0 = arith.constant 0 : i32
    %c0_i32_1 = arith.constant 0 : i32
    %c0_i32_2 = arith.constant 0 : i32
    %c0_i32_3 = arith.constant 0 : i32
    return %c0_i32, %c0_i32_0, %c0_i32_1, %c0_i32_2 : i32, i32, i32, i32
  }
  func.func @transform_5(%arg0: i32) -> (i32, i32, i32, i32) {
    %c0_i32 = arith.constant 0 : i32
    %c0_i32_0 = arith.constant 0 : i32
    %c0_i32_1 = arith.constant 0 : i32
    %c0_i32_2 = arith.constant 0 : i32
    %c0_i32_3 = arith.constant 0 : i32
    return %c0_i32, %c0_i32_0, %c0_i32_1, %c0_i32_2 : i32, i32, i32, i32
  }
  func.func @transform_6(%arg0: i32) -> (i32, i32, i32, i32) {
    %c0_i32 = arith.constant 0 : i32
    %c0_i32_0 = arith.constant 0 : i32
    %c0_i32_1 = arith.constant 0 : i32
    %c0_i32_2 = arith.constant 0 : i32
    %c0_i32_3 = arith.constant 0 : i32
    return %c0_i32, %c0_i32_0, %c0_i32_1, %c0_i32_2 : i32, i32, i32, i32
  }
  func.func @transform_7(%arg0: i32) -> (i32, i32, i32, i32) {
    %c0_i32 = arith.constant 0 : i32
    %c0_i32_0 = arith.constant 0 : i32
    %c0_i32_1 = arith.constant 0 : i32
    %c0_i32_2 = arith.constant 0 : i32
    %c0_i32_3 = arith.constant 0 : i32
    return %c0_i32, %c0_i32_0, %c0_i32_1, %c0_i32_2 : i32, i32, i32, i32
  }
  func.func @transform_8(%arg0: i32) -> (i32, i32, i32, i32) {
    %c0_i32 = arith.constant 0 : i32
    %c0_i32_0 = arith.constant 0 : i32
    %c0_i32_1 = arith.constant 0 : i32
    %c0_i32_2 = arith.constant 0 : i32
    %c0_i32_3 = arith.constant 0 : i32
    return %c0_i32, %c0_i32_0, %c0_i32_1, %c0_i32_2 : i32, i32, i32, i32
  }
  func.func @transform_9(%arg0: i32) -> (i32, i32, i32, i32) {
    %c0_i32 = arith.constant 0 : i32
    %c0_i32_0 = arith.constant 0 : i32
    %c0_i32_1 = arith.constant 0 : i32
    %c0_i32_2 = arith.constant 0 : i32
    %c0_i32_3 = arith.constant 0 : i32
    return %c0_i32, %c0_i32_0, %c0_i32_1, %c0_i32_2 : i32, i32, i32, i32
  }
  func.func @transform_10(%arg0: i32) -> (i32, i32, i32) {
    %c0_i32 = arith.constant 0 : i32
    %c0_i32_0 = arith.constant 0 : i32
    %c0_i32_1 = arith.constant 0 : i32
    %c0_i32_2 = arith.constant 0 : i32
    return %c0_i32, %c0_i32_0, %c0_i32_1 : i32, i32, i32
  }
  func.func @transform_11(%arg0: i32) -> (i32, i32, i32) {
    %c0_i32 = arith.constant 0 : i32
    %c0_i32_0 = arith.constant 0 : i32
    %c0_i32_1 = arith.constant 0 : i32
    %c0_i32_2 = arith.constant 0 : i32
    return %c0_i32, %c0_i32_0, %c0_i32_1 : i32, i32, i32
  }
  func.func @transform_12(%arg0: i32) -> (i32, i32, i32) {
    %c0_i32 = arith.constant 0 : i32
    %c0_i32_0 = arith.constant 0 : i32
    %c0_i32_1 = arith.constant 0 : i32
    %c0_i32_2 = arith.constant 0 : i32
    return %c0_i32, %c0_i32_0, %c0_i32_1 : i32, i32, i32
  }
  func.func @transform_13(%arg0: i32) -> (i32, i32, i32) {
    %c0_i32 = arith.constant 0 : i32
    %c0_i32_0 = arith.constant 0 : i32
    %c0_i32_1 = arith.constant 0 : i32
    %c0_i32_2 = arith.constant 0 : i32
    return %c0_i32, %c0_i32_0, %c0_i32_1 : i32, i32, i32
  }
  func.func @transform_14(%arg0: i32) -> (i32, i32, i32) {
    %c0_i32 = arith.constant 0 : i32
    %c0_i32_0 = arith.constant 0 : i32
    %c0_i32_1 = arith.constant 0 : i32
    %c0_i32_2 = arith.constant 0 : i32
    return %c0_i32, %c0_i32_0, %c0_i32_1 : i32, i32, i32
  }
  func.func @transform_15(%arg0: i32) -> (i32, i32, i32) {
    %c0_i32 = arith.constant 0 : i32
    %c0_i32_0 = arith.constant 0 : i32
    %c0_i32_1 = arith.constant 0 : i32
    %c0_i32_2 = arith.constant 0 : i32
    return %c0_i32, %c0_i32_0, %c0_i32_1 : i32, i32, i32
  }
  func.func @transform_16(%arg0: i32) -> (i32, i32, i32) {
    %c0_i32 = arith.constant 0 : i32
    %c0_i32_0 = arith.constant 0 : i32
    %c0_i32_1 = arith.constant 0 : i32
    %c0_i32_2 = arith.constant 0 : i32
    return %c0_i32, %c0_i32_0, %c0_i32_1 : i32, i32, i32
  }
  func.func @transform_17(%arg0: i32) -> (i32, i32) {
    %c0_i32 = arith.constant 0 : i32
    %c0_i32_0 = arith.constant 0 : i32
    %c0_i32_1 = arith.constant 0 : i32
    return %c0_i32, %c0_i32_0 : i32, i32
  }
  func.func @transform_18(%arg0: i32) -> (i32, i32) {
    %c0_i32 = arith.constant 0 : i32
    %c0_i32_0 = arith.constant 0 : i32
    %c0_i32_1 = arith.constant 0 : i32
    return %c0_i32, %c0_i32_0 : i32, i32
  }
  func.func @transform_19(%arg0: i32) -> (i32, i32) {
    %c0_i32 = arith.constant 0 : i32
    %c0_i32_0 = arith.constant 0 : i32
    %c0_i32_1 = arith.constant 0 : i32
    return %c0_i32, %c0_i32_0 : i32, i32
  }
  func.func @transform_20(%arg0: i32) -> (i32, i32, i32) {
    %c0_i32 = arith.constant 0 : i32
    %c0_i32_0 = arith.constant 0 : i32
    %c0_i32_1 = arith.constant 0 : i32
    return %arg0, %c0_i32, %c0_i32_0 : i32, i32, i32
  }
}

</mosaic_0001>

<bundles_post_ra>
// kernel: cloze_tail_forward.1
= control target key start
LH: loop header
LB: loop body
LE: loop exit
PB: predicated region body
PF: predicated region fallthrough
CT: control target
= control target key end

     0   :  { %s7655_s0 = inlined_call_operand.vmem [shape: f32[2,8,32], index: 0, kind: input, shape index: {}]   ;;  %s7656_s1 = inlined_call_operand.vmem [shape: f32[2,1,32], index: 1, kind: input, shape index: {}]   ;;  %s7657_s2 = inlined_call_operand.vmem [shape: f32[2,1,32], index: 2, kind: input, shape index: {}]   ;;  %s7658_s3 = inlined_call_operand.vmem [shape: f32[2,4,32,8], index: 3, kind: input, shape index: {}]   ;;  %s7659_s4 = inlined_call_operand.vmem [shape: f32[2,4,1,8], index: 4, kind: input, shape index: {}]   ;;  %s7660_s5 = inlined_call_operand.vmem [shape: f32[2,4,32,8], index: 5, kind: input, shape index: {}]   ;;  %s7661_s6 = inlined_call_operand.vmem [shape: f32[2,4,1,8], index: 6, kind: input, shape index: {}]   ;;  %s7662_s7 = inlined_call_operand.vmem [shape: f32[2,4,32,8], index: 7, kind: input, shape index: {}]   ;;  %s7663_s8 = inlined_call_operand.vmem [shape: f32[2,4,1,8], index: 8, kind: input, shape index: {}]   ;;  %s7664_s9 = inlined_call_operand.vmem [shape: f32[2,4,8,32], index: 9, kind: input, shape index: {}]   ;;  %s7665_s10 = inlined_call_operand.vmem [shape: f32[2,1,32], index: 10, kind: input, shape index: {}]   ;;  %s7666_s11 = inlined_call_operand.vmem [shape: f32[2,1,32], index: 11, kind: input, shape index: {}]   ;;  %s7667_s12 = inlined_call_operand.vmem [shape: f32[2,1,32], index: 12, kind: input, shape index: {}]   ;;  %s7668_s13 = inlined_call_operand.vmem [shape: f32[2,32,128], index: 13, kind: input, shape index: {}]   ;;  %s7669_s14 = inlined_call_operand.vmem [shape: f32[2,1,128], index: 14, kind: input, shape index: {}]   ;;  %s7670_s15 = inlined_call_operand.vmem [shape: f32[2,128,32], index: 15, kind: input, shape index: {}]   ;;  %s7671_s16 = inlined_call_operand.vmem [shape: f32[2,1,32], index: 16, kind: input, shape index: {}]   ;;  %s7672_s17 = inlined_call_operand.vmem [shape: f32[1,32], index: 17, kind: input, shape index: {}]   ;;  %s7673_s18 = inlined_call_operand.vmem [shape: f32[1,32], index: 18, kind: input, shape index: {}]   ;;  %s7674_s19 = inlined_call_operand.vmem [shape: f32[32,128], index: 19, kind: input, shape index: {}]   ;;  %s7675_s20 = inlined_call_operand.hbm [shape: f32[2,8,128], index: 20, kind: output, shape index: {}]  }
   0x1   :  { %7691 = sst [smem:[#allocation12_spill]] %s7655_s0 }
   0x2   :  { %7692 = sst [smem:[#allocation13_spill]] %s7656_s1 }
   0x3   :  { %7693 = sst [smem:[#allocation14_spill]] %s7657_s2 }
   0x4   :  { %7694 = sst [smem:[#allocation15_spill]] %s7658_s3 }
   0x5   :  { %7695 = sst [smem:[#allocation16_spill]] %s7659_s4 }
   0x6   :  { %7696 = sst [smem:[#allocation17_spill]] %s7660_s5 }
   0x7   :  { %7697 = sst [smem:[#allocation18_spill]] %s7675_s20 }
   0x8   :  { %25 = vsyncpa [#allocation3], 0 }
   0x9   :  { %27 = vsyncpa [#allocation3 + $0x1], 0  ;;  %s6642_s1 = smov 0   ;;  %s6644_s22 = smov 0  }
   0xa   :  { %s6646_s23 = smov 0   ;;  %s6648_s24 = smov 0  }
   0xb LB: > { %7698 = sst [smem:[#allocation5_spill]] %s6518_s1  ;;  %s6663_s2 = sadd.s32 4294967295, %s6530_s24   ;;  %s6530_s24 = sphi %s6648_s24, %s7720_s24   ;;  %s6526_s23 = sphi %s6646_s23, %s7722_s23   ;;  %s6522_s22 = sphi %s6644_s22, %s7724_s22   ;;  %s6518_s1 = sphi %s6642_s1, %s7723_s1  }
   0xc   : > { %7699 = sst [smem:[#allocation6_spill]] %s6526_s23  ;;  %s5217_s25 = sadd.s32 4294967294, %s6530_s24  }
   0xd   : > { %7700 = sst [smem:[#allocation7_spill]] %s6530_s24  ;;  %s6667_s3 = sadd.s32 1, %s6530_s24  }
   0xe   : > { %7701 = sst [smem:[#allocation8_spill]] %s6667_s3  ;;  %s465_s26 = sadd.s32 1, %s6526_s23 }
   0xf   : > { %s462_s27 = ssub.s32 %s6530_s24, %s6667_s3  ;;  %p475_p0 = scmp.ne.s32.totalorder %s6526_s23, %s6522_s22 }
  0x10   : > { %p463_p1 = scmp.eq.s32.totalorder %s462_s27, 0  ;;  %p476_p2 = scmp.eq.s32.totalorder %s6663_s2, 1 }
  0x11   : > { %p481_p3 = scmp.ne.s32.totalorder %s6522_s22, %s6518_s1  ;;  %p482_p4 = scmp.eq.s32.totalorder %s5217_s25, 1 }
  0x12   : > { %s6678_s28 = scalar_select %p463_p1, %s6526_s23, %s465_s26  }
  0x13   : > { %p6680_p5 = por %p476_p2, %p475_p0  ;;  %p6684_p6 = por %p482_p4, %p481_p3 }
  0x14   : > { %7702 = sst [smem:[#allocation9_spill]] %s6678_s28  ;;  %p5220_p7 = scmp.ge.s32.totalorder %s6530_s24, 1 }
  0x15   : > { %s7703_s4 = scalar_select %p6680_p5, 1, 0 }
  0x16   : > { %s7705_s29 = scalar_select %p6684_p6, 1, 0 }
  0x17   : > { %7704 = sst [smem:[#allocation10_spill]] %s7703_s4  ;;  %p564_p8 = scmp.lt.s32.totalorder %s6530_s24, 3 }
  0x18   : > { %7706 = sst [smem:[#allocation11_spill]] %s7705_s29 }
  0x19   : > { %p565_p9 = pnand %p5220_p7, %p564_p8 }
  0x1a   : > { %p621_p10 = scmp.lt.s32.totalorder (!%p565_p9), %s6663_s2, 1  ;;  %vm634_vm0 = vcmask (!%p565_p9), 261120   ;;  %s7707_s26 = sld [smem:[#allocation12_spill]] (!%p565_p9)  ;;  %v6532_v10 = vmov (!%p565_p9), 0.0|0.0   ;;  %vm6533_vm1 = vmmov (!%p565_p9), 0   ;;  %v6534_v14 = vmov (!%p565_p9), 0.0  }
  0x1b   : > { %568 = sbr.rel (%p565_p9) target bundleno = 10470 (0x28e6), region = 100  ;;  %s7708_s23 = sld [smem:[#allocation15_spill]] (!%p565_p9)  ;;  %6169 = vmatprep.subr.bf16.mxu0 (!%p565_p9), %v6532_v10  ;;  %5690 = vmatprep.mubr.msk.f32.mxu0 (!%p565_p9), %vm6533_vm1, %v6534_v14  ;;  %v829_v30 = vld [vmem:[%s7662_s7] sm:$0xff] (!%p565_p9)  ;;  %v830_v31 = vld [vmem:[%s7662_s7 + $0x8] sm:$0xff] (!%p565_p9)  ;;  %v831_v33 = vld [vmem:[%s7662_s7 + $0x10] sm:$0xff] (!%p565_p9)  ;;  %vm910_vm2 = vcmask (!%p565_p9), 64512  }
  0x1c   : > { %5715 = vmatprep.subr.mxu1 (!%p565_p9), %v6534_v14  ;;  %5717 = vmatprep.mubr.msk.f32.mxu1 (!%p565_p9), %vm6533_vm1, %v6534_v14  ;;  %s7710_s29 = sld [smem:[#allocation13_spill]] (!%p565_p9)  ;;  %s7711_s5 = sld [smem:[#allocation17_spill]] (!%p565_p9)  ;;  %v6182_v32 = vpack.c.bf16 (!%p565_p9), %v830_v31, %v829_v30  ;;  %v832_v34 = vld [vmem:[%s7662_s7 + $0x18] sm:$0xff] (!%p565_p9)  ;;  %v5248_v42 = vld [vmem:[%s7662_s7 + $0x20] sm:$0xff] (!%p565_p9)  ;;  %v5249_v43 = vld [vmem:[%s7662_s7 + $0x28] sm:$0xff] (!%p565_p9) }
  0x1d   : > { %s7712_s1 = sld [smem:[#allocation14_spill]] (!%p565_p9)  ;;  %v6185_v35 = vpack.c.bf16 (!%p565_p9), %v832_v34, %v831_v33  ;;  %v6200_v44 = vpack.c.bf16 (!%p565_p9), %v5249_v43, %v5248_v42  ;;  %v5250_v45 = vld [vmem:[%s7662_s7 + $0x30] sm:$0xff] (!%p565_p9)  ;;  %v5251_v46 = vld [vmem:[%s7662_s7 + $0x38] sm:$0xff] (!%p565_p9)  ;;  %s7714_s4 = sld [smem:[#allocation16_spill]] (!%p565_p9)  ;;  %v5227_v51 = vld [vmem:[%s7661_s6] ss:$0 sm:$0xff] (!%p565_p9) }
  0x1e   : > { %v6203_v47 = vpack.c.bf16 (!%p565_p9), %v5251_v46, %v5250_v45  ;;  %v5229_v57 = vld [vmem:[%s7663_s8] ss:$0 sm:$0xff] (!%p565_p9)  ;;  %v5246_v31 = vld [vmem:[%s7661_s6 + $0x1] ss:$0 sm:$0xff] (!%p565_p9)  ;;  %s618_s25 = sand.u32 (!%p565_p9), 1, %s6522_s22   ;;  %s5462_s28 = sshll.u32 (!%p565_p9), %s6663_s2, 7 }
  0x1f   : > { %s5145_s21 = scalar_lea.sflag (!%p565_p9), [#allocation3], %s618_s25 }
  0x21   : > { %s7709_s3 = smov (!%p565_p9), %s7708_s23  ;;  %v663_v7 = vld [vmem:[%s7708_s23] sm:$0xff] (!%p565_p9) }
  0x22   : > { %s622_s30 = scalar_select %p621_p10, %s6663_s2, 1  ;;  %v664_v8 = vld [vmem:[%s7709_s3 + $0x8] sm:$0xff]  ;;  %v665_v11 = vld [vmem:[%s7709_s3 + $0x10] sm:$0xff]  ;;  %v666_v12 = vld [vmem:[%s7709_s3 + $0x18] sm:$0xff] }
  0x23   : > { %v6170_v9 = vpack.c.bf16 %v664_v8, %v663_v7  ;;  %v6173_v13 = vpack.c.bf16 %v666_v12, %v665_v11  ;;  %v5223_v19 = vld [vmem:[%s7710_s29] ss:$0 sm:$0xff]  ;;  %v749_v22 = vld [vmem:[%s7711_s5 + $0x8] sm:$0xff]  ;;  %s7713_s20 = smov %s7712_s1  ;;  %v750_v27 = vld [vmem:[%s7711_s5 + $0x10] sm:$0xff]  ;;  %s6536_s2 = smov [#allocation2]  }
  0x24   : > { %s5222_s0 = sshll.u32 %s622_s30, 3  ;;  %v748_v21 = vld [vmem:[%s7711_s5] sm:$0xff]  ;;  %v751_v28 = vld [vmem:[%s7711_s5 + $0x18] sm:$0xff]  ;;  %v5235_v37 = vld [vmem:[%s7709_s3 + $0x28] sm:$0xff]  ;;  %s7716_s30 = sld [smem:[#allocation18_spill]] }
  0x25   : > { %s624_s27 = scalar_lea.vmem %s7707_s26, %s5222_s0  ;;  %6171 = vmatpush3.bf16.msra.mxu0 %v6170_v9  ;;  %v5224_v23 = vld [vmem:[%s7712_s1] ss:$0 sm:$0xff]  ;;  %v6176_v25 = vpack.c.bf16 %v749_v22, %v748_v21  ;;  %v6179_v29 = vpack.c.bf16 %v751_v28, %v750_v27  ;;  %v5236_v39 = vld [vmem:[%s7709_s3 + $0x30] sm:$0xff]  ;;  %v5237_v40 = vld [vmem:[%s7709_s3 + $0x38] sm:$0xff]  ;;  %s5221_s26 = sshll.u32 %s618_s25, 3 }
  0x26   : > { %v6695_v0 = vld [vmem:[%s624_s27] sm:$0xff]  ;;  %6172 = vmatprep.subr.bf16.mxu0 %v6532_v10  ;;  %v6191_v41 = vpack.c.bf16 %v5237_v40, %v5236_v39  ;;  %s620_s27 = scalar_lea.vmem [#allocation2], %s5221_s26  ;;  %s6472_s26 = sshll.u32 %s6536_s2, 4  ;;  %s6473_s26 = int_to_ptr.vmem [resolvable:$false] %s6472_s26 }
  0x27   : > { %v635_v1 = vsel %vm634_vm0, %v6695_v0, 0.0  ;;  %v5234_v36 = vld [vmem:[%s7709_s3 + $0x20] sm:$0xff]  ;;  %s5158_s23 = sshll.u32 %s620_s27, 4  ;;  %s7610_s23 = int_to_ptr.vmem [resolvable:$true] %s5158_s23 }
  0x28   : > { %636 = vadd.xlane.f32.xlu0 %v635_v1  ;;  %v6188_v38 = vpack.c.bf16 %v5235_v37, %v5234_v36  ;;  %v5225_v50 = vld [vmem:[%s7714_s4] ss:$0 sm:$0xff]  ;;  %v5239_v30 = vld [vmem:[%s7714_s4 + $0x1] ss:$0 sm:$0xff]  ;;  %p6475_p0 = scmp.lt.s32.totalorder %s7610_s23, %s6473_s26 }
  0x29   : > { %6174 = vmatpush3.bf16.msra.mxu0 %v6173_v13  ;;  %v5253_v36 = vld [vmem:[%s7663_s8 + $0x1] ss:$0 sm:$0xff] }
  0x2a   : > { %6175 = vmatprep.subr.bf16.mxu0 %v6532_v10  ;;  %s7615_s24 = scalar_lea.hbm %s7716_s30, %s5462_s28 }
  0xb5   : > { %v637_v2 = vpop.xlane.xlu0 %636 }
  0xb6   : > { %v639_v3 = vmul.f32 0.03125, %v637_v2  ;;  %v626_v2 = vlaneseq }
  0xb8   : > { %v640_v4 = vsub.f32 %v6695_v0, %v639_v3  ;;  %v627_v3 = vshrl.u32 %v626_v2, 7 }
  0xba   : > { %v641_v5 = vmul.f32 %v640_v4, %v640_v4 }
  0xbc   : > { %v642_v6 = vsel %vm634_vm0, %v641_v5, 0.0  ;;  %v6535_v5 = vmov -1e+09  }
  0xbd   : > { %643 = vadd.xlane.f32.xlu0 %v642_v6 }
 0x14a   : > { %v644_v15 = vpop.xlane.xlu0 %643 }
 0x14b   : > { %v645_v16 = vmul.f32 0.03125, %v644_v15 }
 0x14d   : > { %v646_v17 = vadd.f32 1e-05, %v645_v16 }
 0x14f   : > { %6422 = vrsqrt.f32 %v646_v17 }
 0x159   : > { %v6423_v18 = vpop.eup %6422 }
 0x15a   : > { %v648_v20 = vmul.f32 %v6423_v18, %v640_v4  ;;  %v629_v4 = vand.u32 127, %v626_v2 }
 0x15c   : > { %v655_v24 = vmul.f32 %v5223_v19, %v648_v20  ;;  %vm630_vm3 = vcmp.le.s32.totalorder %v629_v4, %v627_v3  ;;  %v5241_v19 = vld [vmem:[%s7711_s5 + $0x20] sm:$0xff]  ;;  %v5242_v20 = vld [vmem:[%s7711_s5 + $0x28] sm:$0xff] }
 0x15d   : > { %v6820_v6 = vsel %vm630_vm3, 0.0, %v6535_v5  ;;  %v6194_v22 = vpack.c.bf16 %v5242_v20, %v5241_v19  ;;  %v5275_v4 = vld [vmem:[%s7662_s7 + $0x40] sm:$0xff]  ;;  %v5276_v5 = vld [vmem:[%s7662_s7 + $0x48] sm:$0xff] }
 0x15e   : > { %v6733_v26 = vadd.f32 %v5224_v23, %v655_v24  ;;  %v5243_v24 = vld [vmem:[%s7711_s5 + $0x30] sm:$0xff] }
 0x160   : > { %5691 = vmatmul.mubr.msk.f32.vlgmr.msra.gmra.mrb[0].mxu0 %vm634_vm0, %v6733_v26 }
 0x161   : > { %6177 = vmatpush3.bf16.msra.mxu0 %v6176_v25  ;;  %5701 = vmatprep.mubr.msk.f32.mxu0 %vm6533_vm1, %v6534_v14  ;;  %v5244_v25 = vld [vmem:[%s7711_s5 + $0x38] sm:$0xff] }
 0x162   : > { %6178 = vmatprep.subr.bf16.mxu0 %v6532_v10  ;;  %v6197_v27 = vpack.c.bf16 %v5244_v25, %v5243_v24 }
 0x165   : > { %6180 = vmatpush3.bf16.msra.mxu0 %v6179_v29 }
 0x166   : > { %6181 = vmatprep.subr.bf16.mxu0 %v6532_v10 }
 0x168   : > { %5702 = vmatmul.mubr.msk.f32.vlgmr.msra.gmra.mrb[2].mxu0 %vm634_vm0, %v6733_v26 }
 0x169   : > { %6183 = vmatpush3.bf16.msra.mxu0 %v6182_v32  ;;  %5712 = vmatprep.mubr.msk.f32.mxu0 %vm6533_vm1, %v6534_v14 }
 0x16a   : > { %6184 = vmatprep.subr.bf16.mxu0 %v6532_v10 }
 0x16d   : > { %6186 = vmatpush3.bf16.msra.mxu0 %v6185_v35 }
 0x16e   : > { %6187 = vmatprep.subr.bf16.mxu0 %v6532_v10 }
 0x170   : > { %5713 = vmatmul.mubr.msk.f32.vlgmr.msra.gmra.mrb[4].mxu0 %vm634_vm0, %v6733_v26 }
 0x171   : > { %6189 = vmatpush3.bf16.msra.mxu0 %v6188_v38  ;;  %5733 = vmatprep.mubr.msk.f32.mxu0 %vm6533_vm1, %v6534_v14 }
 0x172   : > { %6190 = vmatprep.subr.bf16.mxu0 %v6532_v10 }
 0x175   : > { %6192 = vmatpush3.bf16.msra.mxu0 %v6191_v41 }
 0x176   : > { %6199 = vmatprep.subr.bf16.mxu0 %v6532_v10 }
 0x178   : > { %5734 = vmatmul.mubr.msk.f32.vlgmr.msra.gmra.mrb[6].mxu0 %vm634_vm0, %v6733_v26 }
 0x179   : > { %6201 = vmatpush3.bf16.msra.mxu0 %v6200_v44  ;;  %5755 = vmatprep.mubr.msk.f32.mxu0 %vm6533_vm1, %v6534_v14 }
 0x17a   : > { %6202 = vmatprep.subr.bf16.mxu0 %v6532_v10 }
 0x17d   : > { %6204 = vmatpush3.bf16.msra.mxu0 %v6203_v47 }
 0x17e   : > { %5768 = vmatprep.subr.mxu0 %v6534_v14 }
 0x180   : > { %5756 = vmatmul.mubr.msk.f32.vlgmr.msra.gmra.mrb[8].mxu0 %vm634_vm0, %v6733_v26 }
 0x181   : > { %5770 = vmatprep.mubr.msk.f32.mxu0 %vm6533_vm1, %v6534_v14 }
 0x233   : > { %v743_v48 = vpop.f32.mrb[0].mxu0 }
 0x234   : > { %v5692_v49 = vpop.f32.mrb[1].mxu0  ;;  %v744_v52 = vadd.f32 %v5225_v50, %v743_v48  ;;  %v5258_v48 = vld [vmem:[%s7664_s9 + $0x8] sm:$0xff] }
 0x235   : > { %5769 = vmatpush3.msra.mxu0 %v5258_v48  ;;  %v5289_v48 = vld [vmem:[%s7709_s3 + $0x70] sm:$0xff] }
 0x236   : > { %v747_v56 = vmul.f32 0.35355338, %v744_v52  ;;  %6205 = vmatprep.subr.bf16.mxu0 %v6532_v10  ;;  %v1071_v52 = vld [vmem:[%s7664_s9] sm:$0xff] }
 0x23b   : > { %v825_v53 = vpop.f32.mrb[2].mxu0 }
 0x23c   : > { %v826_v54 = vadd.f32 %v5227_v51, %v825_v53  ;;  %v5703_v55 = vpop.f32.mrb[3].mxu0  ;;  %v5268_v53 = vld [vmem:[%s7711_s5 + $0x40] sm:$0xff] }
 0x23e   : > { %5716 = vmatpush3.xpose.msk.msra.mxu1 %vm910_vm2, %v826_v54  ;;  %v5269_v54 = vld [vmem:[%s7711_s5 + $0x48] sm:$0xff] }
 0x23f   : > { %5720 = vmatprep.subr.mxu1 %v6534_v14  ;;  %v6212_v55 = vpack.c.bf16 %v5269_v54, %v5268_v53  ;;  %v5303_v54 = vld [vmem:[%s7662_s7 + $0x70] sm:$0xff] }
 0x241   : > { %5718 = vmatmul.mubr.msk.f32.vlgmr.msra.gmra.mrb[0].mxu1 %vm910_vm2, %v747_v56  ;;  %v5270_v56 = vld [vmem:[%s7711_s5 + $0x50] sm:$0xff] }
 0x242   : > { %5722 = vmatprep.mubr.msk.f32.mxu1 %vm6533_vm1, %v6534_v14 }
 0x243   : > { %v906_v58 = vpop.f32.mrb[4].mxu0 }
 0x244   : > { %v907_v59 = vadd.f32 %v5229_v57, %v906_v58  ;;  %v5714_v60 = vpop.f32.mrb[5].mxu0  ;;  %v5271_v57 = vld [vmem:[%s7711_s5 + $0x58] sm:$0xff] }
 0x245   : > { %v6215_v58 = vpack.c.bf16 %v5271_v57, %v5270_v56  ;;  %v5262_v60 = vld [vmem:[%s7709_s3 + $0x48] sm:$0xff]  ;;  %v5294_v57 = vld [vmem:[%s7711_s5 + $0x60] sm:$0xff] }
 0x246   : > { %5721 = vmatpush3.msra.mxu1 %v907_v59  ;;  %v5261_v59 = vld [vmem:[%s7709_s3 + $0x40] sm:$0xff] }
 0x247   : > { %6193 = vmatprep.subr.bf16.mxu1 %v6532_v10 }
 0x24b   : > { %v1151_v61 = vpop.f32.mrb[6].mxu0 }
 0x24c   : > { %v5735_v62 = vpop.f32.mrb[7].mxu0  ;;  %v1152_v32 = vadd.f32 %v5239_v30, %v1151_v61  ;;  %v6206_v61 = vpack.c.bf16 %v5262_v60, %v5261_v59  ;;  %v5296_v60 = vld [vmem:[%s7711_s5 + $0x70] sm:$0xff] }
 0x24d   : > { %v5263_v62 = vld [vmem:[%s7709_s3 + $0x50] sm:$0xff] }
 0x24e   : > { %v1155_v37 = vmul.f32 0.35355338, %v1152_v32 }
 0x253   : > { %v1318_v63 = vpop.f32.mrb[8].mxu0 }
 0x254   : > { %v5757_v1 = vpop.f32.mrb[9].mxu0  ;;  %v1319_v38 = vadd.f32 %v5253_v36, %v1318_v63  ;;  %v5264_v63 = vld [vmem:[%s7709_s3 + $0x58] sm:$0xff] }
 0x255   : > { %v6209_v3 = vpack.c.bf16 %v5264_v63, %v5263_v62 }
 0x314   : > { %v983_v7 = vpop.f32.mrb[0].mxu1 }
 0x315   : > { %v984_v8 = vadd.f32 %v983_v7, %v6820_v6  ;;  %v5719_v9 = vpop.f32.mrb[1].mxu1 }
 0x316   : > { %v6218_v9 = vpack.c.bf16 %v5276_v5, %v5275_v4 }
 0x317   : > { %v987_v11 = vsel %vm910_vm2, %v984_v8, -inf }
 0x318   : > { %988 = vmax.xlane.f32.xlu1 %v987_v11  ;;  %v5277_v11 = vld [vmem:[%s7662_s7 + $0x50] sm:$0xff] }
 0x3a5   : > { %v989_v12 = vpop.xlane.xlu1 %988 }
 0x3a6   : > { %v990_v13 = vsub.f32 %v984_v8, %v989_v12  ;;  %v5278_v12 = vld [vmem:[%s7662_s7 + $0x58] sm:$0xff] }
 0x3a8   : > { %v991_v15 = vmul.f32 1.442695, %v990_v13  ;;  %v5273_v13 = vld [vmem:[%s7661_s6 + $0x2] ss:$0 sm:$0xff] }
 0x3aa   : > { %6424 = vpow2.f32 %v991_v15  ;;  %v6221_v15 = vpack.c.bf16 %v5278_v12, %v5277_v11  ;;  %v5292_v11 = vld [vmem:[%s7714_s4 + $0x3] ss:$0 sm:$0xff] }
 0x3ab   : > { %v5299_v12 = vld [vmem:[%s7661_s6 + $0x3] ss:$0 sm:$0xff] }
 0x3b4   : > { %v6425_v16 = vpop.eup %6424 }
 0x3b5   : > { %v993_v17 = vsel %vm910_vm2, %v6425_v16, 0.0 }
 0x3b6   : > { %994 = vadd.xlane.f32.xlu1 %v993_v17 }
 0x443   : > { %v995_v18 = vpop.xlane.xlu1 %994 }
 0x444   : > { %6426 = vrcp.f32 %v995_v18 }
 0x44e   : > { %v6427_v21 = vpop.eup %6426 }
 0x44f   : > { %v997_v23 = vmul.f32 %v6427_v21, %v6425_v16 }
 0x451   : > { %5723 = vmatmul.mubr.msk.f32.vlgmr.msra.gmra.mrb[2].mxu1 %vm910_vm2, %v997_v23 }
 0x452   : > { %6195 = vmatpush3.bf16.msra.mxu1 %v6194_v22  ;;  %5744 = vmatprep.mubr.msk.f32.mxu1 %vm6533_vm1, %v6534_v14  ;;  %v5266_v22 = vld [vmem:[%s7714_s4 + $0x2] ss:$0 sm:$0xff] }
 0x453   : > { %6196 = vmatprep.subr.bf16.mxu1 %v6532_v10 }
 0x456   : > { %6198 = vmatpush3.bf16.msra.mxu1 %v6197_v27 }
 0x457   : > { %5758 = vmatprep.subr.mxu1 %v6534_v14 }
 0x459   : > { %5745 = vmatmul.mubr.msk.f32.vlgmr.msra.gmra.mrb[4].mxu1 %vm634_vm0, %v6733_v26 }
 0x45a   : > { %5760 = vmatprep.mubr.msk.f32.mxu1 %vm6533_vm1, %v6534_v14 }
 0x524   : > { %v1067_v28 = vpop.f32.mrb[2].mxu1 }
 0x525   : > { %v5724_v29 = vpop.f32.mrb[3].mxu1 }
 0x52c   : > { %v1235_v33 = vpop.f32.mrb[4].mxu1 }
 0x52d   : > { %v1236_v34 = vadd.f32 %v5246_v31, %v1235_v33  ;;  %v5746_v35 = vpop.f32.mrb[5].mxu1 }
 0x52f   : > { %5759 = vmatpush3.xpose.msk.msra.mxu1 %vm910_vm2, %v1236_v34 }
 0x530   : > { %5763 = vmatprep.subr.mxu1 %v6534_v14 }
 0x532   : > { %5761 = vmatmul.mubr.msk.f32.vlgmr.msra.gmra.mrb[6].mxu1 %vm910_vm2, %v1155_v37 }
 0x533   : > { %5764 = vmatpush3.msra.mxu1 %v1319_v38  ;;  %5765 = vmatprep.mubr.msk.f32.mxu1 %vm6533_vm1, %v6534_v14 }
 0x534   : > { %5773 = vmatprep.subr.mxu1 %v6534_v14 }
 0x605   : > { %v1394_v39 = vpop.f32.mrb[6].mxu1 }
 0x606   : > { %v1395_v40 = vadd.f32 %v1394_v39, %v6820_v6  ;;  %v5762_v41 = vpop.f32.mrb[7].mxu1 }
 0x607   : > { %v5285_v41 = vld [vmem:[%s7664_s9 + $0x10] sm:$0xff] }
 0x608   : > { %v1398_v42 = vsel %vm910_vm2, %v1395_v40, -inf }
 0x609   : > { %1399 = vmax.xlane.f32.xlu0 %v1398_v42 }
 0x696   : > { %v1400_v43 = vpop.xlane.xlu0 %1399 }
 0x697   : > { %v1401_v44 = vsub.f32 %v1395_v40, %v1400_v43  ;;  %v5287_v43 = vld [vmem:[%s7709_s3 + $0x60] sm:$0xff] }
 0x699   : > { %v1402_v45 = vmul.f32 1.442695, %v1401_v44  ;;  %v5288_v44 = vld [vmem:[%s7709_s3 + $0x68] sm:$0xff] }
 0x69b   : > { %6428 = vpow2.f32 %v1402_v45 }
 0x6a5   : > { %v6429_v46 = vpop.eup %6428 }
 0x6a6   : > { %v1404_v47 = vsel %vm910_vm2, %v6429_v46, 0.0 }
 0x6a7   : > { %1405 = vadd.xlane.f32.xlu1 %v1404_v47 }
 0x734   : > { %v1406_v49 = vpop.xlane.xlu1 %1405 }
 0x735   : > { %6430 = vrcp.f32 %v1406_v49  ;;  %v5290_v49 = vld [vmem:[%s7709_s3 + $0x78] sm:$0xff] }
 0x73f   : > { %v6431_v50 = vpop.eup %6430 }
 0x740   : > { %v1408_v51 = vmul.f32 %v6431_v50, %v6429_v46  ;;  %v6224_v46 = vpack.c.bf16 %v5288_v44, %v5287_v43  ;;  %v6227_v50 = vpack.c.bf16 %v5290_v49, %v5289_v48  ;;  %v2640_v48 = vld [vmem:[%s7668_s13] sm:$0xff] }
 0x742   : > { %5766 = vmatmul.mubr.msk.f32.vlgmr.msra.gmra.mrb[8].mxu1 %vm910_vm2, %v1408_v51  ;;  %v5301_v51 = vld [vmem:[%s7662_s7 + $0x60] sm:$0xff] }
 0x743   : > { %5774 = vmatpush3.msra.mxu1 %v1071_v52  ;;  %5775 = vmatprep.mubr.msk.f32.mxu1 %vm6533_vm1, %v6534_v14  ;;  %v5302_v52 = vld [vmem:[%s7662_s7 + $0x68] sm:$0xff] }
 0x744   : > { %6211 = vmatprep.subr.bf16.mxu1 %v6532_v10  ;;  %v6236_v53 = vpack.c.bf16 %v5302_v52, %v5301_v51  ;;  %v2643_v51 = vld [vmem:[%s7668_s13 + $0x18] sm:$0xff] }
 0x746   : > { %5776 = vmatmul.mubr.msk.f32.vlgmr.msra.gmra.mrb[10].mxu1 %vm910_vm2, %v1067_v28  ;;  %v5280_v28 = vld [vmem:[%s7663_s8 + $0x2] ss:$0 sm:$0xff] }
 0x747   : > { %6213 = vmatpush3.bf16.msra.mxu1 %v6212_v55  ;;  %5797 = vmatprep.mubr.msk.f32.mxu1 %vm6533_vm1, %v6534_v14  ;;  %v5304_v55 = vld [vmem:[%s7662_s7 + $0x78] sm:$0xff] }
 0x748   : > { %6214 = vmatprep.subr.bf16.mxu1 %v6532_v10  ;;  %v6239_v56 = vpack.c.bf16 %v5304_v55, %v5303_v54  ;;  %v2734_v54 = vld [vmem:[%s7670_s15 + $0x8] sm:$0xff] }
 0x74b   : > { %6216 = vmatpush3.bf16.msra.mxu1 %v6215_v58  ;;  %v5295_v58 = vld [vmem:[%s7711_s5 + $0x68] sm:$0xff] }
 0x74c   : > { %5811 = vmatprep.subr.mxu1 %v6534_v14  ;;  %v6230_v59 = vpack.c.bf16 %v5295_v58, %v5294_v57 }
 0x74e   : > { %5798 = vmatmul.mubr.msk.f32.vlgmr.msra.gmra.mrb[12].mxu1 %vm634_vm0, %v6733_v26 }
 0x74f   : > { %5813 = vmatprep.mubr.msk.f32.mxu1 %vm6533_vm1, %v6534_v14 }
 0x815   : > { %v1478_v1 = vpop.f32.mrb[8].mxu1 }
 0x816   : > { %v5767_v2 = vpop.f32.mrb[9].mxu1  ;;  %5771 = vmatmul.mubr.msk.f32.vlgmr.msra.gmra.mrb[10].mxu0 %vm910_vm2, %v1478_v1 }
 0x817   : > { %6207 = vmatpush3.bf16.msra.mxu0 %v6206_v61  ;;  %5786 = vmatprep.mubr.msk.f32.mxu0 %vm6533_vm1, %v6534_v14  ;;  %v5297_v61 = vld [vmem:[%s7711_s5 + $0x78] sm:$0xff] }
 0x818   : > { %6208 = vmatprep.subr.bf16.mxu0 %v6532_v10  ;;  %v6233_v1 = vpack.c.bf16 %v5297_v61, %v5296_v60  ;;  %v5314_v60 = vld [vmem:[%s7666_s11] ss:$0 sm:$0xff] }
 0x819   : > { %v1626_v7 = vpop.f32.mrb[10].mxu1 }
 0x81a   : > { %v5777_v8 = vpop.f32.mrb[11].mxu1 }
 0x81b   : > { %6210 = vmatpush3.bf16.msra.mxu0 %v6209_v3 }
 0x81c   : > { %6217 = vmatprep.subr.bf16.mxu0 %v6532_v10 }
 0x81e   : > { %5787 = vmatmul.mubr.msk.f32.vlgmr.msra.gmra.mrb[12].mxu0 %vm634_vm0, %v6733_v26 }
 0x81f   : > { %6219 = vmatpush3.bf16.msra.mxu0 %v6218_v9  ;;  %5808 = vmatprep.mubr.msk.f32.mxu0 %vm6533_vm1, %v6534_v14 }
 0x820   : > { %6220 = vmatprep.subr.bf16.mxu0 %v6532_v10 }
 0x821   : > { %v1793_v16 = vpop.f32.mrb[12].mxu1 }
 0x822   : > { %v1794_v17 = vadd.f32 %v5273_v13, %v1793_v16  ;;  %v5799_v18 = vpop.f32.mrb[13].mxu1 }
 0x823   : > { %6222 = vmatpush3.bf16.msra.mxu0 %v6221_v15 }
 0x824   : > { %5812 = vmatpush3.xpose.msk.msra.mxu1 %vm910_vm2, %v1794_v17  ;;  %5821 = vmatprep.subr.mxu0 %v6534_v14  ;;  %v5306_v17 = vld [vmem:[%s7663_s8 + $0x3] ss:$0 sm:$0xff] }
 0x825   : > { %5816 = vmatprep.subr.mxu1 %v6534_v14 }
 0x826   : > { %5809 = vmatmul.mubr.msk.f32.vlgmr.msra.gmra.mrb[14].mxu0 %vm634_vm0, %v6733_v26 }
 0x827   : > { %5823 = vmatprep.mubr.msk.f32.mxu0 %vm6533_vm1, %v6534_v14  ;;  %5822 = vmatpush3.msra.mxu0 %v5285_v41 }
 0x828   : > { %6229 = vmatprep.subr.bf16.mxu0 %v6532_v10 }
 0x8e9   : > { %v1553_v19 = vpop.f32.mrb[10].mxu0 }
 0x8ea   : > { %v6940_v20 = vadd.f32 %v1626_v7, %v1553_v19  ;;  %v5772_v21 = vpop.f32.mrb[11].mxu0 }
 0x8f1   : > { %v1709_v23 = vpop.f32.mrb[12].mxu0 }
 0x8f2   : > { %v1710_v24 = vadd.f32 %v5266_v22, %v1709_v23  ;;  %v5788_v25 = vpop.f32.mrb[13].mxu0 }
 0x8f4   : > { %v1713_v27 = vmul.f32 0.35355338, %v1710_v24 }
 0x8f6   : > { %5814 = vmatmul.mubr.msk.f32.vlgmr.msra.gmra.mrb[14].mxu1 %vm910_vm2, %v1713_v27 }
 0x8f7   : > { %5818 = vmatprep.mubr.msk.f32.mxu1 %vm6533_vm1, %v6534_v14 }
 0x8f9   : > { %v1876_v29 = vpop.f32.mrb[14].mxu0 }
 0x8fa   : > { %v1877_v30 = vadd.f32 %v5280_v28, %v1876_v29  ;;  %v5810_v31 = vpop.f32.mrb[15].mxu0 }
 0x8fc   : > { %5817 = vmatpush3.msra.mxu1 %v1877_v30  ;;  %v5311_v30 = vld [vmem:[%s7664_s9 + $0x18] sm:$0xff] }
 0x8fd   : > { %6223 = vmatprep.subr.bf16.mxu1 %v6532_v10 }
 0x9c9   : > { %v1952_v32 = vpop.f32.mrb[14].mxu1 }
 0x9ca   : > { %v1953_v33 = vadd.f32 %v1952_v32, %v6820_v6  ;;  %v5815_v34 = vpop.f32.mrb[15].mxu1 }
 0x9cc   : > { %v1956_v35 = vsel %vm910_vm2, %v1953_v33, -inf }
 0x9cd   : > { %1957 = vmax.xlane.f32.xlu0 %v1956_v35 }
 0xa5a   : > { %v1958_v36 = vpop.xlane.xlu0 %1957 }
 0xa5b   : > { %v1959_v37 = vsub.f32 %v1953_v33, %v1958_v36 }
 0xa5d   : > { %v1960_v38 = vmul.f32 1.442695, %v1959_v37 }
 0xa5f   : > { %6432 = vpow2.f32 %v1960_v38 }
 0xa69   : > { %v6433_v39 = vpop.eup %6432 }
 0xa6a   : > { %v1962_v40 = vsel %vm910_vm2, %v6433_v39, 0.0 }
 0xa6b   : > { %1963 = vadd.xlane.f32.xlu1 %v1962_v40 }
 0xaf8   : > { %v1964_v42 = vpop.xlane.xlu1 %1963 }
 0xaf9   : > { %6434 = vrcp.f32 %v1964_v42 }
 0xb03   : > { %v6435_v45 = vpop.eup %6434 }
 0xb04   : > { %v1966_v47 = vmul.f32 %v6435_v45, %v6433_v39  ;;  %v5313_v39 = vld [vmem:[%s7665_s10] ss:$0 sm:$0xff] }
 0xb06   : > { %5819 = vmatmul.mubr.msk.f32.vlgmr.msra.gmra.mrb[16].mxu1 %vm910_vm2, %v1966_v47 }
 0xb07   : > { %6225 = vmatpush3.bf16.msra.mxu1 %v6224_v46  ;;  %5834 = vmatprep.mubr.msk.f32.mxu1 %vm6533_vm1, %v6534_v14 }
 0xb08   : > { %6226 = vmatprep.subr.bf16.mxu1 %v6532_v10 }
 0xb0b   : > { %6228 = vmatpush3.bf16.msra.mxu1 %v6227_v50  ;;  %v2642_v50 = vld [vmem:[%s7668_s13 + $0x10] sm:$0xff] }
 0xb0c   : > { %6235 = vmatprep.subr.bf16.mxu1 %v6532_v10  ;;  %v6245_v52 = vpack.c.bf16 %v2643_v51, %v2642_v50  ;;  %v5323_v50 = vld [vmem:[%s7709_s3 + $0x80] sm:$0xff] }
 0xb0e   : > { %5835 = vmatmul.mubr.msk.f32.vlgmr.msra.gmra.mrb[18].mxu1 %vm634_vm0, %v6733_v26 }
 0xb0f   : > { %6237 = vmatpush3.bf16.msra.mxu1 %v6236_v53  ;;  %5856 = vmatprep.mubr.msk.f32.mxu1 %vm6533_vm1, %v6534_v14  ;;  %v2733_v53 = vld [vmem:[%s7670_s15] sm:$0xff] }
 0xb10   : > { %6238 = vmatprep.subr.bf16.mxu1 %v6532_v10  ;;  %v6248_v55 = vpack.c.bf16 %v2734_v54, %v2733_v53  ;;  %v5326_v53 = vld [vmem:[%s7709_s3 + $0x98] sm:$0xff] }
 0xb13   : > { %6240 = vmatpush3.bf16.msra.mxu1 %v6239_v56 }
 0xb14   : > { %5869 = vmatprep.subr.mxu1 %v6534_v14 }
 0xb16   : > { %5857 = vmatmul.mubr.msk.f32.vlgmr.msra.gmra.mrb[20].mxu1 %vm634_vm0, %v6733_v26 }
 0xb17   : > { %5871 = vmatprep.mubr.msk.f32.mxu1 %vm6533_vm1, %v6534_v14  ;;  %5870 = vmatpush3.msra.mxu1 %v5311_v30 }
 0xb18   : > { %6247 = vmatprep.subr.bf16.mxu1 %v6532_v10 }
 0xbd9   : > { %v2036_v62 = vpop.f32.mrb[16].mxu1 }
 0xbda   : > { %v5820_v63 = vpop.f32.mrb[17].mxu1  ;;  %5824 = vmatmul.mubr.msk.f32.vlgmr.msra.gmra.mrb[16].mxu0 %vm910_vm2, %v2036_v62  ;;  %v5315_v62 = vld [vmem:[%s7667_s12] ss:$0 sm:$0xff] }
 0xbdb   : > { %6231 = vmatpush3.bf16.msra.mxu0 %v6230_v59  ;;  %5845 = vmatprep.mubr.msk.f32.mxu0 %vm6533_vm1, %v6534_v14 }
 0xbdc   : > { %6232 = vmatprep.subr.bf16.mxu0 %v6532_v10 }
 0xbdf   : > { %6234 = vmatpush3.bf16.msra.mxu0 %v6233_v1 }
 0xbe0   : > { %5859 = vmatprep.subr.mxu0 %v6534_v14 }
 0xbe1   : > { %v2195_v2 = vpop.f32.mrb[18].mxu1 }
 0xbe2   : > { %v5836_v3 = vpop.f32.mrb[19].mxu1  ;;  %5846 = vmatmul.mubr.msk.f32.vlgmr.msra.gmra.mrb[18].mxu0 %vm634_vm0, %v6733_v26  ;;  %v2196_v13 = vadd.f32 %v5292_v11, %v2195_v2  ;;  %v2735_v2 = vld [vmem:[%s7670_s15 + $0x10] sm:$0xff]  ;;  %v2740_v11 = vld [vmem:[%s7670_s15 + $0x38] sm:$0xff] }
 0xbe3   : > { %5861 = vmatprep.mubr.msk.f32.mxu0 %vm6533_vm1, %v6534_v14  ;;  %v2736_v3 = vld [vmem:[%s7670_s15 + $0x18] sm:$0xff] }
 0xbe4   : > { %v2199_v18 = vmul.f32 0.35355338, %v2196_v13  ;;  %v2741_v13 = vld [vmem:[%s7670_s15 + $0x40] sm:$0xff] }
 0xbe9   : > { %v2362_v4 = vpop.f32.mrb[20].mxu1 }
 0xbea   : > { %v5858_v5 = vpop.f32.mrb[21].mxu1  ;;  %v2363_v19 = vadd.f32 %v5306_v17, %v2362_v4  ;;  %v6251_v4 = vpack.c.bf16 %v2736_v3, %v2735_v2  ;;  %v2744_v17 = vld [vmem:[%s7670_s15 + $0x58] sm:$0xff] }
 0xbeb   : > { %v2737_v5 = vld [vmem:[%s7670_s15 + $0x20] sm:$0xff] }
 0xcad   : > { %v2111_v7 = vpop.f32.mrb[16].mxu0 }
 0xcae   : > { %v2115_v8 = vadd.f32 %v2111_v7, %v6940_v20  ;;  %v5825_v9 = vpop.f32.mrb[17].mxu0  ;;  %v2738_v7 = vld [vmem:[%s7670_s15 + $0x28] sm:$0xff] }
 0xcaf   : > { %v2739_v9 = vld [vmem:[%s7670_s15 + $0x30] sm:$0xff] }
 0xcb5   : > { %v2279_v15 = vpop.f32.mrb[18].mxu0 }
 0xcb6   : > { %v2280_v26 = vadd.f32 %v5299_v12, %v2279_v15  ;;  %v5847_v16 = vpop.f32.mrb[19].mxu0  ;;  %v6257_v12 = vpack.c.bf16 %v2740_v11, %v2739_v9  ;;  %v2742_v15 = vld [vmem:[%s7670_s15 + $0x48] sm:$0xff] }
 0xcb7   : > { %v2743_v16 = vld [vmem:[%s7670_s15 + $0x50] sm:$0xff]  ;;  %v5338_v9 = vld [vmem:[%s7662_s7 + $0x88] sm:$0xff] }
 0xcb8   : > { %5860 = vmatpush3.xpose.msk.msra.mxu0 %vm910_vm2, %v2280_v26  ;;  %v6260_v26 = vpack.c.bf16 %v2742_v15, %v2741_v13  ;;  %v5340_v13 = vld [vmem:[%s7662_s7 + $0x98] sm:$0xff] }
 0xcb9   : > { %5864 = vmatprep.subr.mxu0 %v6534_v14 }
 0xcbb   : > { %5862 = vmatmul.mubr.msk.f32.vlgmr.msra.gmra.mrb[20].mxu0 %vm910_vm2, %v2199_v18  ;;  %v6263_v18 = vpack.c.bf16 %v2744_v17, %v2743_v16  ;;  %v5328_v17 = vld [vmem:[%s7714_s4 + $0x4] ss:$0 sm:$0xff] }
 0xcbc   : > { %5865 = vmatpush3.msra.mxu0 %v2363_v19  ;;  %5866 = vmatprep.mubr.msk.f32.mxu0 %vm6533_vm1, %v6534_v14  ;;  %v2745_v19 = vld [vmem:[%s7670_s15 + $0x60] sm:$0xff] }
 0xcbd   : > { %6241 = vmatprep.subr.bf16.mxu0 %v6532_v10 }
 0xd8e   : > { %v2438_v20 = vpop.f32.mrb[20].mxu0 }
 0xd8f   : > { %v2439_v21 = vadd.f32 %v2438_v20, %v6820_v6  ;;  %v5863_v22 = vpop.f32.mrb[21].mxu0  ;;  %v2746_v20 = vld [vmem:[%s7670_s15 + $0x68] sm:$0xff] }
 0xd90   : > { %v2747_v22 = vld [vmem:[%s7670_s15 + $0x70] sm:$0xff] }
 0xd91   : > { %v2442_v23 = vsel %vm910_vm2, %v2439_v21, -inf }
 0xd92   : > { %2443 = vmax.xlane.f32.xlu0 %v2442_v23  ;;  %v2748_v23 = vld [vmem:[%s7670_s15 + $0x78] sm:$0xff] }
 0xe1f   : > { %v2444_v24 = vpop.xlane.xlu0 %2443 }
 0xe20   : > { %v2445_v25 = vsub.f32 %v2439_v21, %v2444_v24  ;;  %v6266_v21 = vpack.c.bf16 %v2746_v20, %v2745_v19  ;;  %v6269_v24 = vpack.c.bf16 %v2748_v23, %v2747_v22  ;;  %v5349_v22 = vld [vmem:[%s7709_s3 + $0xa8] sm:$0xff] }
 0xe22   : > { %v2446_v27 = vmul.f32 1.442695, %v2445_v25  ;;  %v5316_v25 = vld [vmem:[%s7669_s14] ss:$0 sm:$0xff] }
 0xe24   : > { %6436 = vpow2.f32 %v2446_v27 }
 0xe2e   : > { %v6437_v28 = vpop.eup %6436 }
 0xe2f   : > { %v2448_v29 = vsel %vm910_vm2, %v6437_v28, 0.0 }
 0xe30   : > { %2449 = vadd.xlane.f32.xlu1 %v2448_v29 }
 0xebd   : > { %v2450_v31 = vpop.xlane.xlu1 %2449 }
 0xebe   : > { %6438 = vrcp.f32 %v2450_v31 }
 0xec8   : > { %v6439_v32 = vpop.eup %6438 }
 0xec9   : > { %v2452_v33 = vmul.f32 %v6439_v32, %v6437_v28 }
 0xecb   : > { %5867 = vmatmul.mubr.msk.f32.vlgmr.msra.gmra.mrb[22].mxu0 %vm910_vm2, %v2452_v33 }
 0xecc   : > { %5882 = vmatprep.mubr.msk.f32.mxu0 %vm6533_vm1, %v6534_v14 }
 0xf9e   : > { %v2522_v34 = vpop.f32.mrb[22].mxu0 }
 0xf9f   : > { %v5868_v35 = vpop.f32.mrb[23].mxu0  ;;  %5872 = vmatmul.mubr.msk.f32.vlgmr.msra.gmra.mrb[22].mxu1 %vm910_vm2, %v2522_v34 }
 0xfa0   : > { %5917 = vmatprep.mubr.msk.f32.mxu1 %vm6533_vm1, %v6534_v14  ;;  %6249 = vmatpush3.bf16.msra.mxu1 %v6248_v55 }
 0xfa1   : > { %6250 = vmatprep.subr.bf16.mxu1 %v6532_v10 }
 0xfa4   : > { %6252 = vmatpush3.bf16.msra.mxu1 %v6251_v4  ;;  %v5332_v4 = vld [vmem:[%s7711_s5 + $0x90] sm:$0xff] }
 0xfa5   : > { %6253 = vmatprep.subr.bf16.mxu1 %v6532_v10 }
0x1072   : > { %v2597_v36 = vpop.f32.mrb[22].mxu1 }
0x1073   : > { %v2601_v37 = vadd.f32 %v2597_v36, %v2115_v8  ;;  %v5873_v38 = vpop.f32.mrb[23].mxu1  ;;  %v6254_v8 = vpack.c.bf16 %v2738_v7, %v2737_v5  ;;  %v5333_v5 = vld [vmem:[%s7711_s5 + $0x98] sm:$0xff] }
0x1074   : > { %v6281_v7 = vpack.c.bf16 %v5333_v5, %v5332_v4  ;;  %v5360_v4 = vld [vmem:[%s7661_s6 + $0x5] ss:$0 sm:$0xff] }
0x1075   : > { %v2602_v40 = vadd.f32 %v2601_v37, %v6695_v0  ;;  %v2641_v0 = vld [vmem:[%s7668_s13 + $0x8] sm:$0xff]  ;;  %6255 = vmatpush3.bf16.msra.mxu1 %v6254_v8  ;;  %v5337_v8 = vld [vmem:[%s7662_s7 + $0x80] sm:$0xff] }
0x1076   : > { %v6242_v49 = vpack.c.bf16 %v2641_v0, %v2640_v48  ;;  %6256 = vmatprep.subr.bf16.mxu1 %v6532_v10  ;;  %v6284_v11 = vpack.c.bf16 %v5338_v9, %v5337_v8 }
0x1077   : > { %v7052_v41 = vadd.f32 %v5313_v39, %v2602_v40  ;;  %v5318_v40 = vld [vmem:[%s7671_s16] ss:$0 sm:$0xff] }
0x1078   : > { %6243 = vmatpush3.bf16.msra.mxu0 %v6242_v49 }
0x1079   : > { %v2613_v42 = vsel %vm634_vm0, %v7052_v41, 0.0  ;;  %6244 = vmatprep.subr.bf16.mxu0 %v6532_v10  ;;  %6258 = vmatpush3.bf16.msra.mxu1 %v6257_v12  ;;  %v5339_v12 = vld [vmem:[%s7662_s7 + $0x90] sm:$0xff] }
0x107a   : > { %2614 = vadd.xlane.f32.xlu0 %v2613_v42  ;;  %6259 = vmatprep.subr.bf16.mxu1 %v6532_v10  ;;  %v6287_v15 = vpack.c.bf16 %v5340_v13, %v5339_v12 }
0x107c   : > { %6246 = vmatpush3.bf16.msra.mxu0 %v6245_v52  ;;  %v5325_v52 = vld [vmem:[%s7709_s3 + $0x90] sm:$0xff] }
0x107d   : > { %6271 = vmatprep.subr.bf16.mxu0 %v6532_v10  ;;  %6261 = vmatpush3.bf16.msra.mxu1 %v6260_v26  ;;  %v6275_v54 = vpack.c.bf16 %v5326_v53, %v5325_v52 }
0x107e   : > { %6262 = vmatprep.subr.bf16.mxu1 %v6532_v10 }
0x1081   : > { %6264 = vmatpush3.bf16.msra.mxu1 %v6263_v18  ;;  %v5335_v18 = vld [vmem:[%s7661_s6 + $0x4] ss:$0 sm:$0xff] }
0x1082   : > { %6265 = vmatprep.subr.bf16.mxu1 %v6532_v10 }
0x1085   : > { %6267 = vmatpush3.bf16.msra.mxu1 %v6266_v21  ;;  %v5348_v21 = vld [vmem:[%s7709_s3 + $0xa0] sm:$0xff] }
0x1086   : > { %6268 = vmatprep.subr.bf16.mxu1 %v6532_v10 }
0x1089   : > { %6270 = vmatpush3.bf16.msra.mxu1 %v6269_v24 }
0x108a   : > { %5958 = vmatprep.subr.mxu1 %v6534_v14 }
0x1107   : > { %v2615_v43 = vpop.xlane.xlu0 %2614 }
0x1108   : > { %v2616_v44 = vmul.f32 0.03125, %v2615_v43 }
0x110a   : > { %v2617_v45 = vsub.f32 %v7052_v41, %v2616_v44 }
0x110c   : > { %v2618_v46 = vmul.f32 %v2617_v45, %v2617_v45 }
0x110e   : > { %v2619_v47 = vsel %vm634_vm0, %v2618_v46, 0.0 }
0x110f   : > { %2620 = vadd.xlane.f32.xlu1 %v2619_v47 }
0x119c   : > { %v2621_v56 = vpop.xlane.xlu1 %2620 }
0x119d   : > { %v2622_v57 = vmul.f32 0.03125, %v2621_v56 }
0x119f   : > { %v2623_v58 = vadd.f32 1e-05, %v2622_v57 }
0x11a1   : > { %6440 = vrsqrt.f32 %v2623_v58 }
0x11ab   : > { %v6441_v59 = vpop.eup %6440 }
0x11ac   : > { %v2625_v61 = vmul.f32 %v6441_v59, %v2617_v45  ;;  %v5321_v59 = vld [vmem:[%s7710_s29 + $0x1] ss:$0 sm:$0xff] }
0x11ae   : > { %v2632_v63 = vmul.f32 %v5314_v60, %v2625_v61  ;;  %v5330_v61 = vld [vmem:[%s7711_s5 + $0x80] sm:$0xff] }
0x11b0   : > { %v2639_v1 = vadd.f32 %v5315_v62, %v2632_v63  ;;  %v5331_v62 = vld [vmem:[%s7711_s5 + $0x88] sm:$0xff]  ;;  %v5322_v63 = vld [vmem:[%s7713_s20 + $0x1] ss:$0 sm:$0xff] }
0x11b1   : > { %v6278_v2 = vpack.c.bf16 %v5331_v62, %v5330_v61  ;;  %v5358_v61 = vld [vmem:[%s7711_s5 + $0xb8] sm:$0xff] }
0x11b2   : > { %5883 = vmatmul.mubr.msk.f32.vlgmr.msra.gmra.mrb[24].mxu0 %vm634_vm0, %v2639_v1 }
0x11b3   : > { %5928 = vmatprep.mubr.msk.f32.mxu0 %vm6533_vm1, %v6534_v14 }
0x1285   : > { %v2720_v27 = vpop.f32.mrb[24].mxu0 }
0x1286   : > { %v2721_v28 = vadd.f32 %v5316_v25, %v2720_v27  ;;  %v5884_v29 = vpop.f32.mrb[25].mxu0  ;;  %v6290_v25 = vpack.c.bf16 %v5349_v22, %v5348_v21 }
0x1287   : > { %v5351_v29 = vld [vmem:[%s7709_s3 + $0xb8] sm:$0xff] }
0x1288   : > { %v2725_v30 = vmul.f32 0.044715, %v2721_v28  ;;  %v2724_v36 = vmul.f32 0.5, %v2721_v28 }
0x128a   : > { %v2726_v31 = vmul.f32 %v2725_v30, %v2721_v28  ;;  %v5342_v30 = vld [vmem:[%s7663_s8 + $0x4] ss:$0 sm:$0xff] }
0x128c   : > { %v2727_v32 = vmul.f32 %v2726_v31, %v2721_v28 }
0x128e   : > { %v2728_v33 = vadd.f32 %v2727_v32, %v2721_v28  ;;  %v5350_v28 = vld [vmem:[%s7709_s3 + $0xb0] sm:$0xff] }
0x128f   : > { %v6293_v31 = vpack.c.bf16 %v5351_v29, %v5350_v28  ;;  %v5347_v28 = vld [vmem:[%s7664_s9 + $0x20] sm:$0xff] }
0x1290   : > { %v2729_v34 = vmul.f32 0.7978846, %v2728_v33  ;;  %v5362_v33 = vld [vmem:[%s7662_s7 + $0xa0] sm:$0xff] }
0x1291   : > { %v5382_v29 = vld [vmem:[%s7711_s5 + $0xc0] sm:$0xff] }
0x1292   : > { %6442 = vtanh.f32 %v2729_v34  ;;  %v5363_v34 = vld [vmem:[%s7662_s7 + $0xa8] sm:$0xff] }
0x129c   : > { %v6443_v35 = vpop.eup %6442 }
0x129d   : > { %v2731_v37 = vadd.f32 1.0, %v6443_v35 }
0x129f   : > { %v2732_v38 = vmul.f32 %v2731_v37, %v2724_v36  ;;  %v6302_v37 = vpack.c.bf16 %v5363_v34, %v5362_v33  ;;  %v5385_v33 = vld [vmem:[%s7711_s5 + $0xd8] sm:$0xff] }
0x12a1   : > { %5918 = vmatmul.mubr.f32.vlgmr.msra.gmra.mrb[24].mxu1 %v2732_v38  ;;  %v5364_v38 = vld [vmem:[%s7662_s7 + $0xb0] sm:$0xff] }
0x12a2   : > { %5960 = vmatprep.mubr.msk.f32.mxu1 %vm6533_vm1, %v6534_v14 }
0x1374   : > { %v2815_v39 = vpop.f32.mrb[24].mxu1 }
0x1375   : > { %v2819_v42 = vadd.f32 %v2815_v39, %v7052_v41  ;;  %v5919_v43 = vpop.f32.mrb[25].mxu1  ;;  %v5324_v41 = vld [vmem:[%s7709_s3 + $0x88] sm:$0xff]  ;;  %v5365_v39 = vld [vmem:[%s7662_s7 + $0xb8] sm:$0xff] }
0x1376   : > { %v6272_v51 = vpack.c.bf16 %v5324_v41, %v5323_v50 }
0x1377   : > { %v7146_v44 = vadd.f32 %v5318_v40, %v2819_v42  ;;  %v6305_v40 = vpack.c.bf16 %v5365_v39, %v5364_v38  ;;  %v5377_v38 = vld [vmem:[%s7709_s3 + $0xd0] sm:$0xff]  ;;  %v5378_v39 = vld [vmem:[%s7709_s3 + $0xd8] sm:$0xff] }
0x1378   : > { %6273 = vmatpush3.bf16.msra.mxu0 %v6272_v51 }
0x1379   : > { %v2832_v45 = vsel %vm634_vm0, %v7146_v44, 0.0  ;;  %6274 = vmatprep.subr.bf16.mxu0 %v6532_v10 }
0x137a   : > { %2833 = vadd.xlane.f32.xlu0 %v2832_v45 }
0x137c   : > { %6276 = vmatpush3.bf16.msra.mxu0 %v6275_v54 }
0x137d   : > { %6277 = vmatprep.subr.bf16.mxu0 %v6532_v10 }
0x1407   : > { %v2834_v46 = vpop.xlane.xlu0 %2833 }
0x1408   : > { %v2835_v47 = vmul.f32 0.03125, %v2834_v46 }
0x140a   : > { %v2836_v48 = vsub.f32 %v7146_v44, %v2835_v47 }
0x140c   : > { %v2837_v0 = vmul.f32 %v2836_v48, %v2836_v48 }
0x140e   : > { %v2838_v49 = vsel %vm634_vm0, %v2837_v0, 0.0 }
0x140f   : > { %2839 = vadd.xlane.f32.xlu1 %v2838_v49 }
0x149c   : > { %v2840_v55 = vpop.xlane.xlu1 %2839 }
0x149d   : > { %v2841_v56 = vmul.f32 0.03125, %v2840_v55  ;;  %v5355_v55 = vld [vmem:[%s7711_s5 + $0xa0] sm:$0xff] }
0x149f   : > { %v2842_v57 = vadd.f32 1e-05, %v2841_v56  ;;  %v5356_v56 = vld [vmem:[%s7711_s5 + $0xa8] sm:$0xff] }
0x14a1   : > { %6444 = vrsqrt.f32 %v2842_v57 }
0x14ab   : > { %v6445_v58 = vpop.eup %6444 }
0x14ac   : > { %v2844_v60 = vmul.f32 %v6445_v58, %v2836_v48  ;;  %v6296_v58 = vpack.c.bf16 %v5356_v56, %v5355_v55 }
0x14ae   : > { %v2851_v1 = vmul.f32 %v5321_v59, %v2844_v60  ;;  %v5357_v60 = vld [vmem:[%s7711_s5 + $0xb0] sm:$0xff] }
0x14af   : > { %v6299_v62 = vpack.c.bf16 %v5358_v61, %v5357_v60 }
0x14b0   : > { %v7178_v3 = vadd.f32 %v5322_v63, %v2851_v1 }
0x14b2   : > { %5929 = vmatmul.mubr.msk.f32.vlgmr.msra.gmra.mrb[26].mxu0 %vm634_vm0, %v7178_v3 }
0x14b3   : > { %6279 = vmatpush3.bf16.msra.mxu0 %v6278_v2  ;;  %5939 = vmatprep.mubr.msk.f32.mxu0 %vm6533_vm1, %v6534_v14  ;;  %v5353_v2 = vld [vmem:[%s7714_s4 + $0x5] ss:$0 sm:$0xff] }
0x14b4   : > { %6280 = vmatprep.subr.bf16.mxu0 %v6532_v10 }
0x14b7   : > { %6282 = vmatpush3.bf16.msra.mxu0 %v6281_v7 }
0x14b8   : > { %6283 = vmatprep.subr.bf16.mxu0 %v6532_v10 }
0x14ba   : > { %5940 = vmatmul.mubr.msk.f32.vlgmr.msra.gmra.mrb[28].mxu0 %vm634_vm0, %v7178_v3 }
0x14bb   : > { %6285 = vmatpush3.bf16.msra.mxu0 %v6284_v11  ;;  %5950 = vmatprep.mubr.msk.f32.mxu0 %vm6533_vm1, %v6534_v14  ;;  %v5367_v11 = vld [vmem:[%s7663_s8 + $0x5] ss:$0 sm:$0xff] }
0x14bc   : > { %6286 = vmatprep.subr.bf16.mxu0 %v6532_v10 }
0x14bf   : > { %6288 = vmatpush3.bf16.msra.mxu0 %v6287_v15 }
0x14c0   : > { %5953 = vmatprep.subr.mxu0 %v6534_v14 }
0x14c2   : > { %5951 = vmatmul.mubr.msk.f32.vlgmr.msra.gmra.mrb[30].mxu0 %vm634_vm0, %v7178_v3 }
0x14c3   : > { %5955 = vmatprep.mubr.msk.f32.mxu0 %vm6533_vm1, %v6534_v14 }
0x1585   : > { %v2941_v26 = vpop.f32.mrb[26].mxu0 }
0x1586   : > { %v5930_v16 = vpop.f32.mrb[27].mxu0  ;;  %v2942_v19 = vadd.f32 %v5328_v17, %v2941_v26 }
0x1588   : > { %v2945_v27 = vmul.f32 0.35355338, %v2942_v19 }
0x158d   : > { %v3025_v20 = vpop.f32.mrb[28].mxu0 }
0x158e   : > { %v3026_v23 = vadd.f32 %v5335_v18, %v3025_v20  ;;  %v5941_v24 = vpop.f32.mrb[29].mxu0 }
0x1590   : > { %5954 = vmatpush3.xpose.msk.msra.mxu0 %vm910_vm2, %v3026_v23  ;;  %v5372_v23 = vld [vmem:[%s7664_s9 + $0x28] sm:$0xff] }
0x1591   : > { %6289 = vmatprep.subr.bf16.mxu0 %v6532_v10 }
0x1593   : > { %5956 = vmatmul.mubr.msk.f32.vlgmr.msra.gmra.mrb[32].mxu0 %vm910_vm2, %v2945_v27 }
0x1594   : > { %6291 = vmatpush3.bf16.msra.mxu0 %v6290_v25  ;;  %5971 = vmatprep.mubr.msk.f32.mxu0 %vm6533_vm1, %v6534_v14 }
0x1595   : > { %v3108_v32 = vpop.f32.mrb[30].mxu0  ;;  %6292 = vmatprep.subr.bf16.mxu0 %v6532_v10 }
0x1596   : > { %v3109_v35 = vadd.f32 %v5342_v30, %v3108_v32  ;;  %v5952_v36 = vpop.f32.mrb[31].mxu0  ;;  %v5383_v30 = vld [vmem:[%s7711_s5 + $0xc8] sm:$0xff]  ;;  %v5384_v32 = vld [vmem:[%s7711_s5 + $0xd0] sm:$0xff] }
0x1597   : > { %v6317_v34 = vpack.c.bf16 %v5385_v33, %v5384_v32  ;;  %v5376_v36 = vld [vmem:[%s7709_s3 + $0xc8] sm:$0xff]  ;;  %v5408_v33 = vld [vmem:[%s7711_s5 + $0xe0] sm:$0xff] }
0x1598   : > { %5959 = vmatpush3.msra.mxu1 %v3109_v35  ;;  %6294 = vmatpush3.bf16.msra.mxu0 %v6293_v31  ;;  %v6314_v31 = vpack.c.bf16 %v5383_v30, %v5382_v29  ;;  %v5375_v35 = vld [vmem:[%s7709_s3 + $0xc0] sm:$0xff]  ;;  %v5417_v30 = vld [vmem:[%s7662_s7 + $0xf0] sm:$0xff] }
0x1599   : > { %6301 = vmatprep.subr.bf16.mxu0 %v6532_v10  ;;  %6295 = vmatprep.subr.bf16.mxu1 %v6532_v10 }
0x159b   : > { %5972 = vmatmul.mubr.msk.f32.vlgmr.msra.gmra.mrb[34].mxu0 %vm634_vm0, %v7178_v3 }
0x159c   : > { %6303 = vmatpush3.bf16.msra.mxu0 %v6302_v37  ;;  %5993 = vmatprep.mubr.msk.f32.mxu0 %vm6533_vm1, %v6534_v14  ;;  %v6308_v37 = vpack.c.bf16 %v5376_v36, %v5375_v35  ;;  %v5410_v36 = vld [vmem:[%s7711_s5 + $0xf0] sm:$0xff] }
0x159d   : > { %6304 = vmatprep.subr.bf16.mxu0 %v6532_v10 }
0x15a0   : > { %6306 = vmatpush3.bf16.msra.mxu0 %v6305_v40 }
0x15a1   : > { %6006 = vmatprep.subr.mxu0 %v6534_v14 }
0x15a3   : > { %5994 = vmatmul.mubr.msk.f32.vlgmr.msra.gmra.mrb[36].mxu0 %vm634_vm0, %v7178_v3 }
0x15a4   : > { %6008 = vmatprep.mubr.msk.f32.mxu0 %vm6533_vm1, %v6534_v14  ;;  %6007 = vmatpush3.msra.mxu0 %v5372_v23  ;;  %v5403_v23 = vld [vmem:[%s7709_s3 + $0xf0] sm:$0xff] }
0x15a5   : > { %6307 = vmatprep.subr.bf16.mxu0 %v6532_v10 }
0x1666   : > { %v3184_v42 = vpop.f32.mrb[32].mxu0 }
0x1667   : > { %v3185_v43 = vadd.f32 %v3184_v42, %v6820_v6  ;;  %v5957_v45 = vpop.f32.mrb[33].mxu0 }
0x1668   : > { %v5389_v45 = vld [vmem:[%s7662_s7 + $0xc0] sm:$0xff] }
0x1669   : > { %v3188_v46 = vsel %vm910_vm2, %v3185_v43, -inf }
0x166a   : > { %3189 = vmax.xlane.f32.xlu0 %v3188_v46  ;;  %v5390_v46 = vld [vmem:[%s7662_s7 + $0xc8] sm:$0xff] }
0x166e   : > { %v3353_v47 = vpop.f32.mrb[34].mxu0 }
0x166f   : > { %v5973_v48 = vpop.f32.mrb[35].mxu0  ;;  %v3354_v5 = vadd.f32 %v5353_v2, %v3353_v47 }
0x1671   : > { %v3357_v12 = vmul.f32 0.35355338, %v3354_v5 }
0x1676   : > { %v3520_v0 = vpop.f32.mrb[36].mxu0 }
0x1677   : > { %v5995_v49 = vpop.f32.mrb[37].mxu0  ;;  %v3521_v13 = vadd.f32 %v5367_v11, %v3520_v0  ;;  %v6320_v0 = vpack.c.bf16 %v5390_v46, %v5389_v45 }
0x1678   : > { %v5391_v49 = vld [vmem:[%s7662_s7 + $0xd0] sm:$0xff] }
0x16f7   : > { %v3190_v50 = vpop.xlane.xlu0 %3189 }
0x16f8   : > { %v3191_v41 = vsub.f32 %v3185_v43, %v3190_v50  ;;  %v6311_v43 = vpack.c.bf16 %v5378_v39, %v5377_v38  ;;  %v5392_v50 = vld [vmem:[%s7662_s7 + $0xd8] sm:$0xff] }
0x16fa   : > { %v3192_v51 = vmul.f32 1.442695, %v3191_v41  ;;  %v5387_v41 = vld [vmem:[%s7661_s6 + $0x6] ss:$0 sm:$0xff] }
0x16fc   : > { %6446 = vpow2.f32 %v3192_v51  ;;  %v6323_v51 = vpack.c.bf16 %v5392_v50, %v5391_v49  ;;  %v5406_v49 = vld [vmem:[%s7714_s4 + $0x7] ss:$0 sm:$0xff] }
0x16fd   : > { %v5413_v50 = vld [vmem:[%s7661_s6 + $0x7] ss:$0 sm:$0xff] }
0x1706   : > { %v6447_v52 = vpop.eup %6446 }
0x1707   : > { %v3194_v53 = vsel %vm910_vm2, %v6447_v52, 0.0 }
0x1708   : > { %3195 = vadd.xlane.f32.xlu1 %v3194_v53 }
0x1795   : > { %v3196_v54 = vpop.xlane.xlu1 %3195 }
0x1796   : > { %6448 = vrcp.f32 %v3196_v54 }
0x17a0   : > { %v6449_v57 = vpop.eup %6448 }
0x17a1   : > { %v3198_v59 = vmul.f32 %v6449_v57, %v6447_v52 }
0x17a3   : > { %5961 = vmatmul.mubr.msk.f32.vlgmr.msra.gmra.mrb[26].mxu1 %vm910_vm2, %v3198_v59 }
0x17a4   : > { %6297 = vmatpush3.bf16.msra.mxu1 %v6296_v58  ;;  %5982 = vmatprep.mubr.msk.f32.mxu1 %vm6533_vm1, %v6534_v14  ;;  %v5380_v58 = vld [vmem:[%s7714_s4 + $0x6] ss:$0 sm:$0xff]  ;;  %s6468_s4 = scalar_lea.vmem %s7610_s23, 128 }
0x17a5   : > { %6298 = vmatprep.subr.bf16.mxu1 %v6532_v10  ;;  %p6469_p11 = scmp.ne.s32.totalorder %s7610_s23, %s6468_s4 }
0x17a7   : > { %p6470_p12 = pnand %p6469_p11, %p6680_p5 }
0x17a8   : > { %6300 = vmatpush3.bf16.msra.mxu1 %v6299_v62 }
0x17a9   : > { %5996 = vmatprep.subr.mxu1 %v6534_v14  ;;  %p6471_p13 = pneg %p6470_p12 }
0x17ab   : > { %5983 = vmatmul.mubr.msk.f32.vlgmr.msra.gmra.mrb[28].mxu1 %vm634_vm0, %v7178_v3 }
0x17ac   : > { %5998 = vmatprep.mubr.msk.f32.mxu1 %vm6533_vm1, %v6534_v14 }
0x1876   : > { %v3268_v63 = vpop.f32.mrb[26].mxu1 }
0x1877   : > { %v5962_v1 = vpop.f32.mrb[27].mxu1 }
0x187e   : > { %v3437_v7 = vpop.f32.mrb[28].mxu1 }
0x187f   : > { %v3438_v8 = vadd.f32 %v5360_v4, %v3437_v7  ;;  %v5984_v9 = vpop.f32.mrb[29].mxu1 }
0x1881   : > { %5997 = vmatpush3.xpose.msk.msra.mxu1 %vm910_vm2, %v3438_v8 }
0x1882   : > { %6001 = vmatprep.subr.mxu1 %v6534_v14 }
0x1884   : > { %5999 = vmatmul.mubr.msk.f32.vlgmr.msra.gmra.mrb[30].mxu1 %vm910_vm2, %v3357_v12 }
0x1885   : > { %6002 = vmatpush3.msra.mxu1 %v3521_v13  ;;  %6003 = vmatprep.mubr.msk.f32.mxu1 %vm6533_vm1, %v6534_v14 }
0x1886   : > { %6011 = vmatprep.subr.mxu1 %v6534_v14 }
0x1957   : > { %v3596_v15 = vpop.f32.mrb[30].mxu1 }
0x1958   : > { %v3597_v26 = vadd.f32 %v3596_v15, %v6820_v6  ;;  %v6000_v16 = vpop.f32.mrb[31].mxu1 }
0x1959   : > { %v5399_v16 = vld [vmem:[%s7664_s9 + $0x30] sm:$0xff] }
0x195a   : > { %v3600_v17 = vsel %vm910_vm2, %v3597_v26, -inf }
0x195b   : > { %3601 = vmax.xlane.f32.xlu0 %v3600_v17 }
0x19e8   : > { %v3602_v18 = vpop.xlane.xlu0 %3601 }
0x19e9   : > { %v3603_v19 = vsub.f32 %v3597_v26, %v3602_v18  ;;  %v5401_v18 = vld [vmem:[%s7709_s3 + $0xe0] sm:$0xff] }
0x19eb   : > { %v3604_v20 = vmul.f32 1.442695, %v3603_v19  ;;  %v5402_v19 = vld [vmem:[%s7709_s3 + $0xe8] sm:$0xff] }
0x19ed   : > { %6450 = vpow2.f32 %v3604_v20 }
0x19f7   : > { %v6451_v21 = vpop.eup %6450 }
0x19f8   : > { %v3606_v22 = vsel %vm910_vm2, %v6451_v21, 0.0 }
0x19f9   : > { %3607 = vadd.xlane.f32.xlu1 %v3606_v22 }
0x1a86   : > { %v3608_v24 = vpop.xlane.xlu1 %3607 }
0x1a87   : > { %6452 = vrcp.f32 %v3608_v24  ;;  %v5404_v24 = vld [vmem:[%s7709_s3 + $0xf8] sm:$0xff] }
0x1a91   : > { %v6453_v25 = vpop.eup %6452 }
0x1a92   : > { %v3610_v27 = vmul.f32 %v6453_v25, %v6451_v21  ;;  %v6326_v21 = vpack.c.bf16 %v5402_v19, %v5401_v18  ;;  %v6329_v25 = vpack.c.bf16 %v5404_v24, %v5403_v23  ;;  %v5435_v24 = vld [vmem:[%s7668_s13 + $0x30] sm:$0xff] }
0x1a94   : > { %6004 = vmatmul.mubr.msk.f32.vlgmr.msra.gmra.mrb[32].mxu1 %vm910_vm2, %v3610_v27  ;;  %v5415_v27 = vld [vmem:[%s7662_s7 + $0xe0] sm:$0xff] }
0x1a95   : > { %6012 = vmatpush3.msra.mxu1 %v5347_v28  ;;  %6013 = vmatprep.mubr.msk.f32.mxu1 %vm6533_vm1, %v6534_v14  ;;  %v5416_v28 = vld [vmem:[%s7662_s7 + $0xe8] sm:$0xff] }
0x1a96   : > { %6313 = vmatprep.subr.bf16.mxu1 %v6532_v10  ;;  %v6338_v29 = vpack.c.bf16 %v5416_v28, %v5415_v27  ;;  %v5440_v28 = vld [vmem:[%s7670_s15 + $0x80] sm:$0xff] }
0x1a98   : > { %6014 = vmatmul.mubr.msk.f32.vlgmr.msra.gmra.mrb[34].mxu1 %vm910_vm2, %v3268_v63  ;;  %v5394_v63 = vld [vmem:[%s7663_s8 + $0x6] ss:$0 sm:$0xff] }
0x1a99   : > { %6315 = vmatpush3.bf16.msra.mxu1 %v6314_v31  ;;  %6035 = vmatprep.mubr.msk.f32.mxu1 %vm6533_vm1, %v6534_v14  ;;  %v5418_v31 = vld [vmem:[%s7662_s7 + $0xf8] sm:$0xff] }
0x1a9a   : > { %6316 = vmatprep.subr.bf16.mxu1 %v6532_v10  ;;  %v6341_v32 = vpack.c.bf16 %v5418_v31, %v5417_v30 }
0x1a9d   : > { %6318 = vmatpush3.bf16.msra.mxu1 %v6317_v34  ;;  %v5409_v34 = vld [vmem:[%s7711_s5 + $0xe8] sm:$0xff] }
0x1a9e   : > { %6049 = vmatprep.subr.mxu1 %v6534_v14  ;;  %v6332_v35 = vpack.c.bf16 %v5409_v34, %v5408_v33 }
0x1aa0   : > { %6036 = vmatmul.mubr.msk.f32.vlgmr.msra.gmra.mrb[36].mxu1 %vm634_vm0, %v7178_v3 }
0x1aa1   : > { %6051 = vmatprep.mubr.msk.f32.mxu1 %vm6533_vm1, %v6534_v14 }
0x1b67   : > { %v3680_v40 = vpop.f32.mrb[32].mxu1 }
0x1b68   : > { %v6005_v42 = vpop.f32.mrb[33].mxu1  ;;  %6009 = vmatmul.mubr.msk.f32.vlgmr.msra.gmra.mrb[38].mxu0 %vm910_vm2, %v3680_v40 }
0x1b69   : > { %6309 = vmatpush3.bf16.msra.mxu0 %v6308_v37  ;;  %6024 = vmatprep.mubr.msk.f32.mxu0 %vm6533_vm1, %v6534_v14  ;;  %v5411_v37 = vld [vmem:[%s7711_s5 + $0xf8] sm:$0xff]  ;;  %s6474_s5 = scalar_lea.vmem %s6473_s26, 256 }
0x1b6a   : > { %6310 = vmatprep.subr.bf16.mxu0 %v6532_v10  ;;  %v6335_v40 = vpack.c.bf16 %v5411_v37, %v5410_v36  ;;  %v5432_v37 = vld [vmem:[%s7667_s12 + $0x1] ss:$0 sm:$0xff]  ;;  %p6476_p1 = scmp.lt.s32.totalorder %s6474_s5, %s6468_s4 }
0x1b6b   : > { %v3828_v47 = vpop.f32.mrb[34].mxu1 }
0x1b6c   : > { %v6015_v48 = vpop.f32.mrb[35].mxu1  ;;  %p6477_p2 = por %p6476_p1, %p6475_p0 }
0x1b6d   : > { %6312 = vmatpush3.bf16.msra.mxu0 %v6311_v43 }
0x1b6e   : > { %6319 = vmatprep.subr.bf16.mxu0 %v6532_v10  ;;  %p6478_p3 = pnand %p6477_p2, %p6471_p13 }
0x1b70   : > { %6025 = vmatmul.mubr.msk.f32.vlgmr.msra.gmra.mrb[40].mxu0 %vm634_vm0, %v7178_v3 }
0x1b71   : > { %6321 = vmatpush3.bf16.msra.mxu0 %v6320_v0  ;;  %6046 = vmatprep.mubr.msk.f32.mxu0 %vm6533_vm1, %v6534_v14 }
0x1b72   : > { %6322 = vmatprep.subr.bf16.mxu0 %v6532_v10 }
0x1b73   : > { %v3995_v52 = vpop.f32.mrb[36].mxu1 }
0x1b74   : > { %v3996_v53 = vadd.f32 %v5387_v41, %v3995_v52  ;;  %v6037_v54 = vpop.f32.mrb[37].mxu1 }
0x1b75   : > { %6324 = vmatpush3.bf16.msra.mxu0 %v6323_v51 }
0x1b76   : > { %6050 = vmatpush3.xpose.msk.msra.mxu1 %vm910_vm2, %v3996_v53  ;;  %6059 = vmatprep.subr.mxu0 %v6534_v14  ;;  %v5420_v53 = vld [vmem:[%s7663_s8 + $0x7] ss:$0 sm:$0xff] }
0x1b77   : > { %6054 = vmatprep.subr.mxu1 %v6534_v14 }
0x1b78   : > { %6047 = vmatmul.mubr.msk.f32.vlgmr.msra.gmra.mrb[42].mxu0 %vm634_vm0, %v7178_v3 }
0x1b79   : > { %6061 = vmatprep.mubr.msk.f32.mxu0 %vm6533_vm1, %v6534_v14  ;;  %6060 = vmatpush3.msra.mxu0 %v5399_v16 }
0x1b7a   : > { %6331 = vmatprep.subr.bf16.mxu0 %v6532_v10 }
0x1c3b   : > { %v3755_v55 = vpop.f32.mrb[38].mxu0 }
0x1c3c   : > { %v7383_v56 = vadd.f32 %v3828_v47, %v3755_v55  ;;  %v6010_v57 = vpop.f32.mrb[39].mxu0 }
0x1c43   : > { %v3911_v59 = vpop.f32.mrb[40].mxu0 }
0x1c44   : > { %v3912_v60 = vadd.f32 %v5380_v58, %v3911_v59  ;;  %v6026_v61 = vpop.f32.mrb[41].mxu0 }
0x1c46   : > { %v3915_v62 = vmul.f32 0.35355338, %v3912_v60 }
0x1c48   : > { %6052 = vmatmul.mubr.msk.f32.vlgmr.msra.gmra.mrb[38].mxu1 %vm910_vm2, %v3915_v62 }
0x1c49   : > { %6056 = vmatprep.mubr.msk.f32.mxu1 %vm6533_vm1, %v6534_v14 }
0x1c4b   : > { %v4078_v1 = vpop.f32.mrb[42].mxu0 }
0x1c4c   : > { %v4079_v2 = vadd.f32 %v5394_v63, %v4078_v1  ;;  %v6048_v4 = vpop.f32.mrb[43].mxu0 }
0x1c4e   : > { %6055 = vmatpush3.msra.mxu1 %v4079_v2  ;;  %v5425_v2 = vld [vmem:[%s7664_s9 + $0x38] sm:$0xff] }
0x1c4f   : > { %6325 = vmatprep.subr.bf16.mxu1 %v6532_v10 }
0x1d1b   : > { %v4154_v5 = vpop.f32.mrb[38].mxu1 }
0x1d1c   : > { %v4155_v7 = vadd.f32 %v4154_v5, %v6820_v6  ;;  %v6053_v8 = vpop.f32.mrb[39].mxu1 }
0x1d1e   : > { %v4158_v9 = vsel %vm910_vm2, %v4155_v7, -inf }
0x1d1f   : > { %4159 = vmax.xlane.f32.xlu0 %v4158_v9 }
0x1dac   : > { %v4160_v11 = vpop.xlane.xlu0 %4159 }
0x1dad   : > { %v4161_v12 = vsub.f32 %v4155_v7, %v4160_v11 }
0x1daf   : > { %v4162_v13 = vmul.f32 1.442695, %v4161_v12 }
0x1db1   : > { %6454 = vpow2.f32 %v4162_v13  ;;  %v5428_v13 = vld [vmem:[%s7665_s10 + $0x1] ss:$0 sm:$0xff] }
0x1dbb   : > { %v6455_v15 = vpop.eup %6454 }
0x1dbc   : > { %v4164_v26 = vsel %vm910_vm2, %v6455_v15, 0.0 }
0x1dbd   : > { %4165 = vadd.xlane.f32.xlu1 %v4164_v26 }
0x1e4a   : > { %v4166_v17 = vpop.xlane.xlu1 %4165 }
0x1e4b   : > { %6456 = vrcp.f32 %v4166_v17 }
0x1e55   : > { %v6457_v20 = vpop.eup %6456 }
0x1e56   : > { %v4168_v22 = vmul.f32 %v6457_v20, %v6455_v15 }
0x1e58   : > { %6057 = vmatmul.mubr.msk.f32.vlgmr.msra.gmra.mrb[40].mxu1 %vm910_vm2, %v4168_v22  ;;  %v5433_v22 = vld [vmem:[%s7668_s13 + $0x20] sm:$0xff] }
0x1e59   : > { %6327 = vmatpush3.bf16.msra.mxu1 %v6326_v21  ;;  %6072 = vmatprep.mubr.msk.f32.mxu1 %vm6533_vm1, %v6534_v14 }
0x1e5a   : > { %6328 = vmatprep.subr.bf16.mxu1 %v6532_v10 }
0x1e5d   : > { %6330 = vmatpush3.bf16.msra.mxu1 %v6329_v25  ;;  %v5436_v25 = vld [vmem:[%s7668_s13 + $0x38] sm:$0xff] }
0x1e5e   : > { %6337 = vmatprep.subr.bf16.mxu1 %v6532_v10  ;;  %v6347_v27 = vpack.c.bf16 %v5436_v25, %v5435_v24  ;;  %v5068_v24 = vld [vmem:[%s7674_s19 + $0x10] sm:$0xff]  ;;  %v5069_v25 = vld [vmem:[%s7674_s19 + $0x18] sm:$0xff] }
0x1e60   : > { %6073 = vmatmul.mubr.msk.f32.vlgmr.msra.gmra.mrb[42].mxu1 %vm634_vm0, %v7178_v3 }
0x1e61   : > { %6339 = vmatpush3.bf16.msra.mxu1 %v6338_v29  ;;  %6094 = vmatprep.mubr.msk.f32.mxu1 %vm6533_vm1, %v6534_v14  ;;  %v5441_v29 = vld [vmem:[%s7670_s15 + $0x88] sm:$0xff] }
0x1e62   : > { %6340 = vmatprep.subr.bf16.mxu1 %v6532_v10  ;;  %v6350_v30 = vpack.c.bf16 %v5441_v29, %v5440_v28 }
0x1e65   : > { %6342 = vmatpush3.bf16.msra.mxu1 %v6341_v32 }
0x1e66   : > { %6107 = vmatprep.subr.mxu1 %v6534_v14 }
0x1e68   : > { %6095 = vmatmul.mubr.msk.f32.vlgmr.msra.gmra.mrb[44].mxu1 %vm634_vm0, %v7178_v3 }
0x1e69   : > { %6109 = vmatprep.mubr.msk.f32.mxu1 %vm6533_vm1, %v6534_v14  ;;  %6108 = vmatpush3.msra.mxu1 %v5425_v2 }
0x1e6a   : > { %6349 = vmatprep.subr.bf16.mxu1 %v6532_v10 }
0x1f2b   : > { %v4238_v38 = vpop.f32.mrb[40].mxu1 }
0x1f2c   : > { %v6058_v39 = vpop.f32.mrb[41].mxu1  ;;  %6062 = vmatmul.mubr.msk.f32.vlgmr.msra.gmra.mrb[44].mxu0 %vm910_vm2, %v4238_v38 }
0x1f2d   : > { %6333 = vmatpush3.bf16.msra.mxu0 %v6332_v35  ;;  %6083 = vmatprep.mubr.msk.f32.mxu0 %vm6533_vm1, %v6534_v14  ;;  %v5431_v35 = vld [vmem:[%s7666_s11 + $0x1] ss:$0 sm:$0xff] }
0x1f2e   : > { %6334 = vmatprep.subr.bf16.mxu0 %v6532_v10 }
0x1f31   : > { %6336 = vmatpush3.bf16.msra.mxu0 %v6335_v40  ;;  %v5442_v40 = vld [vmem:[%s7670_s15 + $0x90] sm:$0xff] }
0x1f32   : > { %6097 = vmatprep.subr.mxu0 %v6534_v14 }
0x1f33   : > { %v4397_v42 = vpop.f32.mrb[42].mxu1 }
0x1f34   : > { %v6074_v43 = vpop.f32.mrb[43].mxu1  ;;  %6084 = vmatmul.mubr.msk.f32.vlgmr.msra.gmra.mrb[46].mxu0 %vm634_vm0, %v7178_v3  ;;  %v4398_v41 = vadd.f32 %v5406_v49, %v4397_v42  ;;  %v5443_v42 = vld [vmem:[%s7670_s15 + $0x98] sm:$0xff]  ;;  %v5448_v49 = vld [vmem:[%s7670_s15 + $0xc0] sm:$0xff] }
0x1f35   : > { %6099 = vmatprep.mubr.msk.f32.mxu0 %vm6533_vm1, %v6534_v14  ;;  %v6353_v43 = vpack.c.bf16 %v5443_v42, %v5442_v40 }
0x1f36   : > { %v4401_v54 = vmul.f32 0.35355338, %v4398_v41 }
0x1f3b   : > { %v4564_v45 = vpop.f32.mrb[44].mxu1 }
0x1f3c   : > { %v6096_v46 = vpop.f32.mrb[45].mxu1  ;;  %v4565_v55 = vadd.f32 %v5420_v53, %v4564_v45  ;;  %v5444_v45 = vld [vmem:[%s7670_s15 + $0xa0] sm:$0xff] }
0x1f3d   : > { %v5452_v53 = vld [vmem:[%s7670_s15 + $0xe0] sm:$0xff] }
0x1fff   : > { %v4313_v47 = vpop.f32.mrb[44].mxu0 }
0x2000   : > { %v4317_v48 = vadd.f32 %v4313_v47, %v7383_v56  ;;  %v6063_v0 = vpop.f32.mrb[45].mxu0  ;;  %v5446_v47 = vld [vmem:[%s7670_s15 + $0xb0] sm:$0xff] }
0x2007   : > { %v4481_v51 = vpop.f32.mrb[46].mxu0 }
0x2008   : > { %v4482_v3 = vadd.f32 %v5413_v50, %v4481_v51  ;;  %v6085_v52 = vpop.f32.mrb[47].mxu0  ;;  %v5449_v50 = vld [vmem:[%s7670_s15 + $0xc8] sm:$0xff]  ;;  %v5450_v51 = vld [vmem:[%s7670_s15 + $0xd0] sm:$0xff] }
0x2009   : > { %v6362_v41 = vpack.c.bf16 %v5449_v50, %v5448_v49 }
0x200a   : > { %6098 = vmatpush3.xpose.msk.msra.mxu0 %vm910_vm2, %v4482_v3  ;;  %v5451_v3 = vld [vmem:[%s7670_s15 + $0xd8] sm:$0xff] }
0x200b   : > { %6102 = vmatprep.subr.mxu0 %v6534_v14  ;;  %v6365_v52 = vpack.c.bf16 %v5451_v3, %v5450_v51 }
0x200d   : > { %6100 = vmatmul.mubr.msk.f32.vlgmr.msra.gmra.mrb[48].mxu0 %vm910_vm2, %v4401_v54  ;;  %v5453_v54 = vld [vmem:[%s7670_s15 + $0xe8] sm:$0xff] }
0x200e   : > { %6103 = vmatpush3.msra.mxu0 %v4565_v55  ;;  %6104 = vmatprep.mubr.msk.f32.mxu0 %vm6533_vm1, %v6534_v14  ;;  %v6368_v55 = vpack.c.bf16 %v5453_v54, %v5452_v53 }
0x200f   : > { %6343 = vmatprep.subr.bf16.mxu0 %v6532_v10 }
0x20e0   : > { %v4640_v56 = vpop.f32.mrb[48].mxu0 }
0x20e1   : > { %v4641_v57 = vadd.f32 %v4640_v56, %v6820_v6  ;;  %v6101_v58 = vpop.f32.mrb[49].mxu0  ;;  %v5454_v56 = vld [vmem:[%s7670_s15 + $0xf0] sm:$0xff] }
0x20e3   : > { %v4644_v59 = vsel %vm910_vm2, %v4641_v57, -inf }
0x20e4   : > { %4645 = vmax.xlane.f32.xlu0 %v4644_v59  ;;  %v5438_v59 = vld [vmem:[%s7669_s14 + $0x1] ss:$0 sm:$0xff] }
0x2171   : > { %v4646_v60 = vpop.xlane.xlu0 %4645 }
0x2172   : > { %v4647_v61 = vsub.f32 %v4641_v57, %v4646_v60  ;;  %v5455_v57 = vld [vmem:[%s7670_s15 + $0xf8] sm:$0xff] }
0x2173   : > { %v6371_v58 = vpack.c.bf16 %v5455_v57, %v5454_v56 }
0x2174   : > { %v4648_v62 = vmul.f32 1.442695, %v4647_v61 }
0x2176   : > { %6458 = vpow2.f32 %v4648_v62 }
0x2180   : > { %v6459_v63 = vpop.eup %6458 }
0x2181   : > { %v4650_v1 = vsel %vm910_vm2, %v6459_v63, 0.0 }
0x2182   : > { %4651 = vadd.xlane.f32.xlu1 %v4650_v1 }
0x220f   : > { %v4652_v6 = vpop.xlane.xlu1 %4651 }
0x2210   : > { %6460 = vrcp.f32 %v4652_v6 }
0x221a   : > { %v6461_v4 = vpop.eup %6460 }
0x221b   : > { %v4654_v5 = vmul.f32 %v6461_v4, %v6459_v63 }
0x221d   : > { %6105 = vmatmul.mubr.msk.f32.vlgmr.msra.gmra.mrb[50].mxu0 %vm910_vm2, %v4654_v5 }
0x221e   : > { %6120 = vmatprep.mubr.msk.f32.mxu0 %vm6533_vm1, %v6534_v14 }
0x22f0   : > { %v4724_v7 = vpop.f32.mrb[50].mxu0 }
0x22f1   : > { %v6106_v8 = vpop.f32.mrb[51].mxu0  ;;  %6110 = vmatmul.mubr.msk.f32.vlgmr.msra.gmra.mrb[46].mxu1 %vm910_vm2, %v4724_v7 }
0x22f2   : > { %6155 = vmatprep.mubr.msk.f32.mxu1 %vm6533_vm1, %v6534_v14  ;;  %6351 = vmatpush3.bf16.msra.mxu1 %v6350_v30 }
0x22f3   : > { %6352 = vmatprep.subr.bf16.mxu1 %v6532_v10 }
0x22f6   : > { %6354 = vmatpush3.bf16.msra.mxu1 %v6353_v43 }
0x22f7   : > { %6355 = vmatprep.subr.bf16.mxu1 %v6532_v10 }
0x23c4   : > { %v4799_v9 = vpop.f32.mrb[46].mxu1 }
0x23c5   : > { %v4803_v11 = vadd.f32 %v4799_v9, %v4317_v48  ;;  %v6111_v12 = vpop.f32.mrb[47].mxu1  ;;  %v5447_v48 = vld [vmem:[%s7670_s15 + $0xb8] sm:$0xff] }
0x23c6   : > { %v6359_v0 = vpack.c.bf16 %v5447_v48, %v5446_v47  ;;  %v5457_v12 = vld [vmem:[%s7671_s16 + $0x1] ss:$0 sm:$0xff] }
0x23c7   : > { %v4804_v15 = vadd.f32 %v4803_v11, %v7146_v44  ;;  %v5434_v44 = vld [vmem:[%s7668_s13 + $0x28] sm:$0xff] }
0x23c8   : > { %v6344_v23 = vpack.c.bf16 %v5434_v44, %v5433_v22  ;;  %v5066_v44 = vld [vmem:[%s7674_s19] sm:$0xff] }
0x23c9   : > { %v7495_v26 = vadd.f32 %v5428_v13, %v4804_v15 }
0x23ca   : > { %6345 = vmatpush3.bf16.msra.mxu0 %v6344_v23 }
0x23cb   : > { %v4818_v16 = vsel %vm634_vm0, %v7495_v26, 0.0  ;;  %6346 = vmatprep.subr.bf16.mxu0 %v6532_v10 }
0x23cc   : > { %4819 = vadd.xlane.f32.xlu0 %v4818_v16 }
0x23ce   : > { %6348 = vmatpush3.bf16.msra.mxu0 %v6347_v27  ;;  %v6377_v27 = vpack.c.bf16 %v5069_v25, %v5068_v24 }
0x23cf   : > { %6373 = vmatprep.subr.bf16.mxu0 %v6532_v10 }
0x2459   : > { %v4820_v17 = vpop.xlane.xlu0 %4819 }
0x245a   : > { %v4821_v18 = vmul.f32 0.03125, %v4820_v17 }
0x245c   : > { %v4822_v19 = vsub.f32 %v7495_v26, %v4821_v18 }
0x245e   : > { %v4823_v20 = vmul.f32 %v4822_v19, %v4822_v19 }
0x2460   : > { %v4824_v21 = vsel %vm634_vm0, %v4823_v20, 0.0 }
0x2461   : > { %4825 = vadd.xlane.f32.xlu1 %v4824_v21 }
0x24ee   : > { %v4826_v31 = vpop.xlane.xlu1 %4825 }
0x24ef   : > { %v4827_v32 = vmul.f32 0.03125, %v4826_v31 }
0x24f1   : > { %v4828_v33 = vadd.f32 1e-05, %v4827_v32 }
0x24f3   : > { %6462 = vrsqrt.f32 %v4828_v33  ;;  %v5459_v33 = vld [vmem:[%s7673_s18] ss:$0 sm:$0xff] }
0x24fd   : > { %v6463_v34 = vpop.eup %6462 }
0x24fe   : > { %v4830_v36 = vmul.f32 %v6463_v34, %v4822_v19 }
0x2500   : > { %v4837_v38 = vmul.f32 %v5431_v35, %v4830_v36 }
0x2502   : > { %v4844_v39 = vadd.f32 %v5432_v37, %v4837_v38 }
0x2504   : > { %6121 = vmatmul.mubr.msk.f32.vlgmr.msra.gmra.mrb[52].mxu0 %vm634_vm0, %v4844_v39 }
0x2505   : > { %6166 = vmatprep.mubr.msk.f32.mxu0 %vm6533_vm1, %v6534_v14  ;;  %v5445_v14 = vld [vmem:[%s7670_s15 + $0xa8] sm:$0xff] }
0x2506   : > { %v6356_v46 = vpack.c.bf16 %v5445_v14, %v5444_v45 }
0x2508   : > { %6357 = vmatpush3.bf16.msra.mxu1 %v6356_v46 }
0x2509   : > { %6358 = vmatprep.subr.bf16.mxu1 %v6532_v10 }
0x250c   : > { %6360 = vmatpush3.bf16.msra.mxu1 %v6359_v0 }
0x250d   : > { %6361 = vmatprep.subr.bf16.mxu1 %v6532_v10 }
0x2510   : > { %6363 = vmatpush3.bf16.msra.mxu1 %v6362_v41 }
0x2511   : > { %6364 = vmatprep.subr.bf16.mxu1 %v6532_v10 }
0x2514   : > { %6366 = vmatpush3.bf16.msra.mxu1 %v6365_v52 }
0x2515   : > { %6367 = vmatprep.subr.bf16.mxu1 %v6532_v10 }
0x2518   : > { %6369 = vmatpush3.bf16.msra.mxu1 %v6368_v55 }
0x2519   : > { %6370 = vmatprep.subr.bf16.mxu1 %v6532_v10 }
0x251c   : > { %6372 = vmatpush3.bf16.msra.mxu1 %v6371_v58 }
0x25d7   : > { %v4927_v60 = vpop.f32.mrb[52].mxu0 }
0x25d8   : > { %v4928_v61 = vadd.f32 %v5438_v59, %v4927_v60  ;;  %v6122_v62 = vpop.f32.mrb[53].mxu0 }
0x25da   : > { %v4932_v63 = vmul.f32 0.044715, %v4928_v61  ;;  %v4931_v7 = vmul.f32 0.5, %v4928_v61 }
0x25dc   : > { %v4933_v1 = vmul.f32 %v4932_v63, %v4928_v61 }
0x25de   : > { %v4934_v2 = vmul.f32 %v4933_v1, %v4928_v61 }
0x25e0   : > { %v4935_v6 = vadd.f32 %v4934_v2, %v4928_v61 }
0x25e2   : > { %v4936_v4 = vmul.f32 0.7978846, %v4935_v6 }
0x25e4   : > { %6464 = vtanh.f32 %v4936_v4 }
0x25ee   : > { %v6465_v5 = vpop.eup %6464 }
0x25ef   : > { %v4938_v8 = vadd.f32 1.0, %v6465_v5 }
0x25f1   : > { %v4939_v9 = vmul.f32 %v4938_v8, %v4931_v7 }
0x25f3   : > { %6156 = vmatmul.mubr.f32.vlgmr.msra.gmra.mrb[48].mxu1 %v4939_v9 }
0x26c6   : > { %v5023_v11 = vpop.f32.mrb[48].mxu1 }
0x26c7   : > { %v5027_v13 = vadd.f32 %v5023_v11, %v7495_v26  ;;  %v6157_v15 = vpop.f32.mrb[49].mxu1  ;;  %v5067_v26 = vld [vmem:[%s7674_s19 + $0x8] sm:$0xff] }
0x26c8   : > { %v6374_v23 = vpack.c.bf16 %v5067_v26, %v5066_v44 }
0x26c9   : > { %v5036_v16 = vadd.f32 %v5457_v12, %v5027_v13 }
0x26ca   : > { %6375 = vmatpush3.bf16.msra.mxu0 %v6374_v23 }
0x26cb   : > { %v5039_v17 = vsel %vm634_vm0, %v5036_v16, 0.0  ;;  %6376 = vmatprep.subr.bf16.mxu0 %v6532_v10  ;;  %v5458_v10 = vld [vmem:[%s7672_s17] ss:$0 sm:$0xff] }
0x26cc   : > { %5040 = vadd.xlane.f32.xlu0 %v5039_v17 }
0x26ce   : > { %6378 = vmatpush3.bf16.msra.mxu0 %v6377_v27 }
0x2759   : > { %v5041_v18 = vpop.xlane.xlu0 %5040 }
0x275a   : > { %v5042_v19 = vmul.f32 0.03125, %v5041_v18 }
0x275c   : > { %v5043_v20 = vsub.f32 %v5036_v16, %v5042_v19 }
0x275e   : > { %v5044_v21 = vmul.f32 %v5043_v20, %v5043_v20 }
0x2760   : > { %v5045_v22 = vsel %vm634_vm0, %v5044_v21, 0.0 }
0x2761   : > { %5046 = vadd.xlane.f32.xlu1 %v5045_v22 }
0x27ee   : > { %v5047_v28 = vpop.xlane.xlu1 %5046 }
0x27ef   : > { %v5048_v29 = vmul.f32 0.03125, %v5047_v28 }
0x27f1   : > { %v5049_v30 = vadd.f32 1e-05, %v5048_v29 }
0x27f3   : > { %6466 = vrsqrt.f32 %v5049_v30 }
0x27fd   : > { %v6467_v31 = vpop.eup %6466 }
0x27fe   : > { %v5051_v32 = vmul.f32 %v6467_v31, %v5043_v20 }
0x2800   : > { %v5058_v34 = vmul.f32 %v5458_v10, %v5051_v32 }
0x2802   : > { %v5065_v35 = vadd.f32 %v5459_v33, %v5058_v34 }
0x2804   : > { %6167 = vmatmul.mubr.msk.f32.vlgmr.msra.gmra.mrb[54].mxu0 %vm634_vm0, %v5065_v35 }
0x28d7   : > { %v5139_v36 = vpop.f32.mrb[54].mxu0 }
0x28d8   : > { %5143 = vst [vmem:[%s620_s27] sm:$0xff] %v5139_v36  ;;  %v6168_v37 = vpop.f32.mrb[55].mxu0 }
0x28d9   : > { %6481 = shalt.err (!%p6478_p3)
}
0x28da   : > { %s6482_s3 = scalar_lea.hbm %s7615_s24, 128  ;;  %s6486_s28 = scalar_lea.hbm %s7716_s30, 256 }
0x28db   : > { %p6483_p4 = scmp.ne.s32.totalorder %s7615_s24, %s6482_s3  ;;  %p6487_p9 = scmp.lt.u32.totalorder %s7615_s24, %s7716_s30 }
0x28dc   : > { %p6488_p10 = scmp.lt.u32.totalorder %s6486_s28, %s6482_s3  ;;  %p6490_p12 = scmp.lt.u32.totalorder %s6482_s3, %s7615_s24 }
0x28dd   : > { %p6484_p7 = pnand %p6483_p4, %p6680_p5 }
0x28de   : > { %p6489_p11 = por %p6488_p10, %p6487_p9 }
0x28df   : > { %p6485_p8 = pneg %p6484_p7 }
0x28e0   : > { %p6491_p13 = por %p6490_p12, %p6489_p11 }
0x28e2   : > { %p6492_p0 = pnand %p6491_p13, %p6485_p8 }
0x28e4   : > { %6495 = shalt.err (!%p6492_p0)
}
0x28e5   : > { %6379 = dma.vmem_to_hbm [thread:$0]  (%p6680_p5), %s7610_s23, 128, %s7615_s24, %s5145_s21  }
0x28e6 PF: > { %s7717_s5 = sld [smem:[#allocation7_spill]]  ;;  %s7718_s4 = sld [smem:[#allocation5_spill]] }
0x28ec   : > { %p6385_p1 = scmp.ge.s32.totalorder %s7717_s5, 2  ;;  %s5170_s25 = sand.u32 1, %s7718_s4  }
0x28ed   : > { %s5171_s27 = scalar_lea.sflag [#allocation3], %s5170_s25 }
0x28ee   : > { %p6382_p2 = pnand %p6385_p1, %p6684_p6 }
0x28f0   : > { %6513 = dma.done.wait (!%p6382_p2), %s5171_s27, 128  }
0x28f1   : > { %6515 = vsyncadd (!%p6382_p2), %s5171_s27, 4294967168  ;;  %s7720_s24 = sld [smem:[#allocation8_spill]]  ;;  %s7721_s3 = sld [smem:[#allocation6_spill]] }
0x28f2   : > { %s7722_s23 = sld [smem:[#allocation9_spill]]  ;;  %s7723_s1 = smov %s6522_s22 }
0x28f7   : > { %p30_p3 = scmp.ge.s32.totalorder %s7720_s24, 4   ;;  %s7724_s22 = smov %s7721_s3 }
0x28f9   :  { %32 = sbr.rel (!%p30_p3) target bundleno = 11 (0xb), region = 193 }
0x2900   :  { %5176 = vsyncpa [#allocation3], 1 }
0x2901   :  { %5178 = vsyncpa [#allocation3 + $0x1], 1 }

</bundles_post_ra>
